<compile_context>
chip_gen: v5e
topology: v5e:2x2
jax: 0.10.0
libtpu: 0.0.40
codegen_flags: <defaults>
</compile_context>

<pallas_src>
import functools
import jax
import jax.numpy as jnp
from jax import lax
from jax.experimental import pallas as pl
from jax.experimental.pallas import tpu as pltpu

# ----------------------------- config ---------------------------------------
VOCAB = 100
HIDDEN = 32
NUM_LAYERS = 2
NUM_HEADS = 4
HEAD_DIM = HIDDEN // NUM_HEADS
INTERMEDIATE = 64
MAX_POS = 16
TYPE_VOCAB = 2
NUM_CLASSES = 3
LN_EPS = 1e-12
ATT_SCALE = 1.0 / float(HEAD_DIM) ** 0.5
EMB_ROWS = VOCAB + MAX_POS + TYPE_VOCAB            # fused word|pos|type table


# --------------------------- in-kernel helpers -------------------------------

def _layernorm(x, g, b, eps=LN_EPS):
    mu = jnp.mean(x, axis=-1, keepdims=True)
    var = jnp.mean((x - mu) * (x - mu), axis=-1, keepdims=True)
    inv = lax.rsqrt(var + eps)
    return (x - mu) * inv * g + b


def _gelu(x):
    # exact (erf) GELU, as in BERT
    return 0.5 * x * (1.0 + lax.erf(x * jnp.float32(0.7071067811865476)))


# ---------------------------- fused kernel -----------------------------------

def _bert_fused_kernel(
    ids_ref, mask_ref, labels_ref,
    emb_tab_ref, qkv_w_ref, qkv_b_ref, o_w_ref, ln_vec_ref,
    i_w_ref, i_b_ref, f_w_ref,
    glob_vec_ref, pooler_w_ref, cls_w_ref, cls_b_ref,
    probs_ref, loss_ref,
    scores_ref, attn_ref,                       # VMEM scratch
    *, batch, seq,
):
    B, S, H = batch, seq, HIDDEN
    NH, Dh = NUM_HEADS, HEAD_DIM
    BS = B * S
    f32 = jnp.float32
    bf16 = jnp.bfloat16

    # ---- in-kernel embedding lookup: multi-hot x fused (word|pos|type) table --
    ids = ids_ref[...]                                                 # [BS,3] i32
    iota = lax.broadcasted_iota(jnp.int32, (BS, EMB_ROWS), 1)
    hot = ((iota == ids[:, 0:1]) | (iota == ids[:, 1:2]) |
           (iota == ids[:, 2:3])).astype(f32)                          # [BS,EMB_ROWS]
    emb = jnp.dot(hot, emb_tab_ref[...], preferred_element_type=f32)   # exact row sum
    h = _layernorm(emb, glob_vec_ref[0], glob_vec_ref[1])              # [BS, H]

    # additive attention-mask bias, hoisted out of all loops
    bias_all = (mask_ref[...] - 1.0) * 1e9                             # [B, S]
    bias_rows = [bias_all[b:b + 1, :] for b in range(B)]

    for l in range(NUM_LAYERS):
        # per-head weights loaded once per layer (static ref indexing is free),
        # cast to bf16 for single-pass MXU matmuls.
        wq = [qkv_w_ref[(l * 3 + 0) * NH + hh].astype(bf16) for hh in range(NH)]
        wk = [qkv_w_ref[(l * 3 + 1) * NH + hh].astype(bf16) for hh in range(NH)]
        wv = [qkv_w_ref[(l * 3 + 2) * NH + hh].astype(bf16) for hh in range(NH)]
        bq = [qkv_b_ref[(l * 3 + 0) * NH + hh] for hh in range(NH)]
        bk = [qkv_b_ref[(l * 3 + 1) * NH + hh] for hh in range(NH)]
        bv = [qkv_b_ref[(l * 3 + 2) * NH + hh] for hh in range(NH)]
        wo = [o_w_ref[l * NH + hh].astype(bf16) for hh in range(NH)]

        # ---- pass 1: per (batch, head) Q/K/V + raw scores -> scores scratch ---
        v_tiles = []
        for b in range(B):
            h_b = h[b * S:(b + 1) * S, :].astype(bf16)                 # [S, H]
            for hh in range(NH):
                q = jnp.dot(h_b, wq[hh], preferred_element_type=f32) + bq[hh]
                k = jnp.dot(h_b, wk[hh], preferred_element_type=f32) + bk[hh]
                v = jnp.dot(h_b, wv[hh], preferred_element_type=f32) + bv[hh]
                v_tiles.append(v.astype(bf16))
                s = lax.dot_general(q.astype(bf16), k.astype(bf16),
                                    (((1,), (1,)), ((), ())),
                                    preferred_element_type=f32)        # [S, S]
                r0 = (b * NH + hh) * S
                scores_ref[r0:r0 + S, :] = s * ATT_SCALE + bias_rows[b]

        # ---- one batched softmax over every (batch, head) tile -----------------
        s_all = scores_ref[...]                                        # [B*NH*S, S]
        s_all = s_all - jnp.max(s_all, axis=-1, keepdims=True)
        p_all = jnp.exp(s_all)
        p_all = p_all * pl.reciprocal(jnp.sum(p_all, axis=-1, keepdims=True),
                                      approx=True)

        # ---- pass 2: context + per-head output projection, no concatenates -----
        for b in range(B):
            acc = None
            for hh in range(NH):
                r0 = (b * NH + hh) * S
                ctx = jnp.dot(p_all[r0:r0 + S, :].astype(bf16),
                              v_tiles[b * NH + hh],
                              preferred_element_type=f32)              # [S, Dh]
                part = jnp.dot(ctx.astype(bf16), wo[hh],
                               preferred_element_type=f32)             # [S, H]
                acc = part if acc is None else acc + part
            attn_ref[b * S:(b + 1) * S, :] = acc

        attn_out = attn_ref[...] + ln_vec_ref[l * 6 + 0]               # + o_b
        h = _layernorm(attn_out + h, ln_vec_ref[l * 6 + 1], ln_vec_ref[l * 6 + 2])

        # ---- feed-forward + residual + LayerNorm -------------------------------
        ff = jnp.dot(h.astype(bf16), i_w_ref[l].astype(bf16),
                     preferred_element_type=f32) + i_b_ref[l]
        ff = _gelu(ff)
        ff_out = jnp.dot(ff.astype(bf16), f_w_ref[l].astype(bf16),
                         preferred_element_type=f32) + ln_vec_ref[l * 6 + 3]
        h = _layernorm(ff_out + h, ln_vec_ref[l * 6 + 4], ln_vec_ref[l * 6 + 5])

    # ---- pooler on the CLS token of each sequence (strided sublane load) -------
    attn_ref[...] = h
    cls_tok = attn_ref[pl.ds(0, B, stride=S), :]                       # rows 0, S, ...
    pooled = jnp.tanh(
        jnp.dot(cls_tok.astype(bf16), pooler_w_ref[...].astype(bf16),
                preferred_element_type=f32) + glob_vec_ref[2])

    # ---- classifier head + sigmoid ----------------------------------------------
    logits = jnp.dot(pooled.astype(bf16), cls_w_ref[...].astype(bf16),
                     preferred_element_type=f32) + cls_b_ref[...]
    probs = jax.nn.sigmoid(logits)
    probs_ref[...] = probs.astype(probs_ref.dtype)

    # ---- BCE loss, log terms clamped at -100 (matches torch.nn.BCELoss) ---------
    y = labels_ref[...]
    log_p = jnp.maximum(jnp.log(probs), -100.0)
    log_not_p = jnp.maximum(jnp.log(1.0 - probs), -100.0)
    loss_ref[...] = jnp.mean(-(y * log_p + (1.0 - y) * log_not_p)).reshape(1, 1)


def _full_spec(arr):
    zeros = (0,) * arr.ndim
    return pl.BlockSpec(arr.shape, lambda i, _z=zeros: _z)


def bert_fused_forward(ids3, mask, labels, p, *, batch, seq):
    """Single pallas_call over the whole post-tokenization forward pass."""
    inputs = (
        ids3, mask, labels,
        p["emb_table"], p["qkv_w"], p["qkv_b"], p["o_w"], p["ln_vecs"],
        p["i_w"], p["i_b"], p["f_w"],
        p["glob_vecs"], p["pooler_w"], p["cls_w"], p["cls_b"],
    )
    # TODO(synk): on v7x the batch could be sharded across the two TensorCores
    # with a leading "parallel" grid axis; kept grid=(1,) because v5e/v6e have a
    # single TC and extra grid steps are pure overhead there.
    return pl.pallas_call(
        functools.partial(_bert_fused_kernel, batch=batch, seq=seq),
        out_shape=(
            jax.ShapeDtypeStruct((batch, NUM_CLASSES), jnp.float32),
            jax.ShapeDtypeStruct((1, 1), jnp.float32),
        ),
        grid=(1,),
        in_specs=[_full_spec(x) for x in inputs],
        out_specs=[
            pl.BlockSpec((batch, NUM_CLASSES), lambda i: (0, 0)),
            pl.BlockSpec((1, 1), lambda i: (0, 0)),
        ],
        scratch_shapes=[
            pltpu.VMEM((batch * NUM_HEADS * seq, seq), jnp.float32),   # score tiles
            pltpu.VMEM((batch * seq, HIDDEN), jnp.float32),            # attn / CLS
        ],
        compiler_params=pltpu.CompilerParams(
            dimension_semantics=("arbitrary",)),
    )(*inputs)


# ----------------------------- parameters -----------------------------------

def init_params(key):
    keys = iter(jax.random.split(key, 64))

    def w(shape):
        return jax.random.normal(next(keys), shape, jnp.float32) * 0.02

    L, H, I, C = NUM_LAYERS, HIDDEN, INTERMEDIATE, NUM_CLASSES
    NH, Dh = NUM_HEADS, HEAD_DIM

    # Standard BERT-shaped weights, then packed into the kernel layout.
    q_w, k_w, v_w = w((L, H, H)), w((L, H, H)), w((L, H, H))
    q_b = jnp.zeros((L, H), jnp.float32)
    k_b = jnp.zeros((L, H), jnp.float32)
    v_b = jnp.zeros((L, H), jnp.float32)
    o_w = w((L, H, H))
    o_b = jnp.zeros((L, H), jnp.float32)
    ln1_g, ln1_b = jnp.ones((L, H), jnp.float32), jnp.zeros((L, H), jnp.float32)
    i_w, i_b = w((L, H, I)), jnp.zeros((L, I), jnp.float32)
    f_w, f_b = w((L, I, H)), jnp.zeros((L, H), jnp.float32)
    ln2_g, ln2_b = jnp.ones((L, H), jnp.float32), jnp.zeros((L, H), jnp.float32)

    def split_heads_w(m):                    # [L, H, H] -> [L, NH, H, Dh]
        return m.reshape(L, H, NH, Dh).transpose(0, 2, 1, 3)

    qkv_w = jnp.stack([split_heads_w(q_w), split_heads_w(k_w), split_heads_w(v_w)],
                      axis=1).reshape(L * 3 * NH, H, Dh)
    qkv_b = jnp.stack([q_b.reshape(L, NH, Dh), k_b.reshape(L, NH, Dh),
                       v_b.reshape(L, NH, Dh)], axis=1).reshape(L * 3 * NH, 1, Dh)
    o_w_h = o_w.reshape(L, NH, Dh, H).reshape(L * NH, Dh, H)
    ln_vecs = jnp.stack([o_b, ln1_g, ln1_b, f_b, ln2_g, ln2_b],
                        axis=1).reshape(L * 6, 1, H)
    glob_vecs = jnp.stack([jnp.ones((H,), jnp.float32),    # emb LN gamma
                           jnp.zeros((H,), jnp.float32),   # emb LN beta
                           jnp.zeros((H,), jnp.float32)],  # pooler bias
                          axis=0).reshape(3, 1, H)
    emb_table = jnp.concatenate([w((VOCAB, H)), w((MAX_POS, H)), w((TYPE_VOCAB, H))],
                                axis=0)                     # [EMB_ROWS, H]

    return {
        "emb_table": emb_table,
        "qkv_w": qkv_w, "qkv_b": qkv_b,
        "o_w": o_w_h,
        "ln_vecs": ln_vecs,
        "i_w": i_w, "i_b": i_b.reshape(L, 1, I), "f_w": f_w,
        "glob_vecs": glob_vecs,
        "pooler_w": w((H, H)),
        "cls_w": w((H, C)), "cls_b": jnp.zeros((1, C), jnp.float32),
    }


# ------------------------------ forward -------------------------------------

def bert_classifier_forward(params, input_ids, attention_mask=None,
                            token_type_ids=None, position_ids=None,
                            head_mask=None, labels=None):
    B, S = input_ids.shape
    if attention_mask is None:
        attention_mask = jnp.ones((B, S), jnp.float32)
    attention_mask = attention_mask.astype(jnp.float32)
    if token_type_ids is None:
        token_type_ids = jnp.zeros((B, S), jnp.int32)
    if position_ids is None:
        position_ids = jnp.broadcast_to(
            jnp.arange(S, dtype=jnp.int32)[None, :], (B, S))
    # TODO(synk): head_mask accepted for API parity but not applied (mini-BERT).

    # ids packed into one int32 [B*S, 3] array (word, pos+VOCAB, type+VOCAB+MAX_POS);
    # the embedding lookup itself runs inside the fused kernel.
    ids3 = jnp.stack(
        [input_ids.reshape(-1).astype(jnp.int32),
         position_ids.reshape(-1).astype(jnp.int32) + VOCAB,
         token_type_ids.reshape(-1).astype(jnp.int32) + VOCAB + MAX_POS], axis=1)

    lbl = (labels.astype(jnp.float32) if labels is not None
           else jnp.zeros((B, NUM_CLASSES), jnp.float32))

    probs, loss = bert_fused_forward(ids3, attention_mask, lbl, params,
                                     batch=B, seq=S)
    if labels is None:
        return jnp.float32(0.0), probs
    return loss[0, 0], probs


# ------------------------------- main ----------------------------------------

if __name__ == "__main__":
    key = jax.random.PRNGKey(0)
    k_param, k_ids, k_lbl = jax.random.split(key, 3)

    params = init_params(k_param)

    B, S = 2, 8
    input_ids = jax.random.randint(k_ids, (B, S), 0, VOCAB, dtype=jnp.int32)
    attention_mask = jnp.ones((B, S), jnp.float32).at[1, 6:].set(0.0)  # pad tail of seq 1
    labels = (jax.random.uniform(k_lbl, (B, NUM_CLASSES)) > 0.5).astype(jnp.float32)

    loss, probs = bert_classifier_forward(
        params, input_ids, attention_mask=attention_mask, labels=labels)
    jax.block_until_ready((loss, probs))

    assert probs.shape == (B, NUM_CLASSES)
    assert bool(jnp.all(jnp.isfinite(probs))) and bool(jnp.isfinite(loss))
    print("KERNEL_OK")
</pallas_src>

<mosaic_0001>
module attributes {stable_mosaic.version = 11 : i64} {
  func.func @_bert_fused_kernel(%arg0: i32, %arg1: memref<16x3xi32, #tpu.memory_space<vmem>>, %arg2: memref<2x8xf32, #tpu.memory_space<vmem>>, %arg3: memref<2x3xf32, #tpu.memory_space<vmem>>, %arg4: memref<118x32xf32, #tpu.memory_space<vmem>>, %arg5: memref<24x32x8xf32, #tpu.memory_space<vmem>>, %arg6: memref<24x1x8xf32, #tpu.memory_space<vmem>>, %arg7: memref<8x8x32xf32, #tpu.memory_space<vmem>>, %arg8: memref<12x1x32xf32, #tpu.memory_space<vmem>>, %arg9: memref<2x32x64xf32, #tpu.memory_space<vmem>>, %arg10: memref<2x1x64xf32, #tpu.memory_space<vmem>>, %arg11: memref<2x64x32xf32, #tpu.memory_space<vmem>>, %arg12: memref<3x1x32xf32, #tpu.memory_space<vmem>>, %arg13: memref<32x32xf32, #tpu.memory_space<vmem>>, %arg14: memref<32x3xf32, #tpu.memory_space<vmem>>, %arg15: memref<1x3xf32, #tpu.memory_space<vmem>>, %arg16: memref<2x3xf32, #tpu.memory_space<vmem>>, %arg17: memref<1x1xf32, #tpu.memory_space<vmem>>, %arg18: memref<64x8xf32, #tpu.memory_space<vmem>>, %arg19: memref<16x32xf32, #tpu.memory_space<vmem>>) attributes {dimension_semantics = [#tpu.dimension_semantics<arbitrary>], iteration_bounds = array<i64: 1>, scalar_prefetch = 0 : i64, scratch_operands = 2 : i64, tpu.core_type = #tpu.core_type<tc>, window_params = [{pipeline_mode = #tpu.pipeline_mode<synchronous>, transform_indices = @transform_0, window_bounds = array<i64: 16, 3>}, {pipeline_mode = #tpu.pipeline_mode<synchronous>, transform_indices = @transform_1, window_bounds = array<i64: 2, 8>}, {pipeline_mode = #tpu.pipeline_mode<synchronous>, transform_indices = @transform_2, window_bounds = array<i64: 2, 3>}, {pipeline_mode = #tpu.pipeline_mode<synchronous>, transform_indices = @transform_3, window_bounds = array<i64: 118, 32>}, {pipeline_mode = #tpu.pipeline_mode<synchronous>, transform_indices = @transform_4, window_bounds = array<i64: 24, 32, 8>}, {pipeline_mode = #tpu.pipeline_mode<synchronous>, transform_indices = @transform_5, window_bounds = array<i64: 24, 1, 8>}, {pipeline_mode = #tpu.pipeline_mode<synchronous>, transform_indices = @transform_6, window_bounds = array<i64: 8, 8, 32>}, {pipeline_mode = #tpu.pipeline_mode<synchronous>, transform_indices = @transform_7, window_bounds = array<i64: 12, 1, 32>}, {pipeline_mode = #tpu.pipeline_mode<synchronous>, transform_indices = @transform_8, window_bounds = array<i64: 2, 32, 64>}, {pipeline_mode = #tpu.pipeline_mode<synchronous>, transform_indices = @transform_9, window_bounds = array<i64: 2, 1, 64>}, {pipeline_mode = #tpu.pipeline_mode<synchronous>, transform_indices = @transform_10, window_bounds = array<i64: 2, 64, 32>}, {pipeline_mode = #tpu.pipeline_mode<synchronous>, transform_indices = @transform_11, window_bounds = array<i64: 3, 1, 32>}, {pipeline_mode = #tpu.pipeline_mode<synchronous>, transform_indices = @transform_12, window_bounds = array<i64: 32, 32>}, {pipeline_mode = #tpu.pipeline_mode<synchronous>, transform_indices = @transform_13, window_bounds = array<i64: 32, 3>}, {pipeline_mode = #tpu.pipeline_mode<synchronous>, transform_indices = @transform_14, window_bounds = array<i64: 1, 3>}, {pipeline_mode = #tpu.pipeline_mode<synchronous>, transform_indices = @transform_15, window_bounds = array<i64: 2, 3>}, {pipeline_mode = #tpu.pipeline_mode<synchronous>, transform_indices = @transform_16, window_bounds = array<i64: 1, 1>}]} {
    %c0 = arith.constant 0 : index
    %c0_0 = arith.constant 0 : index
    %0 = vector.load %arg1[%c0, %c0_0] : memref<16x3xi32, #tpu.memory_space<vmem>>, vector<16x3xi32>
    %1 = tpu.iota {dimensions = array<i32: 1>} : vector<16x118xi32>
    %2 = vector.extract_strided_slice %0 {offsets = [0, 0], sizes = [16, 1], strides = [1, 1]} : vector<16x3xi32> to vector<16x1xi32>
    %3 = vector.broadcast %2 : vector<16x1xi32> to vector<16x118xi32>
    %4 = arith.cmpi eq, %1, %3 : vector<16x118xi32>
    %5 = vector.extract_strided_slice %0 {offsets = [0, 1], sizes = [16, 1], strides = [1, 1]} : vector<16x3xi32> to vector<16x1xi32>
    %6 = vector.broadcast %5 : vector<16x1xi32> to vector<16x118xi32>
    %7 = arith.cmpi eq, %1, %6 : vector<16x118xi32>
    %8 = arith.ori %4, %7 : vector<16x118xi1>
    %9 = vector.extract_strided_slice %0 {offsets = [0, 2], sizes = [16, 1], strides = [1, 1]} : vector<16x3xi32> to vector<16x1xi32>
    %10 = vector.broadcast %9 : vector<16x1xi32> to vector<16x118xi32>
    %11 = arith.cmpi eq, %1, %10 : vector<16x118xi32>
    %12 = arith.ori %8, %11 : vector<16x118xi1>
    %13 = arith.extui %12 : vector<16x118xi1> to vector<16x118xi32>
    %14 = arith.sitofp %13 : vector<16x118xi32> to vector<16x118xf32>
    %c0_1 = arith.constant 0 : index
    %c0_2 = arith.constant 0 : index
    %15 = vector.load %arg4[%c0_1, %c0_2] : memref<118x32xf32, #tpu.memory_space<vmem>>, vector<118x32xf32>
    %cst = arith.constant dense<0.000000e+00> : vector<16x32xf32>
    %16 = tpu.matmul %14, %15, %cst {dimension_numbers = #tpu.dot_dimension_numbers<[1], [0], [0], [1], [0, 0, 1, 1], [], []>} : vector<16x118xf32>, vector<118x32xf32>, vector<16x32xf32> -> vector<16x32xf32>
    %c0_3 = arith.constant 0 : index
    %c0_4 = arith.constant 0 : index
    %c0_5 = arith.constant 0 : index
    %17 = vector.load %arg12[%c0_3, %c0_4, %c0_5] : memref<3x1x32xf32, #tpu.memory_space<vmem>>, vector<1x1x32xf32>
    %18 = vector.shape_cast %17 : vector<1x1x32xf32> to vector<1x32xf32>
    %c1 = arith.constant 1 : index
    %c0_6 = arith.constant 0 : index
    %c0_7 = arith.constant 0 : index
    %19 = vector.load %arg12[%c1, %c0_6, %c0_7] : memref<3x1x32xf32, #tpu.memory_space<vmem>>, vector<1x1x32xf32>
    %20 = vector.shape_cast %19 : vector<1x1x32xf32> to vector<1x32xf32>
    %cst_8 = arith.constant dense<0.000000e+00> : vector<16xf32>
    %21 = vector.multi_reduction <add>, %16, %cst_8 [1] : vector<16x32xf32> to vector<16xf32>
    %22 = vector.shape_cast %21 : vector<16xf32> to vector<16x1xf32>
    %cst_9 = arith.constant 3.200000e+01 : f32
    %23 = vector.broadcast %cst_9 : f32 to vector<16x1xf32>
    %24 = arith.divf %22, %23 : vector<16x1xf32>
    %25 = vector.broadcast %24 : vector<16x1xf32> to vector<16x32xf32>
    %26 = arith.subf %16, %25 : vector<16x32xf32>
    %27 = vector.broadcast %24 : vector<16x1xf32> to vector<16x32xf32>
    %28 = arith.subf %16, %27 : vector<16x32xf32>
    %29 = arith.mulf %26, %28 : vector<16x32xf32>
    %cst_10 = arith.constant dense<0.000000e+00> : vector<16xf32>
    %30 = vector.multi_reduction <add>, %29, %cst_10 [1] : vector<16x32xf32> to vector<16xf32>
    %31 = vector.shape_cast %30 : vector<16xf32> to vector<16x1xf32>
    %cst_11 = arith.constant 3.200000e+01 : f32
    %32 = vector.broadcast %cst_11 : f32 to vector<16x1xf32>
    %33 = arith.divf %31, %32 : vector<16x1xf32>
    %cst_12 = arith.constant 9.99999996E-13 : f32
    %34 = vector.broadcast %cst_12 : f32 to vector<16x1xf32>
    %35 = arith.addf %33, %34 : vector<16x1xf32>
    %36 = math.rsqrt %35 : vector<16x1xf32>
    %37 = vector.broadcast %24 : vector<16x1xf32> to vector<16x32xf32>
    %38 = arith.subf %16, %37 : vector<16x32xf32>
    %39 = vector.broadcast %36 : vector<16x1xf32> to vector<16x32xf32>
    %40 = arith.mulf %38, %39 : vector<16x32xf32>
    %41 = vector.broadcast %18 : vector<1x32xf32> to vector<16x32xf32>
    %42 = arith.mulf %40, %41 : vector<16x32xf32>
    %43 = vector.broadcast %20 : vector<1x32xf32> to vector<16x32xf32>
    %44 = arith.addf %42, %43 : vector<16x32xf32>
    %c0_13 = arith.constant 0 : index
    %c0_14 = arith.constant 0 : index
    %45 = vector.load %arg2[%c0_13, %c0_14] : memref<2x8xf32, #tpu.memory_space<vmem>>, vector<2x8xf32>
    %cst_15 = arith.constant 1.000000e+00 : f32
    %46 = vector.broadcast %cst_15 : f32 to vector<2x8xf32>
    %47 = arith.subf %45, %46 : vector<2x8xf32>
    %cst_16 = arith.constant 1.000000e+09 : f32
    %48 = vector.broadcast %cst_16 : f32 to vector<2x8xf32>
    %49 = arith.mulf %47, %48 : vector<2x8xf32>
    %50 = vector.extract_strided_slice %49 {offsets = [0, 0], sizes = [1, 8], strides = [1, 1]} : vector<2x8xf32> to vector<1x8xf32>
    %51 = vector.extract_strided_slice %49 {offsets = [1, 0], sizes = [1, 8], strides = [1, 1]} : vector<2x8xf32> to vector<1x8xf32>
    %c0_17 = arith.constant 0 : index
    %c0_18 = arith.constant 0 : index
    %c0_19 = arith.constant 0 : index
    %52 = vector.load %arg5[%c0_17, %c0_18, %c0_19] : memref<24x32x8xf32, #tpu.memory_space<vmem>>, vector<1x32x8xf32>
    %53 = vector.shape_cast %52 : vector<1x32x8xf32> to vector<32x8xf32>
    %54 = arith.truncf %53 : vector<32x8xf32> to vector<32x8xbf16>
    %c1_20 = arith.constant 1 : index
    %c0_21 = arith.constant 0 : index
    %c0_22 = arith.constant 0 : index
    %55 = vector.load %arg5[%c1_20, %c0_21, %c0_22] : memref<24x32x8xf32, #tpu.memory_space<vmem>>, vector<1x32x8xf32>
    %56 = vector.shape_cast %55 : vector<1x32x8xf32> to vector<32x8xf32>
    %57 = arith.truncf %56 : vector<32x8xf32> to vector<32x8xbf16>
    %c2 = arith.constant 2 : index
    %c0_23 = arith.constant 0 : index
    %c0_24 = arith.constant 0 : index
    %58 = vector.load %arg5[%c2, %c0_23, %c0_24] : memref<24x32x8xf32, #tpu.memory_space<vmem>>, vector<1x32x8xf32>
    %59 = vector.shape_cast %58 : vector<1x32x8xf32> to vector<32x8xf32>
    %60 = arith.truncf %59 : vector<32x8xf32> to vector<32x8xbf16>
    %c3 = arith.constant 3 : index
    %c0_25 = arith.constant 0 : index
    %c0_26 = arith.constant 0 : index
    %61 = vector.load %arg5[%c3, %c0_25, %c0_26] : memref<24x32x8xf32, #tpu.memory_space<vmem>>, vector<1x32x8xf32>
    %62 = vector.shape_cast %61 : vector<1x32x8xf32> to vector<32x8xf32>
    %63 = arith.truncf %62 : vector<32x8xf32> to vector<32x8xbf16>
    %c4 = arith.constant 4 : index
    %c0_27 = arith.constant 0 : index
    %c0_28 = arith.constant 0 : index
    %64 = vector.load %arg5[%c4, %c0_27, %c0_28] : memref<24x32x8xf32, #tpu.memory_space<vmem>>, vector<1x32x8xf32>
    %65 = vector.shape_cast %64 : vector<1x32x8xf32> to vector<32x8xf32>
    %66 = arith.truncf %65 : vector<32x8xf32> to vector<32x8xbf16>
    %c5 = arith.constant 5 : index
    %c0_29 = arith.constant 0 : index
    %c0_30 = arith.constant 0 : index
    %67 = vector.load %arg5[%c5, %c0_29, %c0_30] : memref<24x32x8xf32, #tpu.memory_space<vmem>>, vector<1x32x8xf32>
    %68 = vector.shape_cast %67 : vector<1x32x8xf32> to vector<32x8xf32>
    %69 = arith.truncf %68 : vector<32x8xf32> to vector<32x8xbf16>
    %c6 = arith.constant 6 : index
    %c0_31 = arith.constant 0 : index
    %c0_32 = arith.constant 0 : index
    %70 = vector.load %arg5[%c6, %c0_31, %c0_32] : memref<24x32x8xf32, #tpu.memory_space<vmem>>, vector<1x32x8xf32>
    %71 = vector.shape_cast %70 : vector<1x32x8xf32> to vector<32x8xf32>
    %72 = arith.truncf %71 : vector<32x8xf32> to vector<32x8xbf16>
    %c7 = arith.constant 7 : index
    %c0_33 = arith.constant 0 : index
    %c0_34 = arith.constant 0 : index
    %73 = vector.load %arg5[%c7, %c0_33, %c0_34] : memref<24x32x8xf32, #tpu.memory_space<vmem>>, vector<1x32x8xf32>
    %74 = vector.shape_cast %73 : vector<1x32x8xf32> to vector<32x8xf32>
    %75 = arith.truncf %74 : vector<32x8xf32> to vector<32x8xbf16>
    %c8 = arith.constant 8 : index
    %c0_35 = arith.constant 0 : index
    %c0_36 = arith.constant 0 : index
    %76 = vector.load %arg5[%c8, %c0_35, %c0_36] : memref<24x32x8xf32, #tpu.memory_space<vmem>>, vector<1x32x8xf32>
    %77 = vector.shape_cast %76 : vector<1x32x8xf32> to vector<32x8xf32>
    %78 = arith.truncf %77 : vector<32x8xf32> to vector<32x8xbf16>
    %c9 = arith.constant 9 : index
    %c0_37 = arith.constant 0 : index
    %c0_38 = arith.constant 0 : index
    %79 = vector.load %arg5[%c9, %c0_37, %c0_38] : memref<24x32x8xf32, #tpu.memory_space<vmem>>, vector<1x32x8xf32>
    %80 = vector.shape_cast %79 : vector<1x32x8xf32> to vector<32x8xf32>
    %81 = arith.truncf %80 : vector<32x8xf32> to vector<32x8xbf16>
    %c10 = arith.constant 10 : index
    %c0_39 = arith.constant 0 : index
    %c0_40 = arith.constant 0 : index
    %82 = vector.load %arg5[%c10, %c0_39, %c0_40] : memref<24x32x8xf32, #tpu.memory_space<vmem>>, vector<1x32x8xf32>
    %83 = vector.shape_cast %82 : vector<1x32x8xf32> to vector<32x8xf32>
    %84 = arith.truncf %83 : vector<32x8xf32> to vector<32x8xbf16>
    %c11 = arith.constant 11 : index
    %c0_41 = arith.constant 0 : index
    %c0_42 = arith.constant 0 : index
    %85 = vector.load %arg5[%c11, %c0_41, %c0_42] : memref<24x32x8xf32, #tpu.memory_space<vmem>>, vector<1x32x8xf32>
    %86 = vector.shape_cast %85 : vector<1x32x8xf32> to vector<32x8xf32>
    %87 = arith.truncf %86 : vector<32x8xf32> to vector<32x8xbf16>
    %c0_43 = arith.constant 0 : index
    %c0_44 = arith.constant 0 : index
    %c0_45 = arith.constant 0 : index
    %88 = vector.load %arg6[%c0_43, %c0_44, %c0_45] : memref<24x1x8xf32, #tpu.memory_space<vmem>>, vector<1x1x8xf32>
    %89 = vector.shape_cast %88 : vector<1x1x8xf32> to vector<1x8xf32>
    %c1_46 = arith.constant 1 : index
    %c0_47 = arith.constant 0 : index
    %c0_48 = arith.constant 0 : index
    %90 = vector.load %arg6[%c1_46, %c0_47, %c0_48] : memref<24x1x8xf32, #tpu.memory_space<vmem>>, vector<1x1x8xf32>
    %91 = vector.shape_cast %90 : vector<1x1x8xf32> to vector<1x8xf32>
    %c2_49 = arith.constant 2 : index
    %c0_50 = arith.constant 0 : index
    %c0_51 = arith.constant 0 : index
    %92 = vector.load %arg6[%c2_49, %c0_50, %c0_51] : memref<24x1x8xf32, #tpu.memory_space<vmem>>, vector<1x1x8xf32>
    %93 = vector.shape_cast %92 : vector<1x1x8xf32> to vector<1x8xf32>
    %c3_52 = arith.constant 3 : index
    %c0_53 = arith.constant 0 : index
    %c0_54 = arith.constant 0 : index
    %94 = vector.load %arg6[%c3_52, %c0_53, %c0_54] : memref<24x1x8xf32, #tpu.memory_space<vmem>>, vector<1x1x8xf32>
    %95 = vector.shape_cast %94 : vector<1x1x8xf32> to vector<1x8xf32>
    %c4_55 = arith.constant 4 : index
    %c0_56 = arith.constant 0 : index
    %c0_57 = arith.constant 0 : index
    %96 = vector.load %arg6[%c4_55, %c0_56, %c0_57] : memref<24x1x8xf32, #tpu.memory_space<vmem>>, vector<1x1x8xf32>
    %97 = vector.shape_cast %96 : vector<1x1x8xf32> to vector<1x8xf32>
    %c5_58 = arith.constant 5 : index
    %c0_59 = arith.constant 0 : index
    %c0_60 = arith.constant 0 : index
    %98 = vector.load %arg6[%c5_58, %c0_59, %c0_60] : memref<24x1x8xf32, #tpu.memory_space<vmem>>, vector<1x1x8xf32>
    %99 = vector.shape_cast %98 : vector<1x1x8xf32> to vector<1x8xf32>
    %c6_61 = arith.constant 6 : index
    %c0_62 = arith.constant 0 : index
    %c0_63 = arith.constant 0 : index
    %100 = vector.load %arg6[%c6_61, %c0_62, %c0_63] : memref<24x1x8xf32, #tpu.memory_space<vmem>>, vector<1x1x8xf32>
    %101 = vector.shape_cast %100 : vector<1x1x8xf32> to vector<1x8xf32>
    %c7_64 = arith.constant 7 : index
    %c0_65 = arith.constant 0 : index
    %c0_66 = arith.constant 0 : index
    %102 = vector.load %arg6[%c7_64, %c0_65, %c0_66] : memref<24x1x8xf32, #tpu.memory_space<vmem>>, vector<1x1x8xf32>
    %103 = vector.shape_cast %102 : vector<1x1x8xf32> to vector<1x8xf32>
    %c8_67 = arith.constant 8 : index
    %c0_68 = arith.constant 0 : index
    %c0_69 = arith.constant 0 : index
    %104 = vector.load %arg6[%c8_67, %c0_68, %c0_69] : memref<24x1x8xf32, #tpu.memory_space<vmem>>, vector<1x1x8xf32>
    %105 = vector.shape_cast %104 : vector<1x1x8xf32> to vector<1x8xf32>
    %c9_70 = arith.constant 9 : index
    %c0_71 = arith.constant 0 : index
    %c0_72 = arith.constant 0 : index
    %106 = vector.load %arg6[%c9_70, %c0_71, %c0_72] : memref<24x1x8xf32, #tpu.memory_space<vmem>>, vector<1x1x8xf32>
    %107 = vector.shape_cast %106 : vector<1x1x8xf32> to vector<1x8xf32>
    %c10_73 = arith.constant 10 : index
    %c0_74 = arith.constant 0 : index
    %c0_75 = arith.constant 0 : index
    %108 = vector.load %arg6[%c10_73, %c0_74, %c0_75] : memref<24x1x8xf32, #tpu.memory_space<vmem>>, vector<1x1x8xf32>
    %109 = vector.shape_cast %108 : vector<1x1x8xf32> to vector<1x8xf32>
    %c11_76 = arith.constant 11 : index
    %c0_77 = arith.constant 0 : index
    %c0_78 = arith.constant 0 : index
    %110 = vector.load %arg6[%c11_76, %c0_77, %c0_78] : memref<24x1x8xf32, #tpu.memory_space<vmem>>, vector<1x1x8xf32>
    %111 = vector.shape_cast %110 : vector<1x1x8xf32> to vector<1x8xf32>
    %c0_79 = arith.constant 0 : index
    %c0_80 = arith.constant 0 : index
    %c0_81 = arith.constant 0 : index
    %112 = vector.load %arg7[%c0_79, %c0_80, %c0_81] : memref<8x8x32xf32, #tpu.memory_space<vmem>>, vector<1x8x32xf32>
    %113 = vector.shape_cast %112 : vector<1x8x32xf32> to vector<8x32xf32>
    %114 = arith.truncf %113 : vector<8x32xf32> to vector<8x32xbf16>
    %c1_82 = arith.constant 1 : index
    %c0_83 = arith.constant 0 : index
    %c0_84 = arith.constant 0 : index
    %115 = vector.load %arg7[%c1_82, %c0_83, %c0_84] : memref<8x8x32xf32, #tpu.memory_space<vmem>>, vector<1x8x32xf32>
    %116 = vector.shape_cast %115 : vector<1x8x32xf32> to vector<8x32xf32>
    %117 = arith.truncf %116 : vector<8x32xf32> to vector<8x32xbf16>
    %c2_85 = arith.constant 2 : index
    %c0_86 = arith.constant 0 : index
    %c0_87 = arith.constant 0 : index
    %118 = vector.load %arg7[%c2_85, %c0_86, %c0_87] : memref<8x8x32xf32, #tpu.memory_space<vmem>>, vector<1x8x32xf32>
    %119 = vector.shape_cast %118 : vector<1x8x32xf32> to vector<8x32xf32>
    %120 = arith.truncf %119 : vector<8x32xf32> to vector<8x32xbf16>
    %c3_88 = arith.constant 3 : index
    %c0_89 = arith.constant 0 : index
    %c0_90 = arith.constant 0 : index
    %121 = vector.load %arg7[%c3_88, %c0_89, %c0_90] : memref<8x8x32xf32, #tpu.memory_space<vmem>>, vector<1x8x32xf32>
    %122 = vector.shape_cast %121 : vector<1x8x32xf32> to vector<8x32xf32>
    %123 = arith.truncf %122 : vector<8x32xf32> to vector<8x32xbf16>
    %124 = vector.extract_strided_slice %44 {offsets = [0, 0], sizes = [8, 32], strides = [1, 1]} : vector<16x32xf32> to vector<8x32xf32>
    %125 = arith.truncf %124 : vector<8x32xf32> to vector<8x32xbf16>
    %cst_91 = arith.constant dense<0.000000e+00> : vector<8x8xf32>
    %126 = tpu.matmul %125, %54, %cst_91 {dimension_numbers = #tpu.dot_dimension_numbers<[1], [0], [0], [1], [0, 0, 1, 1], [], []>} : vector<8x32xbf16>, vector<32x8xbf16>, vector<8x8xf32> -> vector<8x8xf32>
    %127 = vector.broadcast %89 : vector<1x8xf32> to vector<8x8xf32>
    %128 = arith.addf %126, %127 : vector<8x8xf32>
    %cst_92 = arith.constant dense<0.000000e+00> : vector<8x8xf32>
    %129 = tpu.matmul %125, %66, %cst_92 {dimension_numbers = #tpu.dot_dimension_numbers<[1], [0], [0], [1], [0, 0, 1, 1], [], []>} : vector<8x32xbf16>, vector<32x8xbf16>, vector<8x8xf32> -> vector<8x8xf32>
    %130 = vector.broadcast %97 : vector<1x8xf32> to vector<8x8xf32>
    %131 = arith.addf %129, %130 : vector<8x8xf32>
    %cst_93 = arith.constant dense<0.000000e+00> : vector<8x8xf32>
    %132 = tpu.matmul %125, %78, %cst_93 {dimension_numbers = #tpu.dot_dimension_numbers<[1], [0], [0], [1], [0, 0, 1, 1], [], []>} : vector<8x32xbf16>, vector<32x8xbf16>, vector<8x8xf32> -> vector<8x8xf32>
    %133 = vector.broadcast %105 : vector<1x8xf32> to vector<8x8xf32>
    %134 = arith.addf %132, %133 : vector<8x8xf32>
    %135 = arith.truncf %134 : vector<8x8xf32> to vector<8x8xbf16>
    %136 = arith.truncf %128 : vector<8x8xf32> to vector<8x8xbf16>
    %137 = arith.truncf %131 : vector<8x8xf32> to vector<8x8xbf16>
    %cst_94 = arith.constant dense<0.000000e+00> : vector<8x8xf32>
    %138 = tpu.matmul %136, %137, %cst_94 {dimension_numbers = #tpu.dot_dimension_numbers<[1], [1], [0], [0], [0, 0, 1, 0], [], []>} : vector<8x8xbf16>, vector<8x8xbf16>, vector<8x8xf32> -> vector<8x8xf32>
    %cst_95 = arith.constant 0.353553385 : f32
    %139 = vector.broadcast %cst_95 : f32 to vector<8x8xf32>
    %140 = arith.mulf %138, %139 : vector<8x8xf32>
    %141 = vector.broadcast %50 : vector<1x8xf32> to vector<8x8xf32>
    %142 = arith.addf %140, %141 : vector<8x8xf32>
    %c0_96 = arith.constant 0 : index
    %c0_97 = arith.constant 0 : index
    %143 = vector.load %arg18[%c0_96, %c0_97] : memref<64x8xf32, #tpu.memory_space<vmem>>, vector<8x8xf32>
    tpu.vector_store %arg18[%c0_96, %c0_97], %142 {strides = array<i32>} : memref<64x8xf32, #tpu.memory_space<vmem>>, vector<8x8xf32>,
    %cst_98 = arith.constant dense<0.000000e+00> : vector<8x8xf32>
    %144 = tpu.matmul %125, %57, %cst_98 {dimension_numbers = #tpu.dot_dimension_numbers<[1], [0], [0], [1], [0, 0, 1, 1], [], []>} : vector<8x32xbf16>, vector<32x8xbf16>, vector<8x8xf32> -> vector<8x8xf32>
    %145 = vector.broadcast %91 : vector<1x8xf32> to vector<8x8xf32>
    %146 = arith.addf %144, %145 : vector<8x8xf32>
    %cst_99 = arith.constant dense<0.000000e+00> : vector<8x8xf32>
    %147 = tpu.matmul %125, %69, %cst_99 {dimension_numbers = #tpu.dot_dimension_numbers<[1], [0], [0], [1], [0, 0, 1, 1], [], []>} : vector<8x32xbf16>, vector<32x8xbf16>, vector<8x8xf32> -> vector<8x8xf32>
    %148 = vector.broadcast %99 : vector<1x8xf32> to vector<8x8xf32>
    %149 = arith.addf %147, %148 : vector<8x8xf32>
    %cst_100 = arith.constant dense<0.000000e+00> : vector<8x8xf32>
    %150 = tpu.matmul %125, %81, %cst_100 {dimension_numbers = #tpu.dot_dimension_numbers<[1], [0], [0], [1], [0, 0, 1, 1], [], []>} : vector<8x32xbf16>, vector<32x8xbf16>, vector<8x8xf32> -> vector<8x8xf32>
    %151 = vector.broadcast %107 : vector<1x8xf32> to vector<8x8xf32>
    %152 = arith.addf %150, %151 : vector<8x8xf32>
    %153 = arith.truncf %152 : vector<8x8xf32> to vector<8x8xbf16>
    %154 = arith.truncf %146 : vector<8x8xf32> to vector<8x8xbf16>
    %155 = arith.truncf %149 : vector<8x8xf32> to vector<8x8xbf16>
    %cst_101 = arith.constant dense<0.000000e+00> : vector<8x8xf32>
    %156 = tpu.matmul %154, %155, %cst_101 {dimension_numbers = #tpu.dot_dimension_numbers<[1], [1], [0], [0], [0, 0, 1, 0], [], []>} : vector<8x8xbf16>, vector<8x8xbf16>, vector<8x8xf32> -> vector<8x8xf32>
    %cst_102 = arith.constant 0.353553385 : f32
    %157 = vector.broadcast %cst_102 : f32 to vector<8x8xf32>
    %158 = arith.mulf %156, %157 : vector<8x8xf32>
    %159 = vector.broadcast %50 : vector<1x8xf32> to vector<8x8xf32>
    %160 = arith.addf %158, %159 : vector<8x8xf32>
    %c8_103 = arith.constant 8 : index
    %c0_104 = arith.constant 0 : index
    %161 = vector.load %arg18[%c8_103, %c0_104] : memref<64x8xf32, #tpu.memory_space<vmem>>, vector<8x8xf32>
    tpu.vector_store %arg18[%c8_103, %c0_104], %160 {strides = array<i32>} : memref<64x8xf32, #tpu.memory_space<vmem>>, vector<8x8xf32>,
    %cst_105 = arith.constant dense<0.000000e+00> : vector<8x8xf32>
    %162 = tpu.matmul %125, %60, %cst_105 {dimension_numbers = #tpu.dot_dimension_numbers<[1], [0], [0], [1], [0, 0, 1, 1], [], []>} : vector<8x32xbf16>, vector<32x8xbf16>, vector<8x8xf32> -> vector<8x8xf32>
    %163 = vector.broadcast %93 : vector<1x8xf32> to vector<8x8xf32>
    %164 = arith.addf %162, %163 : vector<8x8xf32>
    %cst_106 = arith.constant dense<0.000000e+00> : vector<8x8xf32>
    %165 = tpu.matmul %125, %72, %cst_106 {dimension_numbers = #tpu.dot_dimension_numbers<[1], [0], [0], [1], [0, 0, 1, 1], [], []>} : vector<8x32xbf16>, vector<32x8xbf16>, vector<8x8xf32> -> vector<8x8xf32>
    %166 = vector.broadcast %101 : vector<1x8xf32> to vector<8x8xf32>
    %167 = arith.addf %165, %166 : vector<8x8xf32>
    %cst_107 = arith.constant dense<0.000000e+00> : vector<8x8xf32>
    %168 = tpu.matmul %125, %84, %cst_107 {dimension_numbers = #tpu.dot_dimension_numbers<[1], [0], [0], [1], [0, 0, 1, 1], [], []>} : vector<8x32xbf16>, vector<32x8xbf16>, vector<8x8xf32> -> vector<8x8xf32>
    %169 = vector.broadcast %109 : vector<1x8xf32> to vector<8x8xf32>
    %170 = arith.addf %168, %169 : vector<8x8xf32>
    %171 = arith.truncf %170 : vector<8x8xf32> to vector<8x8xbf16>
    %172 = arith.truncf %164 : vector<8x8xf32> to vector<8x8xbf16>
    %173 = arith.truncf %167 : vector<8x8xf32> to vector<8x8xbf16>
    %cst_108 = arith.constant dense<0.000000e+00> : vector<8x8xf32>
    %174 = tpu.matmul %172, %173, %cst_108 {dimension_numbers = #tpu.dot_dimension_numbers<[1], [1], [0], [0], [0, 0, 1, 0], [], []>} : vector<8x8xbf16>, vector<8x8xbf16>, vector<8x8xf32> -> vector<8x8xf32>
    %cst_109 = arith.constant 0.353553385 : f32
    %175 = vector.broadcast %cst_109 : f32 to vector<8x8xf32>
    %176 = arith.mulf %174, %175 : vector<8x8xf32>
    %177 = vector.broadcast %50 : vector<1x8xf32> to vector<8x8xf32>
    %178 = arith.addf %176, %177 : vector<8x8xf32>
    %c16 = arith.constant 16 : index
    %c0_110 = arith.constant 0 : index
    %179 = vector.load %arg18[%c16, %c0_110] : memref<64x8xf32, #tpu.memory_space<vmem>>, vector<8x8xf32>
    tpu.vector_store %arg18[%c16, %c0_110], %178 {strides = array<i32>} : memref<64x8xf32, #tpu.memory_space<vmem>>, vector<8x8xf32>,
    %cst_111 = arith.constant dense<0.000000e+00> : vector<8x8xf32>
    %180 = tpu.matmul %125, %63, %cst_111 {dimension_numbers = #tpu.dot_dimension_numbers<[1], [0], [0], [1], [0, 0, 1, 1], [], []>} : vector<8x32xbf16>, vector<32x8xbf16>, vector<8x8xf32> -> vector<8x8xf32>
    %181 = vector.broadcast %95 : vector<1x8xf32> to vector<8x8xf32>
    %182 = arith.addf %180, %181 : vector<8x8xf32>
    %cst_112 = arith.constant dense<0.000000e+00> : vector<8x8xf32>
    %183 = tpu.matmul %125, %75, %cst_112 {dimension_numbers = #tpu.dot_dimension_numbers<[1], [0], [0], [1], [0, 0, 1, 1], [], []>} : vector<8x32xbf16>, vector<32x8xbf16>, vector<8x8xf32> -> vector<8x8xf32>
    %184 = vector.broadcast %103 : vector<1x8xf32> to vector<8x8xf32>
    %185 = arith.addf %183, %184 : vector<8x8xf32>
    %cst_113 = arith.constant dense<0.000000e+00> : vector<8x8xf32>
    %186 = tpu.matmul %125, %87, %cst_113 {dimension_numbers = #tpu.dot_dimension_numbers<[1], [0], [0], [1], [0, 0, 1, 1], [], []>} : vector<8x32xbf16>, vector<32x8xbf16>, vector<8x8xf32> -> vector<8x8xf32>
    %187 = vector.broadcast %111 : vector<1x8xf32> to vector<8x8xf32>
    %188 = arith.addf %186, %187 : vector<8x8xf32>
    %189 = arith.truncf %188 : vector<8x8xf32> to vector<8x8xbf16>
    %190 = arith.truncf %182 : vector<8x8xf32> to vector<8x8xbf16>
    %191 = arith.truncf %185 : vector<8x8xf32> to vector<8x8xbf16>
    %cst_114 = arith.constant dense<0.000000e+00> : vector<8x8xf32>
    %192 = tpu.matmul %190, %191, %cst_114 {dimension_numbers = #tpu.dot_dimension_numbers<[1], [1], [0], [0], [0, 0, 1, 0], [], []>} : vector<8x8xbf16>, vector<8x8xbf16>, vector<8x8xf32> -> vector<8x8xf32>
    %cst_115 = arith.constant 0.353553385 : f32
    %193 = vector.broadcast %cst_115 : f32 to vector<8x8xf32>
    %194 = arith.mulf %192, %193 : vector<8x8xf32>
    %195 = vector.broadcast %50 : vector<1x8xf32> to vector<8x8xf32>
    %196 = arith.addf %194, %195 : vector<8x8xf32>
    %c24 = arith.constant 24 : index
    %c0_116 = arith.constant 0 : index
    %197 = vector.load %arg18[%c24, %c0_116] : memref<64x8xf32, #tpu.memory_space<vmem>>, vector<8x8xf32>
    tpu.vector_store %arg18[%c24, %c0_116], %196 {strides = array<i32>} : memref<64x8xf32, #tpu.memory_space<vmem>>, vector<8x8xf32>,
    %198 = vector.extract_strided_slice %44 {offsets = [8, 0], sizes = [8, 32], strides = [1, 1]} : vector<16x32xf32> to vector<8x32xf32>
    %199 = arith.truncf %198 : vector<8x32xf32> to vector<8x32xbf16>
    %cst_117 = arith.constant dense<0.000000e+00> : vector<8x8xf32>
    %200 = tpu.matmul %199, %54, %cst_117 {dimension_numbers = #tpu.dot_dimension_numbers<[1], [0], [0], [1], [0, 0, 1, 1], [], []>} : vector<8x32xbf16>, vector<32x8xbf16>, vector<8x8xf32> -> vector<8x8xf32>
    %201 = vector.broadcast %89 : vector<1x8xf32> to vector<8x8xf32>
    %202 = arith.addf %200, %201 : vector<8x8xf32>
    %cst_118 = arith.constant dense<0.000000e+00> : vector<8x8xf32>
    %203 = tpu.matmul %199, %66, %cst_118 {dimension_numbers = #tpu.dot_dimension_numbers<[1], [0], [0], [1], [0, 0, 1, 1], [], []>} : vector<8x32xbf16>, vector<32x8xbf16>, vector<8x8xf32> -> vector<8x8xf32>
    %204 = vector.broadcast %97 : vector<1x8xf32> to vector<8x8xf32>
    %205 = arith.addf %203, %204 : vector<8x8xf32>
    %cst_119 = arith.constant dense<0.000000e+00> : vector<8x8xf32>
    %206 = tpu.matmul %199, %78, %cst_119 {dimension_numbers = #tpu.dot_dimension_numbers<[1], [0], [0], [1], [0, 0, 1, 1], [], []>} : vector<8x32xbf16>, vector<32x8xbf16>, vector<8x8xf32> -> vector<8x8xf32>
    %207 = vector.broadcast %105 : vector<1x8xf32> to vector<8x8xf32>
    %208 = arith.addf %206, %207 : vector<8x8xf32>
    %209 = arith.truncf %208 : vector<8x8xf32> to vector<8x8xbf16>
    %210 = arith.truncf %202 : vector<8x8xf32> to vector<8x8xbf16>
    %211 = arith.truncf %205 : vector<8x8xf32> to vector<8x8xbf16>
    %cst_120 = arith.constant dense<0.000000e+00> : vector<8x8xf32>
    %212 = tpu.matmul %210, %211, %cst_120 {dimension_numbers = #tpu.dot_dimension_numbers<[1], [1], [0], [0], [0, 0, 1, 0], [], []>} : vector<8x8xbf16>, vector<8x8xbf16>, vector<8x8xf32> -> vector<8x8xf32>
    %cst_121 = arith.constant 0.353553385 : f32
    %213 = vector.broadcast %cst_121 : f32 to vector<8x8xf32>
    %214 = arith.mulf %212, %213 : vector<8x8xf32>
    %215 = vector.broadcast %51 : vector<1x8xf32> to vector<8x8xf32>
    %216 = arith.addf %214, %215 : vector<8x8xf32>
    %c32 = arith.constant 32 : index
    %c0_122 = arith.constant 0 : index
    %217 = vector.load %arg18[%c32, %c0_122] : memref<64x8xf32, #tpu.memory_space<vmem>>, vector<8x8xf32>
    tpu.vector_store %arg18[%c32, %c0_122], %216 {strides = array<i32>} : memref<64x8xf32, #tpu.memory_space<vmem>>, vector<8x8xf32>,
    %cst_123 = arith.constant dense<0.000000e+00> : vector<8x8xf32>
    %218 = tpu.matmul %199, %57, %cst_123 {dimension_numbers = #tpu.dot_dimension_numbers<[1], [0], [0], [1], [0, 0, 1, 1], [], []>} : vector<8x32xbf16>, vector<32x8xbf16>, vector<8x8xf32> -> vector<8x8xf32>
    %219 = vector.broadcast %91 : vector<1x8xf32> to vector<8x8xf32>
    %220 = arith.addf %218, %219 : vector<8x8xf32>
    %cst_124 = arith.constant dense<0.000000e+00> : vector<8x8xf32>
    %221 = tpu.matmul %199, %69, %cst_124 {dimension_numbers = #tpu.dot_dimension_numbers<[1], [0], [0], [1], [0, 0, 1, 1], [], []>} : vector<8x32xbf16>, vector<32x8xbf16>, vector<8x8xf32> -> vector<8x8xf32>
    %222 = vector.broadcast %99 : vector<1x8xf32> to vector<8x8xf32>
    %223 = arith.addf %221, %222 : vector<8x8xf32>
    %cst_125 = arith.constant dense<0.000000e+00> : vector<8x8xf32>
    %224 = tpu.matmul %199, %81, %cst_125 {dimension_numbers = #tpu.dot_dimension_numbers<[1], [0], [0], [1], [0, 0, 1, 1], [], []>} : vector<8x32xbf16>, vector<32x8xbf16>, vector<8x8xf32> -> vector<8x8xf32>
    %225 = vector.broadcast %107 : vector<1x8xf32> to vector<8x8xf32>
    %226 = arith.addf %224, %225 : vector<8x8xf32>
    %227 = arith.truncf %226 : vector<8x8xf32> to vector<8x8xbf16>
    %228 = arith.truncf %220 : vector<8x8xf32> to vector<8x8xbf16>
    %229 = arith.truncf %223 : vector<8x8xf32> to vector<8x8xbf16>
    %cst_126 = arith.constant dense<0.000000e+00> : vector<8x8xf32>
    %230 = tpu.matmul %228, %229, %cst_126 {dimension_numbers = #tpu.dot_dimension_numbers<[1], [1], [0], [0], [0, 0, 1, 0], [], []>} : vector<8x8xbf16>, vector<8x8xbf16>, vector<8x8xf32> -> vector<8x8xf32>
    %cst_127 = arith.constant 0.353553385 : f32
    %231 = vector.broadcast %cst_127 : f32 to vector<8x8xf32>
    %232 = arith.mulf %230, %231 : vector<8x8xf32>
    %233 = vector.broadcast %51 : vector<1x8xf32> to vector<8x8xf32>
    %234 = arith.addf %232, %233 : vector<8x8xf32>
    %c40 = arith.constant 40 : index
    %c0_128 = arith.constant 0 : index
    %235 = vector.load %arg18[%c40, %c0_128] : memref<64x8xf32, #tpu.memory_space<vmem>>, vector<8x8xf32>
    tpu.vector_store %arg18[%c40, %c0_128], %234 {strides = array<i32>} : memref<64x8xf32, #tpu.memory_space<vmem>>, vector<8x8xf32>,
    %cst_129 = arith.constant dense<0.000000e+00> : vector<8x8xf32>
    %236 = tpu.matmul %199, %60, %cst_129 {dimension_numbers = #tpu.dot_dimension_numbers<[1], [0], [0], [1], [0, 0, 1, 1], [], []>} : vector<8x32xbf16>, vector<32x8xbf16>, vector<8x8xf32> -> vector<8x8xf32>
    %237 = vector.broadcast %93 : vector<1x8xf32> to vector<8x8xf32>
    %238 = arith.addf %236, %237 : vector<8x8xf32>
    %cst_130 = arith.constant dense<0.000000e+00> : vector<8x8xf32>
    %239 = tpu.matmul %199, %72, %cst_130 {dimension_numbers = #tpu.dot_dimension_numbers<[1], [0], [0], [1], [0, 0, 1, 1], [], []>} : vector<8x32xbf16>, vector<32x8xbf16>, vector<8x8xf32> -> vector<8x8xf32>
    %240 = vector.broadcast %101 : vector<1x8xf32> to vector<8x8xf32>
    %241 = arith.addf %239, %240 : vector<8x8xf32>
    %cst_131 = arith.constant dense<0.000000e+00> : vector<8x8xf32>
    %242 = tpu.matmul %199, %84, %cst_131 {dimension_numbers = #tpu.dot_dimension_numbers<[1], [0], [0], [1], [0, 0, 1, 1], [], []>} : vector<8x32xbf16>, vector<32x8xbf16>, vector<8x8xf32> -> vector<8x8xf32>
    %243 = vector.broadcast %109 : vector<1x8xf32> to vector<8x8xf32>
    %244 = arith.addf %242, %243 : vector<8x8xf32>
    %245 = arith.truncf %244 : vector<8x8xf32> to vector<8x8xbf16>
    %246 = arith.truncf %238 : vector<8x8xf32> to vector<8x8xbf16>
    %247 = arith.truncf %241 : vector<8x8xf32> to vector<8x8xbf16>
    %cst_132 = arith.constant dense<0.000000e+00> : vector<8x8xf32>
    %248 = tpu.matmul %246, %247, %cst_132 {dimension_numbers = #tpu.dot_dimension_numbers<[1], [1], [0], [0], [0, 0, 1, 0], [], []>} : vector<8x8xbf16>, vector<8x8xbf16>, vector<8x8xf32> -> vector<8x8xf32>
    %cst_133 = arith.constant 0.353553385 : f32
    %249 = vector.broadcast %cst_133 : f32 to vector<8x8xf32>
    %250 = arith.mulf %248, %249 : vector<8x8xf32>
    %251 = vector.broadcast %51 : vector<1x8xf32> to vector<8x8xf32>
    %252 = arith.addf %250, %251 : vector<8x8xf32>
    %c48 = arith.constant 48 : index
    %c0_134 = arith.constant 0 : index
    %253 = vector.load %arg18[%c48, %c0_134] : memref<64x8xf32, #tpu.memory_space<vmem>>, vector<8x8xf32>
    tpu.vector_store %arg18[%c48, %c0_134], %252 {strides = array<i32>} : memref<64x8xf32, #tpu.memory_space<vmem>>, vector<8x8xf32>,
    %cst_135 = arith.constant dense<0.000000e+00> : vector<8x8xf32>
    %254 = tpu.matmul %199, %63, %cst_135 {dimension_numbers = #tpu.dot_dimension_numbers<[1], [0], [0], [1], [0, 0, 1, 1], [], []>} : vector<8x32xbf16>, vector<32x8xbf16>, vector<8x8xf32> -> vector<8x8xf32>
    %255 = vector.broadcast %95 : vector<1x8xf32> to vector<8x8xf32>
    %256 = arith.addf %254, %255 : vector<8x8xf32>
    %cst_136 = arith.constant dense<0.000000e+00> : vector<8x8xf32>
    %257 = tpu.matmul %199, %75, %cst_136 {dimension_numbers = #tpu.dot_dimension_numbers<[1], [0], [0], [1], [0, 0, 1, 1], [], []>} : vector<8x32xbf16>, vector<32x8xbf16>, vector<8x8xf32> -> vector<8x8xf32>
    %258 = vector.broadcast %103 : vector<1x8xf32> to vector<8x8xf32>
    %259 = arith.addf %257, %258 : vector<8x8xf32>
    %cst_137 = arith.constant dense<0.000000e+00> : vector<8x8xf32>
    %260 = tpu.matmul %199, %87, %cst_137 {dimension_numbers = #tpu.dot_dimension_numbers<[1], [0], [0], [1], [0, 0, 1, 1], [], []>} : vector<8x32xbf16>, vector<32x8xbf16>, vector<8x8xf32> -> vector<8x8xf32>
    %261 = vector.broadcast %111 : vector<1x8xf32> to vector<8x8xf32>
    %262 = arith.addf %260, %261 : vector<8x8xf32>
    %263 = arith.truncf %262 : vector<8x8xf32> to vector<8x8xbf16>
    %264 = arith.truncf %256 : vector<8x8xf32> to vector<8x8xbf16>
    %265 = arith.truncf %259 : vector<8x8xf32> to vector<8x8xbf16>
    %cst_138 = arith.constant dense<0.000000e+00> : vector<8x8xf32>
    %266 = tpu.matmul %264, %265, %cst_138 {dimension_numbers = #tpu.dot_dimension_numbers<[1], [1], [0], [0], [0, 0, 1, 0], [], []>} : vector<8x8xbf16>, vector<8x8xbf16>, vector<8x8xf32> -> vector<8x8xf32>
    %cst_139 = arith.constant 0.353553385 : f32
    %267 = vector.broadcast %cst_139 : f32 to vector<8x8xf32>
    %268 = arith.mulf %266, %267 : vector<8x8xf32>
    %269 = vector.broadcast %51 : vector<1x8xf32> to vector<8x8xf32>
    %270 = arith.addf %268, %269 : vector<8x8xf32>
    %c56 = arith.constant 56 : index
    %c0_140 = arith.constant 0 : index
    %271 = vector.load %arg18[%c56, %c0_140] : memref<64x8xf32, #tpu.memory_space<vmem>>, vector<8x8xf32>
    tpu.vector_store %arg18[%c56, %c0_140], %270 {strides = array<i32>} : memref<64x8xf32, #tpu.memory_space<vmem>>, vector<8x8xf32>,
    %c0_141 = arith.constant 0 : index
    %c0_142 = arith.constant 0 : index
    %272 = vector.load %arg18[%c0_141, %c0_142] : memref<64x8xf32, #tpu.memory_space<vmem>>, vector<64x8xf32>
    %cst_143 = arith.constant dense<0xFF800000> : vector<64xf32>
    %273 = vector.multi_reduction <maximumf>, %272, %cst_143 [1] : vector<64x8xf32> to vector<64xf32>
    %274 = vector.shape_cast %273 : vector<64xf32> to vector<64x1xf32>
    %275 = vector.broadcast %274 : vector<64x1xf32> to vector<64x8xf32>
    %276 = arith.subf %272, %275 : vector<64x8xf32>
    %277 = math.exp %276 : vector<64x8xf32>
    %cst_144 = arith.constant dense<0.000000e+00> : vector<64xf32>
    %278 = vector.multi_reduction <add>, %277, %cst_144 [1] : vector<64x8xf32> to vector<64xf32>
    %279 = vector.shape_cast %278 : vector<64xf32> to vector<64x1xf32>
    %280 = tpu.reciprocal %279 {approx = true} : vector<64x1xf32> -> vector<64x1xf32>
    %281 = vector.broadcast %280 : vector<64x1xf32> to vector<64x8xf32>
    %282 = arith.mulf %277, %281 : vector<64x8xf32>
    %283 = vector.extract_strided_slice %282 {offsets = [0, 0], sizes = [8, 8], strides = [1, 1]} : vector<64x8xf32> to vector<8x8xf32>
    %284 = arith.truncf %283 : vector<8x8xf32> to vector<8x8xbf16>
    %cst_145 = arith.constant dense<0.000000e+00> : vector<8x8xf32>
    %285 = tpu.matmul %284, %135, %cst_145 {dimension_numbers = #tpu.dot_dimension_numbers<[1], [0], [0], [1], [0, 0, 1, 1], [], []>} : vector<8x8xbf16>, vector<8x8xbf16>, vector<8x8xf32> -> vector<8x8xf32>
    %286 = arith.truncf %285 : vector<8x8xf32> to vector<8x8xbf16>
    %cst_146 = arith.constant dense<0.000000e+00> : vector<8x32xf32>
    %287 = tpu.matmul %286, %114, %cst_146 {dimension_numbers = #tpu.dot_dimension_numbers<[1], [0], [0], [1], [0, 0, 1, 1], [], []>} : vector<8x8xbf16>, vector<8x32xbf16>, vector<8x32xf32> -> vector<8x32xf32>
    %288 = vector.extract_strided_slice %282 {offsets = [8, 0], sizes = [8, 8], strides = [1, 1]} : vector<64x8xf32> to vector<8x8xf32>
    %289 = arith.truncf %288 : vector<8x8xf32> to vector<8x8xbf16>
    %cst_147 = arith.constant dense<0.000000e+00> : vector<8x8xf32>
    %290 = tpu.matmul %289, %153, %cst_147 {dimension_numbers = #tpu.dot_dimension_numbers<[1], [0], [0], [1], [0, 0, 1, 1], [], []>} : vector<8x8xbf16>, vector<8x8xbf16>, vector<8x8xf32> -> vector<8x8xf32>
    %291 = arith.truncf %290 : vector<8x8xf32> to vector<8x8xbf16>
    %cst_148 = arith.constant dense<0.000000e+00> : vector<8x32xf32>
    %292 = tpu.matmul %291, %117, %cst_148 {dimension_numbers = #tpu.dot_dimension_numbers<[1], [0], [0], [1], [0, 0, 1, 1], [], []>} : vector<8x8xbf16>, vector<8x32xbf16>, vector<8x32xf32> -> vector<8x32xf32>
    %293 = arith.addf %287, %292 : vector<8x32xf32>
    %294 = vector.extract_strided_slice %282 {offsets = [16, 0], sizes = [8, 8], strides = [1, 1]} : vector<64x8xf32> to vector<8x8xf32>
    %295 = arith.truncf %294 : vector<8x8xf32> to vector<8x8xbf16>
    %cst_149 = arith.constant dense<0.000000e+00> : vector<8x8xf32>
    %296 = tpu.matmul %295, %171, %cst_149 {dimension_numbers = #tpu.dot_dimension_numbers<[1], [0], [0], [1], [0, 0, 1, 1], [], []>} : vector<8x8xbf16>, vector<8x8xbf16>, vector<8x8xf32> -> vector<8x8xf32>
    %297 = arith.truncf %296 : vector<8x8xf32> to vector<8x8xbf16>
    %cst_150 = arith.constant dense<0.000000e+00> : vector<8x32xf32>
    %298 = tpu.matmul %297, %120, %cst_150 {dimension_numbers = #tpu.dot_dimension_numbers<[1], [0], [0], [1], [0, 0, 1, 1], [], []>} : vector<8x8xbf16>, vector<8x32xbf16>, vector<8x32xf32> -> vector<8x32xf32>
    %299 = arith.addf %293, %298 : vector<8x32xf32>
    %300 = vector.extract_strided_slice %282 {offsets = [24, 0], sizes = [8, 8], strides = [1, 1]} : vector<64x8xf32> to vector<8x8xf32>
    %301 = arith.truncf %300 : vector<8x8xf32> to vector<8x8xbf16>
    %cst_151 = arith.constant dense<0.000000e+00> : vector<8x8xf32>
    %302 = tpu.matmul %301, %189, %cst_151 {dimension_numbers = #tpu.dot_dimension_numbers<[1], [0], [0], [1], [0, 0, 1, 1], [], []>} : vector<8x8xbf16>, vector<8x8xbf16>, vector<8x8xf32> -> vector<8x8xf32>
    %303 = arith.truncf %302 : vector<8x8xf32> to vector<8x8xbf16>
    %cst_152 = arith.constant dense<0.000000e+00> : vector<8x32xf32>
    %304 = tpu.matmul %303, %123, %cst_152 {dimension_numbers = #tpu.dot_dimension_numbers<[1], [0], [0], [1], [0, 0, 1, 1], [], []>} : vector<8x8xbf16>, vector<8x32xbf16>, vector<8x32xf32> -> vector<8x32xf32>
    %305 = arith.addf %299, %304 : vector<8x32xf32>
    %c0_153 = arith.constant 0 : index
    %c0_154 = arith.constant 0 : index
    %306 = vector.load %arg19[%c0_153, %c0_154] : memref<16x32xf32, #tpu.memory_space<vmem>>, vector<8x32xf32>
    tpu.vector_store %arg19[%c0_153, %c0_154], %305 {strides = array<i32>} : memref<16x32xf32, #tpu.memory_space<vmem>>, vector<8x32xf32>,
    %307 = vector.extract_strided_slice %282 {offsets = [32, 0], sizes = [8, 8], strides = [1, 1]} : vector<64x8xf32> to vector<8x8xf32>
    %308 = arith.truncf %307 : vector<8x8xf32> to vector<8x8xbf16>
    %cst_155 = arith.constant dense<0.000000e+00> : vector<8x8xf32>
    %309 = tpu.matmul %308, %209, %cst_155 {dimension_numbers = #tpu.dot_dimension_numbers<[1], [0], [0], [1], [0, 0, 1, 1], [], []>} : vector<8x8xbf16>, vector<8x8xbf16>, vector<8x8xf32> -> vector<8x8xf32>
    %310 = arith.truncf %309 : vector<8x8xf32> to vector<8x8xbf16>
    %cst_156 = arith.constant dense<0.000000e+00> : vector<8x32xf32>
    %311 = tpu.matmul %310, %114, %cst_156 {dimension_numbers = #tpu.dot_dimension_numbers<[1], [0], [0], [1], [0, 0, 1, 1], [], []>} : vector<8x8xbf16>, vector<8x32xbf16>, vector<8x32xf32> -> vector<8x32xf32>
    %312 = vector.extract_strided_slice %282 {offsets = [40, 0], sizes = [8, 8], strides = [1, 1]} : vector<64x8xf32> to vector<8x8xf32>
    %313 = arith.truncf %312 : vector<8x8xf32> to vector<8x8xbf16>
    %cst_157 = arith.constant dense<0.000000e+00> : vector<8x8xf32>
    %314 = tpu.matmul %313, %227, %cst_157 {dimension_numbers = #tpu.dot_dimension_numbers<[1], [0], [0], [1], [0, 0, 1, 1], [], []>} : vector<8x8xbf16>, vector<8x8xbf16>, vector<8x8xf32> -> vector<8x8xf32>
    %315 = arith.truncf %314 : vector<8x8xf32> to vector<8x8xbf16>
    %cst_158 = arith.constant dense<0.000000e+00> : vector<8x32xf32>
    %316 = tpu.matmul %315, %117, %cst_158 {dimension_numbers = #tpu.dot_dimension_numbers<[1], [0], [0], [1], [0, 0, 1, 1], [], []>} : vector<8x8xbf16>, vector<8x32xbf16>, vector<8x32xf32> -> vector<8x32xf32>
    %317 = arith.addf %311, %316 : vector<8x32xf32>
    %318 = vector.extract_strided_slice %282 {offsets = [48, 0], sizes = [8, 8], strides = [1, 1]} : vector<64x8xf32> to vector<8x8xf32>
    %319 = arith.truncf %318 : vector<8x8xf32> to vector<8x8xbf16>
    %cst_159 = arith.constant dense<0.000000e+00> : vector<8x8xf32>
    %320 = tpu.matmul %319, %245, %cst_159 {dimension_numbers = #tpu.dot_dimension_numbers<[1], [0], [0], [1], [0, 0, 1, 1], [], []>} : vector<8x8xbf16>, vector<8x8xbf16>, vector<8x8xf32> -> vector<8x8xf32>
    %321 = arith.truncf %320 : vector<8x8xf32> to vector<8x8xbf16>
    %cst_160 = arith.constant dense<0.000000e+00> : vector<8x32xf32>
    %322 = tpu.matmul %321, %120, %cst_160 {dimension_numbers = #tpu.dot_dimension_numbers<[1], [0], [0], [1], [0, 0, 1, 1], [], []>} : vector<8x8xbf16>, vector<8x32xbf16>, vector<8x32xf32> -> vector<8x32xf32>
    %323 = arith.addf %317, %322 : vector<8x32xf32>
    %324 = vector.extract_strided_slice %282 {offsets = [56, 0], sizes = [8, 8], strides = [1, 1]} : vector<64x8xf32> to vector<8x8xf32>
    %325 = arith.truncf %324 : vector<8x8xf32> to vector<8x8xbf16>
    %cst_161 = arith.constant dense<0.000000e+00> : vector<8x8xf32>
    %326 = tpu.matmul %325, %263, %cst_161 {dimension_numbers = #tpu.dot_dimension_numbers<[1], [0], [0], [1], [0, 0, 1, 1], [], []>} : vector<8x8xbf16>, vector<8x8xbf16>, vector<8x8xf32> -> vector<8x8xf32>
    %327 = arith.truncf %326 : vector<8x8xf32> to vector<8x8xbf16>
    %cst_162 = arith.constant dense<0.000000e+00> : vector<8x32xf32>
    %328 = tpu.matmul %327, %123, %cst_162 {dimension_numbers = #tpu.dot_dimension_numbers<[1], [0], [0], [1], [0, 0, 1, 1], [], []>} : vector<8x8xbf16>, vector<8x32xbf16>, vector<8x32xf32> -> vector<8x32xf32>
    %329 = arith.addf %323, %328 : vector<8x32xf32>
    %c8_163 = arith.constant 8 : index
    %c0_164 = arith.constant 0 : index
    %330 = vector.load %arg19[%c8_163, %c0_164] : memref<16x32xf32, #tpu.memory_space<vmem>>, vector<8x32xf32>
    tpu.vector_store %arg19[%c8_163, %c0_164], %329 {strides = array<i32>} : memref<16x32xf32, #tpu.memory_space<vmem>>, vector<8x32xf32>,
    %c0_165 = arith.constant 0 : index
    %c0_166 = arith.constant 0 : index
    %331 = vector.load %arg19[%c0_165, %c0_166] : memref<16x32xf32, #tpu.memory_space<vmem>>, vector<16x32xf32>
    %c0_167 = arith.constant 0 : index
    %c0_168 = arith.constant 0 : index
    %c0_169 = arith.constant 0 : index
    %332 = vector.load %arg8[%c0_167, %c0_168, %c0_169] : memref<12x1x32xf32, #tpu.memory_space<vmem>>, vector<1x1x32xf32>
    %333 = vector.shape_cast %332 : vector<1x1x32xf32> to vector<1x32xf32>
    %334 = vector.broadcast %333 : vector<1x32xf32> to vector<16x32xf32>
    %335 = arith.addf %331, %334 : vector<16x32xf32>
    %336 = arith.addf %335, %44 : vector<16x32xf32>
    %c1_170 = arith.constant 1 : index
    %c0_171 = arith.constant 0 : index
    %c0_172 = arith.constant 0 : index
    %337 = vector.load %arg8[%c1_170, %c0_171, %c0_172] : memref<12x1x32xf32, #tpu.memory_space<vmem>>, vector<1x1x32xf32>
    %338 = vector.shape_cast %337 : vector<1x1x32xf32> to vector<1x32xf32>
    %c2_173 = arith.constant 2 : index
    %c0_174 = arith.constant 0 : index
    %c0_175 = arith.constant 0 : index
    %339 = vector.load %arg8[%c2_173, %c0_174, %c0_175] : memref<12x1x32xf32, #tpu.memory_space<vmem>>, vector<1x1x32xf32>
    %340 = vector.shape_cast %339 : vector<1x1x32xf32> to vector<1x32xf32>
    %cst_176 = arith.constant dense<0.000000e+00> : vector<16xf32>
    %341 = vector.multi_reduction <add>, %336, %cst_176 [1] : vector<16x32xf32> to vector<16xf32>
    %342 = vector.shape_cast %341 : vector<16xf32> to vector<16x1xf32>
    %cst_177 = arith.constant 3.200000e+01 : f32
    %343 = vector.broadcast %cst_177 : f32 to vector<16x1xf32>
    %344 = arith.divf %342, %343 : vector<16x1xf32>
    %345 = vector.broadcast %344 : vector<16x1xf32> to vector<16x32xf32>
    %346 = arith.subf %336, %345 : vector<16x32xf32>
    %347 = vector.broadcast %344 : vector<16x1xf32> to vector<16x32xf32>
    %348 = arith.subf %336, %347 : vector<16x32xf32>
    %349 = arith.mulf %346, %348 : vector<16x32xf32>
    %cst_178 = arith.constant dense<0.000000e+00> : vector<16xf32>
    %350 = vector.multi_reduction <add>, %349, %cst_178 [1] : vector<16x32xf32> to vector<16xf32>
    %351 = vector.shape_cast %350 : vector<16xf32> to vector<16x1xf32>
    %cst_179 = arith.constant 3.200000e+01 : f32
    %352 = vector.broadcast %cst_179 : f32 to vector<16x1xf32>
    %353 = arith.divf %351, %352 : vector<16x1xf32>
    %cst_180 = arith.constant 9.99999996E-13 : f32
    %354 = vector.broadcast %cst_180 : f32 to vector<16x1xf32>
    %355 = arith.addf %353, %354 : vector<16x1xf32>
    %356 = math.rsqrt %355 : vector<16x1xf32>
    %357 = vector.broadcast %344 : vector<16x1xf32> to vector<16x32xf32>
    %358 = arith.subf %336, %357 : vector<16x32xf32>
    %359 = vector.broadcast %356 : vector<16x1xf32> to vector<16x32xf32>
    %360 = arith.mulf %358, %359 : vector<16x32xf32>
    %361 = vector.broadcast %338 : vector<1x32xf32> to vector<16x32xf32>
    %362 = arith.mulf %360, %361 : vector<16x32xf32>
    %363 = vector.broadcast %340 : vector<1x32xf32> to vector<16x32xf32>
    %364 = arith.addf %362, %363 : vector<16x32xf32>
    %365 = arith.truncf %364 : vector<16x32xf32> to vector<16x32xbf16>
    %c0_181 = arith.constant 0 : index
    %c0_182 = arith.constant 0 : index
    %c0_183 = arith.constant 0 : index
    %366 = vector.load %arg9[%c0_181, %c0_182, %c0_183] : memref<2x32x64xf32, #tpu.memory_space<vmem>>, vector<1x32x64xf32>
    %367 = vector.shape_cast %366 : vector<1x32x64xf32> to vector<32x64xf32>
    %368 = arith.truncf %367 : vector<32x64xf32> to vector<32x64xbf16>
    %cst_184 = arith.constant dense<0.000000e+00> : vector<16x64xf32>
    %369 = tpu.matmul %365, %368, %cst_184 {dimension_numbers = #tpu.dot_dimension_numbers<[1], [0], [0], [1], [0, 0, 1, 1], [], []>} : vector<16x32xbf16>, vector<32x64xbf16>, vector<16x64xf32> -> vector<16x64xf32>
    %c0_185 = arith.constant 0 : index
    %c0_186 = arith.constant 0 : index
    %c0_187 = arith.constant 0 : index
    %370 = vector.load %arg10[%c0_185, %c0_186, %c0_187] : memref<2x1x64xf32, #tpu.memory_space<vmem>>, vector<1x1x64xf32>
    %371 = vector.shape_cast %370 : vector<1x1x64xf32> to vector<1x64xf32>
    %372 = vector.broadcast %371 : vector<1x64xf32> to vector<16x64xf32>
    %373 = arith.addf %369, %372 : vector<16x64xf32>
    %cst_188 = arith.constant 5.000000e-01 : f32
    %374 = vector.broadcast %cst_188 : f32 to vector<16x64xf32>
    %375 = arith.mulf %374, %373 : vector<16x64xf32>
    %cst_189 = arith.constant 0.707106769 : f32
    %376 = vector.broadcast %cst_189 : f32 to vector<16x64xf32>
    %377 = arith.mulf %373, %376 : vector<16x64xf32>
    %378 = math.erf %377 : vector<16x64xf32>
    %cst_190 = arith.constant 1.000000e+00 : f32
    %379 = vector.broadcast %cst_190 : f32 to vector<16x64xf32>
    %380 = arith.addf %379, %378 : vector<16x64xf32>
    %381 = arith.mulf %375, %380 : vector<16x64xf32>
    %382 = arith.truncf %381 : vector<16x64xf32> to vector<16x64xbf16>
    %c0_191 = arith.constant 0 : index
    %c0_192 = arith.constant 0 : index
    %c0_193 = arith.constant 0 : index
    %383 = vector.load %arg11[%c0_191, %c0_192, %c0_193] : memref<2x64x32xf32, #tpu.memory_space<vmem>>, vector<1x64x32xf32>
    %384 = vector.shape_cast %383 : vector<1x64x32xf32> to vector<64x32xf32>
    %385 = arith.truncf %384 : vector<64x32xf32> to vector<64x32xbf16>
    %cst_194 = arith.constant dense<0.000000e+00> : vector<16x32xf32>
    %386 = tpu.matmul %382, %385, %cst_194 {dimension_numbers = #tpu.dot_dimension_numbers<[1], [0], [0], [1], [0, 0, 1, 1], [], []>} : vector<16x64xbf16>, vector<64x32xbf16>, vector<16x32xf32> -> vector<16x32xf32>
    %c3_195 = arith.constant 3 : index
    %c0_196 = arith.constant 0 : index
    %c0_197 = arith.constant 0 : index
    %387 = vector.load %arg8[%c3_195, %c0_196, %c0_197] : memref<12x1x32xf32, #tpu.memory_space<vmem>>, vector<1x1x32xf32>
    %388 = vector.shape_cast %387 : vector<1x1x32xf32> to vector<1x32xf32>
    %389 = vector.broadcast %388 : vector<1x32xf32> to vector<16x32xf32>
    %390 = arith.addf %386, %389 : vector<16x32xf32>
    %391 = arith.addf %390, %364 : vector<16x32xf32>
    %c4_198 = arith.constant 4 : index
    %c0_199 = arith.constant 0 : index
    %c0_200 = arith.constant 0 : index
    %392 = vector.load %arg8[%c4_198, %c0_199, %c0_200] : memref<12x1x32xf32, #tpu.memory_space<vmem>>, vector<1x1x32xf32>
    %393 = vector.shape_cast %392 : vector<1x1x32xf32> to vector<1x32xf32>
    %c5_201 = arith.constant 5 : index
    %c0_202 = arith.constant 0 : index
    %c0_203 = arith.constant 0 : index
    %394 = vector.load %arg8[%c5_201, %c0_202, %c0_203] : memref<12x1x32xf32, #tpu.memory_space<vmem>>, vector<1x1x32xf32>
    %395 = vector.shape_cast %394 : vector<1x1x32xf32> to vector<1x32xf32>
    %cst_204 = arith.constant dense<0.000000e+00> : vector<16xf32>
    %396 = vector.multi_reduction <add>, %391, %cst_204 [1] : vector<16x32xf32> to vector<16xf32>
    %397 = vector.shape_cast %396 : vector<16xf32> to vector<16x1xf32>
    %cst_205 = arith.constant 3.200000e+01 : f32
    %398 = vector.broadcast %cst_205 : f32 to vector<16x1xf32>
    %399 = arith.divf %397, %398 : vector<16x1xf32>
    %400 = vector.broadcast %399 : vector<16x1xf32> to vector<16x32xf32>
    %401 = arith.subf %391, %400 : vector<16x32xf32>
    %402 = vector.broadcast %399 : vector<16x1xf32> to vector<16x32xf32>
    %403 = arith.subf %391, %402 : vector<16x32xf32>
    %404 = arith.mulf %401, %403 : vector<16x32xf32>
    %cst_206 = arith.constant dense<0.000000e+00> : vector<16xf32>
    %405 = vector.multi_reduction <add>, %404, %cst_206 [1] : vector<16x32xf32> to vector<16xf32>
    %406 = vector.shape_cast %405 : vector<16xf32> to vector<16x1xf32>
    %cst_207 = arith.constant 3.200000e+01 : f32
    %407 = vector.broadcast %cst_207 : f32 to vector<16x1xf32>
    %408 = arith.divf %406, %407 : vector<16x1xf32>
    %cst_208 = arith.constant 9.99999996E-13 : f32
    %409 = vector.broadcast %cst_208 : f32 to vector<16x1xf32>
    %410 = arith.addf %408, %409 : vector<16x1xf32>
    %411 = math.rsqrt %410 : vector<16x1xf32>
    %412 = vector.broadcast %399 : vector<16x1xf32> to vector<16x32xf32>
    %413 = arith.subf %391, %412 : vector<16x32xf32>
    %414 = vector.broadcast %411 : vector<16x1xf32> to vector<16x32xf32>
    %415 = arith.mulf %413, %414 : vector<16x32xf32>
    %416 = vector.broadcast %393 : vector<1x32xf32> to vector<16x32xf32>
    %417 = arith.mulf %415, %416 : vector<16x32xf32>
    %418 = vector.broadcast %395 : vector<1x32xf32> to vector<16x32xf32>
    %419 = arith.addf %417, %418 : vector<16x32xf32>
    %c12 = arith.constant 12 : index
    %c0_209 = arith.constant 0 : index
    %c0_210 = arith.constant 0 : index
    %420 = vector.load %arg5[%c12, %c0_209, %c0_210] : memref<24x32x8xf32, #tpu.memory_space<vmem>>, vector<1x32x8xf32>
    %421 = vector.shape_cast %420 : vector<1x32x8xf32> to vector<32x8xf32>
    %422 = arith.truncf %421 : vector<32x8xf32> to vector<32x8xbf16>
    %c13 = arith.constant 13 : index
    %c0_211 = arith.constant 0 : index
    %c0_212 = arith.constant 0 : index
    %423 = vector.load %arg5[%c13, %c0_211, %c0_212] : memref<24x32x8xf32, #tpu.memory_space<vmem>>, vector<1x32x8xf32>
    %424 = vector.shape_cast %423 : vector<1x32x8xf32> to vector<32x8xf32>
    %425 = arith.truncf %424 : vector<32x8xf32> to vector<32x8xbf16>
    %c14 = arith.constant 14 : index
    %c0_213 = arith.constant 0 : index
    %c0_214 = arith.constant 0 : index
    %426 = vector.load %arg5[%c14, %c0_213, %c0_214] : memref<24x32x8xf32, #tpu.memory_space<vmem>>, vector<1x32x8xf32>
    %427 = vector.shape_cast %426 : vector<1x32x8xf32> to vector<32x8xf32>
    %428 = arith.truncf %427 : vector<32x8xf32> to vector<32x8xbf16>
    %c15 = arith.constant 15 : index
    %c0_215 = arith.constant 0 : index
    %c0_216 = arith.constant 0 : index
    %429 = vector.load %arg5[%c15, %c0_215, %c0_216] : memref<24x32x8xf32, #tpu.memory_space<vmem>>, vector<1x32x8xf32>
    %430 = vector.shape_cast %429 : vector<1x32x8xf32> to vector<32x8xf32>
    %431 = arith.truncf %430 : vector<32x8xf32> to vector<32x8xbf16>
    %c16_217 = arith.constant 16 : index
    %c0_218 = arith.constant 0 : index
    %c0_219 = arith.constant 0 : index
    %432 = vector.load %arg5[%c16_217, %c0_218, %c0_219] : memref<24x32x8xf32, #tpu.memory_space<vmem>>, vector<1x32x8xf32>
    %433 = vector.shape_cast %432 : vector<1x32x8xf32> to vector<32x8xf32>
    %434 = arith.truncf %433 : vector<32x8xf32> to vector<32x8xbf16>
    %c17 = arith.constant 17 : index
    %c0_220 = arith.constant 0 : index
    %c0_221 = arith.constant 0 : index
    %435 = vector.load %arg5[%c17, %c0_220, %c0_221] : memref<24x32x8xf32, #tpu.memory_space<vmem>>, vector<1x32x8xf32>
    %436 = vector.shape_cast %435 : vector<1x32x8xf32> to vector<32x8xf32>
    %437 = arith.truncf %436 : vector<32x8xf32> to vector<32x8xbf16>
    %c18 = arith.constant 18 : index
    %c0_222 = arith.constant 0 : index
    %c0_223 = arith.constant 0 : index
    %438 = vector.load %arg5[%c18, %c0_222, %c0_223] : memref<24x32x8xf32, #tpu.memory_space<vmem>>, vector<1x32x8xf32>
    %439 = vector.shape_cast %438 : vector<1x32x8xf32> to vector<32x8xf32>
    %440 = arith.truncf %439 : vector<32x8xf32> to vector<32x8xbf16>
    %c19 = arith.constant 19 : index
    %c0_224 = arith.constant 0 : index
    %c0_225 = arith.constant 0 : index
    %441 = vector.load %arg5[%c19, %c0_224, %c0_225] : memref<24x32x8xf32, #tpu.memory_space<vmem>>, vector<1x32x8xf32>
    %442 = vector.shape_cast %441 : vector<1x32x8xf32> to vector<32x8xf32>
    %443 = arith.truncf %442 : vector<32x8xf32> to vector<32x8xbf16>
    %c20 = arith.constant 20 : index
    %c0_226 = arith.constant 0 : index
    %c0_227 = arith.constant 0 : index
    %444 = vector.load %arg5[%c20, %c0_226, %c0_227] : memref<24x32x8xf32, #tpu.memory_space<vmem>>, vector<1x32x8xf32>
    %445 = vector.shape_cast %444 : vector<1x32x8xf32> to vector<32x8xf32>
    %446 = arith.truncf %445 : vector<32x8xf32> to vector<32x8xbf16>
    %c21 = arith.constant 21 : index
    %c0_228 = arith.constant 0 : index
    %c0_229 = arith.constant 0 : index
    %447 = vector.load %arg5[%c21, %c0_228, %c0_229] : memref<24x32x8xf32, #tpu.memory_space<vmem>>, vector<1x32x8xf32>
    %448 = vector.shape_cast %447 : vector<1x32x8xf32> to vector<32x8xf32>
    %449 = arith.truncf %448 : vector<32x8xf32> to vector<32x8xbf16>
    %c22 = arith.constant 22 : index
    %c0_230 = arith.constant 0 : index
    %c0_231 = arith.constant 0 : index
    %450 = vector.load %arg5[%c22, %c0_230, %c0_231] : memref<24x32x8xf32, #tpu.memory_space<vmem>>, vector<1x32x8xf32>
    %451 = vector.shape_cast %450 : vector<1x32x8xf32> to vector<32x8xf32>
    %452 = arith.truncf %451 : vector<32x8xf32> to vector<32x8xbf16>
    %c23 = arith.constant 23 : index
    %c0_232 = arith.constant 0 : index
    %c0_233 = arith.constant 0 : index
    %453 = vector.load %arg5[%c23, %c0_232, %c0_233] : memref<24x32x8xf32, #tpu.memory_space<vmem>>, vector<1x32x8xf32>
    %454 = vector.shape_cast %453 : vector<1x32x8xf32> to vector<32x8xf32>
    %455 = arith.truncf %454 : vector<32x8xf32> to vector<32x8xbf16>
    %c12_234 = arith.constant 12 : index
    %c0_235 = arith.constant 0 : index
    %c0_236 = arith.constant 0 : index
    %456 = vector.load %arg6[%c12_234, %c0_235, %c0_236] : memref<24x1x8xf32, #tpu.memory_space<vmem>>, vector<1x1x8xf32>
    %457 = vector.shape_cast %456 : vector<1x1x8xf32> to vector<1x8xf32>
    %c13_237 = arith.constant 13 : index
    %c0_238 = arith.constant 0 : index
    %c0_239 = arith.constant 0 : index
    %458 = vector.load %arg6[%c13_237, %c0_238, %c0_239] : memref<24x1x8xf32, #tpu.memory_space<vmem>>, vector<1x1x8xf32>
    %459 = vector.shape_cast %458 : vector<1x1x8xf32> to vector<1x8xf32>
    %c14_240 = arith.constant 14 : index
    %c0_241 = arith.constant 0 : index
    %c0_242 = arith.constant 0 : index
    %460 = vector.load %arg6[%c14_240, %c0_241, %c0_242] : memref<24x1x8xf32, #tpu.memory_space<vmem>>, vector<1x1x8xf32>
    %461 = vector.shape_cast %460 : vector<1x1x8xf32> to vector<1x8xf32>
    %c15_243 = arith.constant 15 : index
    %c0_244 = arith.constant 0 : index
    %c0_245 = arith.constant 0 : index
    %462 = vector.load %arg6[%c15_243, %c0_244, %c0_245] : memref<24x1x8xf32, #tpu.memory_space<vmem>>, vector<1x1x8xf32>
    %463 = vector.shape_cast %462 : vector<1x1x8xf32> to vector<1x8xf32>
    %c16_246 = arith.constant 16 : index
    %c0_247 = arith.constant 0 : index
    %c0_248 = arith.constant 0 : index
    %464 = vector.load %arg6[%c16_246, %c0_247, %c0_248] : memref<24x1x8xf32, #tpu.memory_space<vmem>>, vector<1x1x8xf32>
    %465 = vector.shape_cast %464 : vector<1x1x8xf32> to vector<1x8xf32>
    %c17_249 = arith.constant 17 : index
    %c0_250 = arith.constant 0 : index
    %c0_251 = arith.constant 0 : index
    %466 = vector.load %arg6[%c17_249, %c0_250, %c0_251] : memref<24x1x8xf32, #tpu.memory_space<vmem>>, vector<1x1x8xf32>
    %467 = vector.shape_cast %466 : vector<1x1x8xf32> to vector<1x8xf32>
    %c18_252 = arith.constant 18 : index
    %c0_253 = arith.constant 0 : index
    %c0_254 = arith.constant 0 : index
    %468 = vector.load %arg6[%c18_252, %c0_253, %c0_254] : memref<24x1x8xf32, #tpu.memory_space<vmem>>, vector<1x1x8xf32>
    %469 = vector.shape_cast %468 : vector<1x1x8xf32> to vector<1x8xf32>
    %c19_255 = arith.constant 19 : index
    %c0_256 = arith.constant 0 : index
    %c0_257 = arith.constant 0 : index
    %470 = vector.load %arg6[%c19_255, %c0_256, %c0_257] : memref<24x1x8xf32, #tpu.memory_space<vmem>>, vector<1x1x8xf32>
    %471 = vector.shape_cast %470 : vector<1x1x8xf32> to vector<1x8xf32>
    %c20_258 = arith.constant 20 : index
    %c0_259 = arith.constant 0 : index
    %c0_260 = arith.constant 0 : index
    %472 = vector.load %arg6[%c20_258, %c0_259, %c0_260] : memref<24x1x8xf32, #tpu.memory_space<vmem>>, vector<1x1x8xf32>
    %473 = vector.shape_cast %472 : vector<1x1x8xf32> to vector<1x8xf32>
    %c21_261 = arith.constant 21 : index
    %c0_262 = arith.constant 0 : index
    %c0_263 = arith.constant 0 : index
    %474 = vector.load %arg6[%c21_261, %c0_262, %c0_263] : memref<24x1x8xf32, #tpu.memory_space<vmem>>, vector<1x1x8xf32>
    %475 = vector.shape_cast %474 : vector<1x1x8xf32> to vector<1x8xf32>
    %c22_264 = arith.constant 22 : index
    %c0_265 = arith.constant 0 : index
    %c0_266 = arith.constant 0 : index
    %476 = vector.load %arg6[%c22_264, %c0_265, %c0_266] : memref<24x1x8xf32, #tpu.memory_space<vmem>>, vector<1x1x8xf32>
    %477 = vector.shape_cast %476 : vector<1x1x8xf32> to vector<1x8xf32>
    %c23_267 = arith.constant 23 : index
    %c0_268 = arith.constant 0 : index
    %c0_269 = arith.constant 0 : index
    %478 = vector.load %arg6[%c23_267, %c0_268, %c0_269] : memref<24x1x8xf32, #tpu.memory_space<vmem>>, vector<1x1x8xf32>
    %479 = vector.shape_cast %478 : vector<1x1x8xf32> to vector<1x8xf32>
    %c4_270 = arith.constant 4 : index
    %c0_271 = arith.constant 0 : index
    %c0_272 = arith.constant 0 : index
    %480 = vector.load %arg7[%c4_270, %c0_271, %c0_272] : memref<8x8x32xf32, #tpu.memory_space<vmem>>, vector<1x8x32xf32>
    %481 = vector.shape_cast %480 : vector<1x8x32xf32> to vector<8x32xf32>
    %482 = arith.truncf %481 : vector<8x32xf32> to vector<8x32xbf16>
    %c5_273 = arith.constant 5 : index
    %c0_274 = arith.constant 0 : index
    %c0_275 = arith.constant 0 : index
    %483 = vector.load %arg7[%c5_273, %c0_274, %c0_275] : memref<8x8x32xf32, #tpu.memory_space<vmem>>, vector<1x8x32xf32>
    %484 = vector.shape_cast %483 : vector<1x8x32xf32> to vector<8x32xf32>
    %485 = arith.truncf %484 : vector<8x32xf32> to vector<8x32xbf16>
    %c6_276 = arith.constant 6 : index
    %c0_277 = arith.constant 0 : index
    %c0_278 = arith.constant 0 : index
    %486 = vector.load %arg7[%c6_276, %c0_277, %c0_278] : memref<8x8x32xf32, #tpu.memory_space<vmem>>, vector<1x8x32xf32>
    %487 = vector.shape_cast %486 : vector<1x8x32xf32> to vector<8x32xf32>
    %488 = arith.truncf %487 : vector<8x32xf32> to vector<8x32xbf16>
    %c7_279 = arith.constant 7 : index
    %c0_280 = arith.constant 0 : index
    %c0_281 = arith.constant 0 : index
    %489 = vector.load %arg7[%c7_279, %c0_280, %c0_281] : memref<8x8x32xf32, #tpu.memory_space<vmem>>, vector<1x8x32xf32>
    %490 = vector.shape_cast %489 : vector<1x8x32xf32> to vector<8x32xf32>
    %491 = arith.truncf %490 : vector<8x32xf32> to vector<8x32xbf16>
    %492 = vector.extract_strided_slice %419 {offsets = [0, 0], sizes = [8, 32], strides = [1, 1]} : vector<16x32xf32> to vector<8x32xf32>
    %493 = arith.truncf %492 : vector<8x32xf32> to vector<8x32xbf16>
    %cst_282 = arith.constant dense<0.000000e+00> : vector<8x8xf32>
    %494 = tpu.matmul %493, %422, %cst_282 {dimension_numbers = #tpu.dot_dimension_numbers<[1], [0], [0], [1], [0, 0, 1, 1], [], []>} : vector<8x32xbf16>, vector<32x8xbf16>, vector<8x8xf32> -> vector<8x8xf32>
    %495 = vector.broadcast %457 : vector<1x8xf32> to vector<8x8xf32>
    %496 = arith.addf %494, %495 : vector<8x8xf32>
    %cst_283 = arith.constant dense<0.000000e+00> : vector<8x8xf32>
    %497 = tpu.matmul %493, %434, %cst_283 {dimension_numbers = #tpu.dot_dimension_numbers<[1], [0], [0], [1], [0, 0, 1, 1], [], []>} : vector<8x32xbf16>, vector<32x8xbf16>, vector<8x8xf32> -> vector<8x8xf32>
    %498 = vector.broadcast %465 : vector<1x8xf32> to vector<8x8xf32>
    %499 = arith.addf %497, %498 : vector<8x8xf32>
    %cst_284 = arith.constant dense<0.000000e+00> : vector<8x8xf32>
    %500 = tpu.matmul %493, %446, %cst_284 {dimension_numbers = #tpu.dot_dimension_numbers<[1], [0], [0], [1], [0, 0, 1, 1], [], []>} : vector<8x32xbf16>, vector<32x8xbf16>, vector<8x8xf32> -> vector<8x8xf32>
    %501 = vector.broadcast %473 : vector<1x8xf32> to vector<8x8xf32>
    %502 = arith.addf %500, %501 : vector<8x8xf32>
    %503 = arith.truncf %502 : vector<8x8xf32> to vector<8x8xbf16>
    %504 = arith.truncf %496 : vector<8x8xf32> to vector<8x8xbf16>
    %505 = arith.truncf %499 : vector<8x8xf32> to vector<8x8xbf16>
    %cst_285 = arith.constant dense<0.000000e+00> : vector<8x8xf32>
    %506 = tpu.matmul %504, %505, %cst_285 {dimension_numbers = #tpu.dot_dimension_numbers<[1], [1], [0], [0], [0, 0, 1, 0], [], []>} : vector<8x8xbf16>, vector<8x8xbf16>, vector<8x8xf32> -> vector<8x8xf32>
    %cst_286 = arith.constant 0.353553385 : f32
    %507 = vector.broadcast %cst_286 : f32 to vector<8x8xf32>
    %508 = arith.mulf %506, %507 : vector<8x8xf32>
    %509 = vector.broadcast %50 : vector<1x8xf32> to vector<8x8xf32>
    %510 = arith.addf %508, %509 : vector<8x8xf32>
    %c0_287 = arith.constant 0 : index
    %c0_288 = arith.constant 0 : index
    %511 = vector.load %arg18[%c0_287, %c0_288] : memref<64x8xf32, #tpu.memory_space<vmem>>, vector<8x8xf32>
    tpu.vector_store %arg18[%c0_287, %c0_288], %510 {strides = array<i32>} : memref<64x8xf32, #tpu.memory_space<vmem>>, vector<8x8xf32>,
    %cst_289 = arith.constant dense<0.000000e+00> : vector<8x8xf32>
    %512 = tpu.matmul %493, %425, %cst_289 {dimension_numbers = #tpu.dot_dimension_numbers<[1], [0], [0], [1], [0, 0, 1, 1], [], []>} : vector<8x32xbf16>, vector<32x8xbf16>, vector<8x8xf32> -> vector<8x8xf32>
    %513 = vector.broadcast %459 : vector<1x8xf32> to vector<8x8xf32>
    %514 = arith.addf %512, %513 : vector<8x8xf32>
    %cst_290 = arith.constant dense<0.000000e+00> : vector<8x8xf32>
    %515 = tpu.matmul %493, %437, %cst_290 {dimension_numbers = #tpu.dot_dimension_numbers<[1], [0], [0], [1], [0, 0, 1, 1], [], []>} : vector<8x32xbf16>, vector<32x8xbf16>, vector<8x8xf32> -> vector<8x8xf32>
    %516 = vector.broadcast %467 : vector<1x8xf32> to vector<8x8xf32>
    %517 = arith.addf %515, %516 : vector<8x8xf32>
    %cst_291 = arith.constant dense<0.000000e+00> : vector<8x8xf32>
    %518 = tpu.matmul %493, %449, %cst_291 {dimension_numbers = #tpu.dot_dimension_numbers<[1], [0], [0], [1], [0, 0, 1, 1], [], []>} : vector<8x32xbf16>, vector<32x8xbf16>, vector<8x8xf32> -> vector<8x8xf32>
    %519 = vector.broadcast %475 : vector<1x8xf32> to vector<8x8xf32>
    %520 = arith.addf %518, %519 : vector<8x8xf32>
    %521 = arith.truncf %520 : vector<8x8xf32> to vector<8x8xbf16>
    %522 = arith.truncf %514 : vector<8x8xf32> to vector<8x8xbf16>
    %523 = arith.truncf %517 : vector<8x8xf32> to vector<8x8xbf16>
    %cst_292 = arith.constant dense<0.000000e+00> : vector<8x8xf32>
    %524 = tpu.matmul %522, %523, %cst_292 {dimension_numbers = #tpu.dot_dimension_numbers<[1], [1], [0], [0], [0, 0, 1, 0], [], []>} : vector<8x8xbf16>, vector<8x8xbf16>, vector<8x8xf32> -> vector<8x8xf32>
    %cst_293 = arith.constant 0.353553385 : f32
    %525 = vector.broadcast %cst_293 : f32 to vector<8x8xf32>
    %526 = arith.mulf %524, %525 : vector<8x8xf32>
    %527 = vector.broadcast %50 : vector<1x8xf32> to vector<8x8xf32>
    %528 = arith.addf %526, %527 : vector<8x8xf32>
    %c8_294 = arith.constant 8 : index
    %c0_295 = arith.constant 0 : index
    %529 = vector.load %arg18[%c8_294, %c0_295] : memref<64x8xf32, #tpu.memory_space<vmem>>, vector<8x8xf32>
    tpu.vector_store %arg18[%c8_294, %c0_295], %528 {strides = array<i32>} : memref<64x8xf32, #tpu.memory_space<vmem>>, vector<8x8xf32>,
    %cst_296 = arith.constant dense<0.000000e+00> : vector<8x8xf32>
    %530 = tpu.matmul %493, %428, %cst_296 {dimension_numbers = #tpu.dot_dimension_numbers<[1], [0], [0], [1], [0, 0, 1, 1], [], []>} : vector<8x32xbf16>, vector<32x8xbf16>, vector<8x8xf32> -> vector<8x8xf32>
    %531 = vector.broadcast %461 : vector<1x8xf32> to vector<8x8xf32>
    %532 = arith.addf %530, %531 : vector<8x8xf32>
    %cst_297 = arith.constant dense<0.000000e+00> : vector<8x8xf32>
    %533 = tpu.matmul %493, %440, %cst_297 {dimension_numbers = #tpu.dot_dimension_numbers<[1], [0], [0], [1], [0, 0, 1, 1], [], []>} : vector<8x32xbf16>, vector<32x8xbf16>, vector<8x8xf32> -> vector<8x8xf32>
    %534 = vector.broadcast %469 : vector<1x8xf32> to vector<8x8xf32>
    %535 = arith.addf %533, %534 : vector<8x8xf32>
    %cst_298 = arith.constant dense<0.000000e+00> : vector<8x8xf32>
    %536 = tpu.matmul %493, %452, %cst_298 {dimension_numbers = #tpu.dot_dimension_numbers<[1], [0], [0], [1], [0, 0, 1, 1], [], []>} : vector<8x32xbf16>, vector<32x8xbf16>, vector<8x8xf32> -> vector<8x8xf32>
    %537 = vector.broadcast %477 : vector<1x8xf32> to vector<8x8xf32>
    %538 = arith.addf %536, %537 : vector<8x8xf32>
    %539 = arith.truncf %538 : vector<8x8xf32> to vector<8x8xbf16>
    %540 = arith.truncf %532 : vector<8x8xf32> to vector<8x8xbf16>
    %541 = arith.truncf %535 : vector<8x8xf32> to vector<8x8xbf16>
    %cst_299 = arith.constant dense<0.000000e+00> : vector<8x8xf32>
    %542 = tpu.matmul %540, %541, %cst_299 {dimension_numbers = #tpu.dot_dimension_numbers<[1], [1], [0], [0], [0, 0, 1, 0], [], []>} : vector<8x8xbf16>, vector<8x8xbf16>, vector<8x8xf32> -> vector<8x8xf32>
    %cst_300 = arith.constant 0.353553385 : f32
    %543 = vector.broadcast %cst_300 : f32 to vector<8x8xf32>
    %544 = arith.mulf %542, %543 : vector<8x8xf32>
    %545 = vector.broadcast %50 : vector<1x8xf32> to vector<8x8xf32>
    %546 = arith.addf %544, %545 : vector<8x8xf32>
    %c16_301 = arith.constant 16 : index
    %c0_302 = arith.constant 0 : index
    %547 = vector.load %arg18[%c16_301, %c0_302] : memref<64x8xf32, #tpu.memory_space<vmem>>, vector<8x8xf32>
    tpu.vector_store %arg18[%c16_301, %c0_302], %546 {strides = array<i32>} : memref<64x8xf32, #tpu.memory_space<vmem>>, vector<8x8xf32>,
    %cst_303 = arith.constant dense<0.000000e+00> : vector<8x8xf32>
    %548 = tpu.matmul %493, %431, %cst_303 {dimension_numbers = #tpu.dot_dimension_numbers<[1], [0], [0], [1], [0, 0, 1, 1], [], []>} : vector<8x32xbf16>, vector<32x8xbf16>, vector<8x8xf32> -> vector<8x8xf32>
    %549 = vector.broadcast %463 : vector<1x8xf32> to vector<8x8xf32>
    %550 = arith.addf %548, %549 : vector<8x8xf32>
    %cst_304 = arith.constant dense<0.000000e+00> : vector<8x8xf32>
    %551 = tpu.matmul %493, %443, %cst_304 {dimension_numbers = #tpu.dot_dimension_numbers<[1], [0], [0], [1], [0, 0, 1, 1], [], []>} : vector<8x32xbf16>, vector<32x8xbf16>, vector<8x8xf32> -> vector<8x8xf32>
    %552 = vector.broadcast %471 : vector<1x8xf32> to vector<8x8xf32>
    %553 = arith.addf %551, %552 : vector<8x8xf32>
    %cst_305 = arith.constant dense<0.000000e+00> : vector<8x8xf32>
    %554 = tpu.matmul %493, %455, %cst_305 {dimension_numbers = #tpu.dot_dimension_numbers<[1], [0], [0], [1], [0, 0, 1, 1], [], []>} : vector<8x32xbf16>, vector<32x8xbf16>, vector<8x8xf32> -> vector<8x8xf32>
    %555 = vector.broadcast %479 : vector<1x8xf32> to vector<8x8xf32>
    %556 = arith.addf %554, %555 : vector<8x8xf32>
    %557 = arith.truncf %556 : vector<8x8xf32> to vector<8x8xbf16>
    %558 = arith.truncf %550 : vector<8x8xf32> to vector<8x8xbf16>
    %559 = arith.truncf %553 : vector<8x8xf32> to vector<8x8xbf16>
    %cst_306 = arith.constant dense<0.000000e+00> : vector<8x8xf32>
    %560 = tpu.matmul %558, %559, %cst_306 {dimension_numbers = #tpu.dot_dimension_numbers<[1], [1], [0], [0], [0, 0, 1, 0], [], []>} : vector<8x8xbf16>, vector<8x8xbf16>, vector<8x8xf32> -> vector<8x8xf32>
    %cst_307 = arith.constant 0.353553385 : f32
    %561 = vector.broadcast %cst_307 : f32 to vector<8x8xf32>
    %562 = arith.mulf %560, %561 : vector<8x8xf32>
    %563 = vector.broadcast %50 : vector<1x8xf32> to vector<8x8xf32>
    %564 = arith.addf %562, %563 : vector<8x8xf32>
    %c24_308 = arith.constant 24 : index
    %c0_309 = arith.constant 0 : index
    %565 = vector.load %arg18[%c24_308, %c0_309] : memref<64x8xf32, #tpu.memory_space<vmem>>, vector<8x8xf32>
    tpu.vector_store %arg18[%c24_308, %c0_309], %564 {strides = array<i32>} : memref<64x8xf32, #tpu.memory_space<vmem>>, vector<8x8xf32>,
    %566 = vector.extract_strided_slice %419 {offsets = [8, 0], sizes = [8, 32], strides = [1, 1]} : vector<16x32xf32> to vector<8x32xf32>
    %567 = arith.truncf %566 : vector<8x32xf32> to vector<8x32xbf16>
    %cst_310 = arith.constant dense<0.000000e+00> : vector<8x8xf32>
    %568 = tpu.matmul %567, %422, %cst_310 {dimension_numbers = #tpu.dot_dimension_numbers<[1], [0], [0], [1], [0, 0, 1, 1], [], []>} : vector<8x32xbf16>, vector<32x8xbf16>, vector<8x8xf32> -> vector<8x8xf32>
    %569 = vector.broadcast %457 : vector<1x8xf32> to vector<8x8xf32>
    %570 = arith.addf %568, %569 : vector<8x8xf32>
    %cst_311 = arith.constant dense<0.000000e+00> : vector<8x8xf32>
    %571 = tpu.matmul %567, %434, %cst_311 {dimension_numbers = #tpu.dot_dimension_numbers<[1], [0], [0], [1], [0, 0, 1, 1], [], []>} : vector<8x32xbf16>, vector<32x8xbf16>, vector<8x8xf32> -> vector<8x8xf32>
    %572 = vector.broadcast %465 : vector<1x8xf32> to vector<8x8xf32>
    %573 = arith.addf %571, %572 : vector<8x8xf32>
    %cst_312 = arith.constant dense<0.000000e+00> : vector<8x8xf32>
    %574 = tpu.matmul %567, %446, %cst_312 {dimension_numbers = #tpu.dot_dimension_numbers<[1], [0], [0], [1], [0, 0, 1, 1], [], []>} : vector<8x32xbf16>, vector<32x8xbf16>, vector<8x8xf32> -> vector<8x8xf32>
    %575 = vector.broadcast %473 : vector<1x8xf32> to vector<8x8xf32>
    %576 = arith.addf %574, %575 : vector<8x8xf32>
    %577 = arith.truncf %576 : vector<8x8xf32> to vector<8x8xbf16>
    %578 = arith.truncf %570 : vector<8x8xf32> to vector<8x8xbf16>
    %579 = arith.truncf %573 : vector<8x8xf32> to vector<8x8xbf16>
    %cst_313 = arith.constant dense<0.000000e+00> : vector<8x8xf32>
    %580 = tpu.matmul %578, %579, %cst_313 {dimension_numbers = #tpu.dot_dimension_numbers<[1], [1], [0], [0], [0, 0, 1, 0], [], []>} : vector<8x8xbf16>, vector<8x8xbf16>, vector<8x8xf32> -> vector<8x8xf32>
    %cst_314 = arith.constant 0.353553385 : f32
    %581 = vector.broadcast %cst_314 : f32 to vector<8x8xf32>
    %582 = arith.mulf %580, %581 : vector<8x8xf32>
    %583 = vector.broadcast %51 : vector<1x8xf32> to vector<8x8xf32>
    %584 = arith.addf %582, %583 : vector<8x8xf32>
    %c32_315 = arith.constant 32 : index
    %c0_316 = arith.constant 0 : index
    %585 = vector.load %arg18[%c32_315, %c0_316] : memref<64x8xf32, #tpu.memory_space<vmem>>, vector<8x8xf32>
    tpu.vector_store %arg18[%c32_315, %c0_316], %584 {strides = array<i32>} : memref<64x8xf32, #tpu.memory_space<vmem>>, vector<8x8xf32>,
    %cst_317 = arith.constant dense<0.000000e+00> : vector<8x8xf32>
    %586 = tpu.matmul %567, %425, %cst_317 {dimension_numbers = #tpu.dot_dimension_numbers<[1], [0], [0], [1], [0, 0, 1, 1], [], []>} : vector<8x32xbf16>, vector<32x8xbf16>, vector<8x8xf32> -> vector<8x8xf32>
    %587 = vector.broadcast %459 : vector<1x8xf32> to vector<8x8xf32>
    %588 = arith.addf %586, %587 : vector<8x8xf32>
    %cst_318 = arith.constant dense<0.000000e+00> : vector<8x8xf32>
    %589 = tpu.matmul %567, %437, %cst_318 {dimension_numbers = #tpu.dot_dimension_numbers<[1], [0], [0], [1], [0, 0, 1, 1], [], []>} : vector<8x32xbf16>, vector<32x8xbf16>, vector<8x8xf32> -> vector<8x8xf32>
    %590 = vector.broadcast %467 : vector<1x8xf32> to vector<8x8xf32>
    %591 = arith.addf %589, %590 : vector<8x8xf32>
    %cst_319 = arith.constant dense<0.000000e+00> : vector<8x8xf32>
    %592 = tpu.matmul %567, %449, %cst_319 {dimension_numbers = #tpu.dot_dimension_numbers<[1], [0], [0], [1], [0, 0, 1, 1], [], []>} : vector<8x32xbf16>, vector<32x8xbf16>, vector<8x8xf32> -> vector<8x8xf32>
    %593 = vector.broadcast %475 : vector<1x8xf32> to vector<8x8xf32>
    %594 = arith.addf %592, %593 : vector<8x8xf32>
    %595 = arith.truncf %594 : vector<8x8xf32> to vector<8x8xbf16>
    %596 = arith.truncf %588 : vector<8x8xf32> to vector<8x8xbf16>
    %597 = arith.truncf %591 : vector<8x8xf32> to vector<8x8xbf16>
    %cst_320 = arith.constant dense<0.000000e+00> : vector<8x8xf32>
    %598 = tpu.matmul %596, %597, %cst_320 {dimension_numbers = #tpu.dot_dimension_numbers<[1], [1], [0], [0], [0, 0, 1, 0], [], []>} : vector<8x8xbf16>, vector<8x8xbf16>, vector<8x8xf32> -> vector<8x8xf32>
    %cst_321 = arith.constant 0.353553385 : f32
    %599 = vector.broadcast %cst_321 : f32 to vector<8x8xf32>
    %600 = arith.mulf %598, %599 : vector<8x8xf32>
    %601 = vector.broadcast %51 : vector<1x8xf32> to vector<8x8xf32>
    %602 = arith.addf %600, %601 : vector<8x8xf32>
    %c40_322 = arith.constant 40 : index
    %c0_323 = arith.constant 0 : index
    %603 = vector.load %arg18[%c40_322, %c0_323] : memref<64x8xf32, #tpu.memory_space<vmem>>, vector<8x8xf32>
    tpu.vector_store %arg18[%c40_322, %c0_323], %602 {strides = array<i32>} : memref<64x8xf32, #tpu.memory_space<vmem>>, vector<8x8xf32>,
    %cst_324 = arith.constant dense<0.000000e+00> : vector<8x8xf32>
    %604 = tpu.matmul %567, %428, %cst_324 {dimension_numbers = #tpu.dot_dimension_numbers<[1], [0], [0], [1], [0, 0, 1, 1], [], []>} : vector<8x32xbf16>, vector<32x8xbf16>, vector<8x8xf32> -> vector<8x8xf32>
    %605 = vector.broadcast %461 : vector<1x8xf32> to vector<8x8xf32>
    %606 = arith.addf %604, %605 : vector<8x8xf32>
    %cst_325 = arith.constant dense<0.000000e+00> : vector<8x8xf32>
    %607 = tpu.matmul %567, %440, %cst_325 {dimension_numbers = #tpu.dot_dimension_numbers<[1], [0], [0], [1], [0, 0, 1, 1], [], []>} : vector<8x32xbf16>, vector<32x8xbf16>, vector<8x8xf32> -> vector<8x8xf32>
    %608 = vector.broadcast %469 : vector<1x8xf32> to vector<8x8xf32>
    %609 = arith.addf %607, %608 : vector<8x8xf32>
    %cst_326 = arith.constant dense<0.000000e+00> : vector<8x8xf32>
    %610 = tpu.matmul %567, %452, %cst_326 {dimension_numbers = #tpu.dot_dimension_numbers<[1], [0], [0], [1], [0, 0, 1, 1], [], []>} : vector<8x32xbf16>, vector<32x8xbf16>, vector<8x8xf32> -> vector<8x8xf32>
    %611 = vector.broadcast %477 : vector<1x8xf32> to vector<8x8xf32>
    %612 = arith.addf %610, %611 : vector<8x8xf32>
    %613 = arith.truncf %612 : vector<8x8xf32> to vector<8x8xbf16>
    %614 = arith.truncf %606 : vector<8x8xf32> to vector<8x8xbf16>
    %615 = arith.truncf %609 : vector<8x8xf32> to vector<8x8xbf16>
    %cst_327 = arith.constant dense<0.000000e+00> : vector<8x8xf32>
    %616 = tpu.matmul %614, %615, %cst_327 {dimension_numbers = #tpu.dot_dimension_numbers<[1], [1], [0], [0], [0, 0, 1, 0], [], []>} : vector<8x8xbf16>, vector<8x8xbf16>, vector<8x8xf32> -> vector<8x8xf32>
    %cst_328 = arith.constant 0.353553385 : f32
    %617 = vector.broadcast %cst_328 : f32 to vector<8x8xf32>
    %618 = arith.mulf %616, %617 : vector<8x8xf32>
    %619 = vector.broadcast %51 : vector<1x8xf32> to vector<8x8xf32>
    %620 = arith.addf %618, %619 : vector<8x8xf32>
    %c48_329 = arith.constant 48 : index
    %c0_330 = arith.constant 0 : index
    %621 = vector.load %arg18[%c48_329, %c0_330] : memref<64x8xf32, #tpu.memory_space<vmem>>, vector<8x8xf32>
    tpu.vector_store %arg18[%c48_329, %c0_330], %620 {strides = array<i32>} : memref<64x8xf32, #tpu.memory_space<vmem>>, vector<8x8xf32>,
    %cst_331 = arith.constant dense<0.000000e+00> : vector<8x8xf32>
    %622 = tpu.matmul %567, %431, %cst_331 {dimension_numbers = #tpu.dot_dimension_numbers<[1], [0], [0], [1], [0, 0, 1, 1], [], []>} : vector<8x32xbf16>, vector<32x8xbf16>, vector<8x8xf32> -> vector<8x8xf32>
    %623 = vector.broadcast %463 : vector<1x8xf32> to vector<8x8xf32>
    %624 = arith.addf %622, %623 : vector<8x8xf32>
    %cst_332 = arith.constant dense<0.000000e+00> : vector<8x8xf32>
    %625 = tpu.matmul %567, %443, %cst_332 {dimension_numbers = #tpu.dot_dimension_numbers<[1], [0], [0], [1], [0, 0, 1, 1], [], []>} : vector<8x32xbf16>, vector<32x8xbf16>, vector<8x8xf32> -> vector<8x8xf32>
    %626 = vector.broadcast %471 : vector<1x8xf32> to vector<8x8xf32>
    %627 = arith.addf %625, %626 : vector<8x8xf32>
    %cst_333 = arith.constant dense<0.000000e+00> : vector<8x8xf32>
    %628 = tpu.matmul %567, %455, %cst_333 {dimension_numbers = #tpu.dot_dimension_numbers<[1], [0], [0], [1], [0, 0, 1, 1], [], []>} : vector<8x32xbf16>, vector<32x8xbf16>, vector<8x8xf32> -> vector<8x8xf32>
    %629 = vector.broadcast %479 : vector<1x8xf32> to vector<8x8xf32>
    %630 = arith.addf %628, %629 : vector<8x8xf32>
    %631 = arith.truncf %630 : vector<8x8xf32> to vector<8x8xbf16>
    %632 = arith.truncf %624 : vector<8x8xf32> to vector<8x8xbf16>
    %633 = arith.truncf %627 : vector<8x8xf32> to vector<8x8xbf16>
    %cst_334 = arith.constant dense<0.000000e+00> : vector<8x8xf32>
    %634 = tpu.matmul %632, %633, %cst_334 {dimension_numbers = #tpu.dot_dimension_numbers<[1], [1], [0], [0], [0, 0, 1, 0], [], []>} : vector<8x8xbf16>, vector<8x8xbf16>, vector<8x8xf32> -> vector<8x8xf32>
    %cst_335 = arith.constant 0.353553385 : f32
    %635 = vector.broadcast %cst_335 : f32 to vector<8x8xf32>
    %636 = arith.mulf %634, %635 : vector<8x8xf32>
    %637 = vector.broadcast %51 : vector<1x8xf32> to vector<8x8xf32>
    %638 = arith.addf %636, %637 : vector<8x8xf32>
    %c56_336 = arith.constant 56 : index
    %c0_337 = arith.constant 0 : index
    %639 = vector.load %arg18[%c56_336, %c0_337] : memref<64x8xf32, #tpu.memory_space<vmem>>, vector<8x8xf32>
    tpu.vector_store %arg18[%c56_336, %c0_337], %638 {strides = array<i32>} : memref<64x8xf32, #tpu.memory_space<vmem>>, vector<8x8xf32>,
    %c0_338 = arith.constant 0 : index
    %c0_339 = arith.constant 0 : index
    %640 = vector.load %arg18[%c0_338, %c0_339] : memref<64x8xf32, #tpu.memory_space<vmem>>, vector<64x8xf32>
    %cst_340 = arith.constant dense<0xFF800000> : vector<64xf32>
    %641 = vector.multi_reduction <maximumf>, %640, %cst_340 [1] : vector<64x8xf32> to vector<64xf32>
    %642 = vector.shape_cast %641 : vector<64xf32> to vector<64x1xf32>
    %643 = vector.broadcast %642 : vector<64x1xf32> to vector<64x8xf32>
    %644 = arith.subf %640, %643 : vector<64x8xf32>
    %645 = math.exp %644 : vector<64x8xf32>
    %cst_341 = arith.constant dense<0.000000e+00> : vector<64xf32>
    %646 = vector.multi_reduction <add>, %645, %cst_341 [1] : vector<64x8xf32> to vector<64xf32>
    %647 = vector.shape_cast %646 : vector<64xf32> to vector<64x1xf32>
    %648 = tpu.reciprocal %647 {approx = true} : vector<64x1xf32> -> vector<64x1xf32>
    %649 = vector.broadcast %648 : vector<64x1xf32> to vector<64x8xf32>
    %650 = arith.mulf %645, %649 : vector<64x8xf32>
    %651 = vector.extract_strided_slice %650 {offsets = [0, 0], sizes = [8, 8], strides = [1, 1]} : vector<64x8xf32> to vector<8x8xf32>
    %652 = arith.truncf %651 : vector<8x8xf32> to vector<8x8xbf16>
    %cst_342 = arith.constant dense<0.000000e+00> : vector<8x8xf32>
    %653 = tpu.matmul %652, %503, %cst_342 {dimension_numbers = #tpu.dot_dimension_numbers<[1], [0], [0], [1], [0, 0, 1, 1], [], []>} : vector<8x8xbf16>, vector<8x8xbf16>, vector<8x8xf32> -> vector<8x8xf32>
    %654 = arith.truncf %653 : vector<8x8xf32> to vector<8x8xbf16>
    %cst_343 = arith.constant dense<0.000000e+00> : vector<8x32xf32>
    %655 = tpu.matmul %654, %482, %cst_343 {dimension_numbers = #tpu.dot_dimension_numbers<[1], [0], [0], [1], [0, 0, 1, 1], [], []>} : vector<8x8xbf16>, vector<8x32xbf16>, vector<8x32xf32> -> vector<8x32xf32>
    %656 = vector.extract_strided_slice %650 {offsets = [8, 0], sizes = [8, 8], strides = [1, 1]} : vector<64x8xf32> to vector<8x8xf32>
    %657 = arith.truncf %656 : vector<8x8xf32> to vector<8x8xbf16>
    %cst_344 = arith.constant dense<0.000000e+00> : vector<8x8xf32>
    %658 = tpu.matmul %657, %521, %cst_344 {dimension_numbers = #tpu.dot_dimension_numbers<[1], [0], [0], [1], [0, 0, 1, 1], [], []>} : vector<8x8xbf16>, vector<8x8xbf16>, vector<8x8xf32> -> vector<8x8xf32>
    %659 = arith.truncf %658 : vector<8x8xf32> to vector<8x8xbf16>
    %cst_345 = arith.constant dense<0.000000e+00> : vector<8x32xf32>
    %660 = tpu.matmul %659, %485, %cst_345 {dimension_numbers = #tpu.dot_dimension_numbers<[1], [0], [0], [1], [0, 0, 1, 1], [], []>} : vector<8x8xbf16>, vector<8x32xbf16>, vector<8x32xf32> -> vector<8x32xf32>
    %661 = arith.addf %655, %660 : vector<8x32xf32>
    %662 = vector.extract_strided_slice %650 {offsets = [16, 0], sizes = [8, 8], strides = [1, 1]} : vector<64x8xf32> to vector<8x8xf32>
    %663 = arith.truncf %662 : vector<8x8xf32> to vector<8x8xbf16>
    %cst_346 = arith.constant dense<0.000000e+00> : vector<8x8xf32>
    %664 = tpu.matmul %663, %539, %cst_346 {dimension_numbers = #tpu.dot_dimension_numbers<[1], [0], [0], [1], [0, 0, 1, 1], [], []>} : vector<8x8xbf16>, vector<8x8xbf16>, vector<8x8xf32> -> vector<8x8xf32>
    %665 = arith.truncf %664 : vector<8x8xf32> to vector<8x8xbf16>
    %cst_347 = arith.constant dense<0.000000e+00> : vector<8x32xf32>
    %666 = tpu.matmul %665, %488, %cst_347 {dimension_numbers = #tpu.dot_dimension_numbers<[1], [0], [0], [1], [0, 0, 1, 1], [], []>} : vector<8x8xbf16>, vector<8x32xbf16>, vector<8x32xf32> -> vector<8x32xf32>
    %667 = arith.addf %661, %666 : vector<8x32xf32>
    %668 = vector.extract_strided_slice %650 {offsets = [24, 0], sizes = [8, 8], strides = [1, 1]} : vector<64x8xf32> to vector<8x8xf32>
    %669 = arith.truncf %668 : vector<8x8xf32> to vector<8x8xbf16>
    %cst_348 = arith.constant dense<0.000000e+00> : vector<8x8xf32>
    %670 = tpu.matmul %669, %557, %cst_348 {dimension_numbers = #tpu.dot_dimension_numbers<[1], [0], [0], [1], [0, 0, 1, 1], [], []>} : vector<8x8xbf16>, vector<8x8xbf16>, vector<8x8xf32> -> vector<8x8xf32>
    %671 = arith.truncf %670 : vector<8x8xf32> to vector<8x8xbf16>
    %cst_349 = arith.constant dense<0.000000e+00> : vector<8x32xf32>
    %672 = tpu.matmul %671, %491, %cst_349 {dimension_numbers = #tpu.dot_dimension_numbers<[1], [0], [0], [1], [0, 0, 1, 1], [], []>} : vector<8x8xbf16>, vector<8x32xbf16>, vector<8x32xf32> -> vector<8x32xf32>
    %673 = arith.addf %667, %672 : vector<8x32xf32>
    %c0_350 = arith.constant 0 : index
    %c0_351 = arith.constant 0 : index
    %674 = vector.load %arg19[%c0_350, %c0_351] : memref<16x32xf32, #tpu.memory_space<vmem>>, vector<8x32xf32>
    tpu.vector_store %arg19[%c0_350, %c0_351], %673 {strides = array<i32>} : memref<16x32xf32, #tpu.memory_space<vmem>>, vector<8x32xf32>,
    %675 = vector.extract_strided_slice %650 {offsets = [32, 0], sizes = [8, 8], strides = [1, 1]} : vector<64x8xf32> to vector<8x8xf32>
    %676 = arith.truncf %675 : vector<8x8xf32> to vector<8x8xbf16>
    %cst_352 = arith.constant dense<0.000000e+00> : vector<8x8xf32>
    %677 = tpu.matmul %676, %577, %cst_352 {dimension_numbers = #tpu.dot_dimension_numbers<[1], [0], [0], [1], [0, 0, 1, 1], [], []>} : vector<8x8xbf16>, vector<8x8xbf16>, vector<8x8xf32> -> vector<8x8xf32>
    %678 = arith.truncf %677 : vector<8x8xf32> to vector<8x8xbf16>
    %cst_353 = arith.constant dense<0.000000e+00> : vector<8x32xf32>
    %679 = tpu.matmul %678, %482, %cst_353 {dimension_numbers = #tpu.dot_dimension_numbers<[1], [0], [0], [1], [0, 0, 1, 1], [], []>} : vector<8x8xbf16>, vector<8x32xbf16>, vector<8x32xf32> -> vector<8x32xf32>
    %680 = vector.extract_strided_slice %650 {offsets = [40, 0], sizes = [8, 8], strides = [1, 1]} : vector<64x8xf32> to vector<8x8xf32>
    %681 = arith.truncf %680 : vector<8x8xf32> to vector<8x8xbf16>
    %cst_354 = arith.constant dense<0.000000e+00> : vector<8x8xf32>
    %682 = tpu.matmul %681, %595, %cst_354 {dimension_numbers = #tpu.dot_dimension_numbers<[1], [0], [0], [1], [0, 0, 1, 1], [], []>} : vector<8x8xbf16>, vector<8x8xbf16>, vector<8x8xf32> -> vector<8x8xf32>
    %683 = arith.truncf %682 : vector<8x8xf32> to vector<8x8xbf16>
    %cst_355 = arith.constant dense<0.000000e+00> : vector<8x32xf32>
    %684 = tpu.matmul %683, %485, %cst_355 {dimension_numbers = #tpu.dot_dimension_numbers<[1], [0], [0], [1], [0, 0, 1, 1], [], []>} : vector<8x8xbf16>, vector<8x32xbf16>, vector<8x32xf32> -> vector<8x32xf32>
    %685 = arith.addf %679, %684 : vector<8x32xf32>
    %686 = vector.extract_strided_slice %650 {offsets = [48, 0], sizes = [8, 8], strides = [1, 1]} : vector<64x8xf32> to vector<8x8xf32>
    %687 = arith.truncf %686 : vector<8x8xf32> to vector<8x8xbf16>
    %cst_356 = arith.constant dense<0.000000e+00> : vector<8x8xf32>
    %688 = tpu.matmul %687, %613, %cst_356 {dimension_numbers = #tpu.dot_dimension_numbers<[1], [0], [0], [1], [0, 0, 1, 1], [], []>} : vector<8x8xbf16>, vector<8x8xbf16>, vector<8x8xf32> -> vector<8x8xf32>
    %689 = arith.truncf %688 : vector<8x8xf32> to vector<8x8xbf16>
    %cst_357 = arith.constant dense<0.000000e+00> : vector<8x32xf32>
    %690 = tpu.matmul %689, %488, %cst_357 {dimension_numbers = #tpu.dot_dimension_numbers<[1], [0], [0], [1], [0, 0, 1, 1], [], []>} : vector<8x8xbf16>, vector<8x32xbf16>, vector<8x32xf32> -> vector<8x32xf32>
    %691 = arith.addf %685, %690 : vector<8x32xf32>
    %692 = vector.extract_strided_slice %650 {offsets = [56, 0], sizes = [8, 8], strides = [1, 1]} : vector<64x8xf32> to vector<8x8xf32>
    %693 = arith.truncf %692 : vector<8x8xf32> to vector<8x8xbf16>
    %cst_358 = arith.constant dense<0.000000e+00> : vector<8x8xf32>
    %694 = tpu.matmul %693, %631, %cst_358 {dimension_numbers = #tpu.dot_dimension_numbers<[1], [0], [0], [1], [0, 0, 1, 1], [], []>} : vector<8x8xbf16>, vector<8x8xbf16>, vector<8x8xf32> -> vector<8x8xf32>
    %695 = arith.truncf %694 : vector<8x8xf32> to vector<8x8xbf16>
    %cst_359 = arith.constant dense<0.000000e+00> : vector<8x32xf32>
    %696 = tpu.matmul %695, %491, %cst_359 {dimension_numbers = #tpu.dot_dimension_numbers<[1], [0], [0], [1], [0, 0, 1, 1], [], []>} : vector<8x8xbf16>, vector<8x32xbf16>, vector<8x32xf32> -> vector<8x32xf32>
    %697 = arith.addf %691, %696 : vector<8x32xf32>
    %c8_360 = arith.constant 8 : index
    %c0_361 = arith.constant 0 : index
    %698 = vector.load %arg19[%c8_360, %c0_361] : memref<16x32xf32, #tpu.memory_space<vmem>>, vector<8x32xf32>
    tpu.vector_store %arg19[%c8_360, %c0_361], %697 {strides = array<i32>} : memref<16x32xf32, #tpu.memory_space<vmem>>, vector<8x32xf32>,
    %c0_362 = arith.constant 0 : index
    %c0_363 = arith.constant 0 : index
    %699 = vector.load %arg19[%c0_362, %c0_363] : memref<16x32xf32, #tpu.memory_space<vmem>>, vector<16x32xf32>
    %c6_364 = arith.constant 6 : index
    %c0_365 = arith.constant 0 : index
    %c0_366 = arith.constant 0 : index
    %700 = vector.load %arg8[%c6_364, %c0_365, %c0_366] : memref<12x1x32xf32, #tpu.memory_space<vmem>>, vector<1x1x32xf32>
    %701 = vector.shape_cast %700 : vector<1x1x32xf32> to vector<1x32xf32>
    %702 = vector.broadcast %701 : vector<1x32xf32> to vector<16x32xf32>
    %703 = arith.addf %699, %702 : vector<16x32xf32>
    %704 = arith.addf %703, %419 : vector<16x32xf32>
    %c7_367 = arith.constant 7 : index
    %c0_368 = arith.constant 0 : index
    %c0_369 = arith.constant 0 : index
    %705 = vector.load %arg8[%c7_367, %c0_368, %c0_369] : memref<12x1x32xf32, #tpu.memory_space<vmem>>, vector<1x1x32xf32>
    %706 = vector.shape_cast %705 : vector<1x1x32xf32> to vector<1x32xf32>
    %c8_370 = arith.constant 8 : index
    %c0_371 = arith.constant 0 : index
    %c0_372 = arith.constant 0 : index
    %707 = vector.load %arg8[%c8_370, %c0_371, %c0_372] : memref<12x1x32xf32, #tpu.memory_space<vmem>>, vector<1x1x32xf32>
    %708 = vector.shape_cast %707 : vector<1x1x32xf32> to vector<1x32xf32>
    %cst_373 = arith.constant dense<0.000000e+00> : vector<16xf32>
    %709 = vector.multi_reduction <add>, %704, %cst_373 [1] : vector<16x32xf32> to vector<16xf32>
    %710 = vector.shape_cast %709 : vector<16xf32> to vector<16x1xf32>
    %cst_374 = arith.constant 3.200000e+01 : f32
    %711 = vector.broadcast %cst_374 : f32 to vector<16x1xf32>
    %712 = arith.divf %710, %711 : vector<16x1xf32>
    %713 = vector.broadcast %712 : vector<16x1xf32> to vector<16x32xf32>
    %714 = arith.subf %704, %713 : vector<16x32xf32>
    %715 = vector.broadcast %712 : vector<16x1xf32> to vector<16x32xf32>
    %716 = arith.subf %704, %715 : vector<16x32xf32>
    %717 = arith.mulf %714, %716 : vector<16x32xf32>
    %cst_375 = arith.constant dense<0.000000e+00> : vector<16xf32>
    %718 = vector.multi_reduction <add>, %717, %cst_375 [1] : vector<16x32xf32> to vector<16xf32>
    %719 = vector.shape_cast %718 : vector<16xf32> to vector<16x1xf32>
    %cst_376 = arith.constant 3.200000e+01 : f32
    %720 = vector.broadcast %cst_376 : f32 to vector<16x1xf32>
    %721 = arith.divf %719, %720 : vector<16x1xf32>
    %cst_377 = arith.constant 9.99999996E-13 : f32
    %722 = vector.broadcast %cst_377 : f32 to vector<16x1xf32>
    %723 = arith.addf %721, %722 : vector<16x1xf32>
    %724 = math.rsqrt %723 : vector<16x1xf32>
    %725 = vector.broadcast %712 : vector<16x1xf32> to vector<16x32xf32>
    %726 = arith.subf %704, %725 : vector<16x32xf32>
    %727 = vector.broadcast %724 : vector<16x1xf32> to vector<16x32xf32>
    %728 = arith.mulf %726, %727 : vector<16x32xf32>
    %729 = vector.broadcast %706 : vector<1x32xf32> to vector<16x32xf32>
    %730 = arith.mulf %728, %729 : vector<16x32xf32>
    %731 = vector.broadcast %708 : vector<1x32xf32> to vector<16x32xf32>
    %732 = arith.addf %730, %731 : vector<16x32xf32>
    %733 = arith.truncf %732 : vector<16x32xf32> to vector<16x32xbf16>
    %c1_378 = arith.constant 1 : index
    %c0_379 = arith.constant 0 : index
    %c0_380 = arith.constant 0 : index
    %734 = vector.load %arg9[%c1_378, %c0_379, %c0_380] : memref<2x32x64xf32, #tpu.memory_space<vmem>>, vector<1x32x64xf32>
    %735 = vector.shape_cast %734 : vector<1x32x64xf32> to vector<32x64xf32>
    %736 = arith.truncf %735 : vector<32x64xf32> to vector<32x64xbf16>
    %cst_381 = arith.constant dense<0.000000e+00> : vector<16x64xf32>
    %737 = tpu.matmul %733, %736, %cst_381 {dimension_numbers = #tpu.dot_dimension_numbers<[1], [0], [0], [1], [0, 0, 1, 1], [], []>} : vector<16x32xbf16>, vector<32x64xbf16>, vector<16x64xf32> -> vector<16x64xf32>
    %c1_382 = arith.constant 1 : index
    %c0_383 = arith.constant 0 : index
    %c0_384 = arith.constant 0 : index
    %738 = vector.load %arg10[%c1_382, %c0_383, %c0_384] : memref<2x1x64xf32, #tpu.memory_space<vmem>>, vector<1x1x64xf32>
    %739 = vector.shape_cast %738 : vector<1x1x64xf32> to vector<1x64xf32>
    %740 = vector.broadcast %739 : vector<1x64xf32> to vector<16x64xf32>
    %741 = arith.addf %737, %740 : vector<16x64xf32>
    %cst_385 = arith.constant 5.000000e-01 : f32
    %742 = vector.broadcast %cst_385 : f32 to vector<16x64xf32>
    %743 = arith.mulf %742, %741 : vector<16x64xf32>
    %cst_386 = arith.constant 0.707106769 : f32
    %744 = vector.broadcast %cst_386 : f32 to vector<16x64xf32>
    %745 = arith.mulf %741, %744 : vector<16x64xf32>
    %746 = math.erf %745 : vector<16x64xf32>
    %cst_387 = arith.constant 1.000000e+00 : f32
    %747 = vector.broadcast %cst_387 : f32 to vector<16x64xf32>
    %748 = arith.addf %747, %746 : vector<16x64xf32>
    %749 = arith.mulf %743, %748 : vector<16x64xf32>
    %750 = arith.truncf %749 : vector<16x64xf32> to vector<16x64xbf16>
    %c1_388 = arith.constant 1 : index
    %c0_389 = arith.constant 0 : index
    %c0_390 = arith.constant 0 : index
    %751 = vector.load %arg11[%c1_388, %c0_389, %c0_390] : memref<2x64x32xf32, #tpu.memory_space<vmem>>, vector<1x64x32xf32>
    %752 = vector.shape_cast %751 : vector<1x64x32xf32> to vector<64x32xf32>
    %753 = arith.truncf %752 : vector<64x32xf32> to vector<64x32xbf16>
    %cst_391 = arith.constant dense<0.000000e+00> : vector<16x32xf32>
    %754 = tpu.matmul %750, %753, %cst_391 {dimension_numbers = #tpu.dot_dimension_numbers<[1], [0], [0], [1], [0, 0, 1, 1], [], []>} : vector<16x64xbf16>, vector<64x32xbf16>, vector<16x32xf32> -> vector<16x32xf32>
    %c9_392 = arith.constant 9 : index
    %c0_393 = arith.constant 0 : index
    %c0_394 = arith.constant 0 : index
    %755 = vector.load %arg8[%c9_392, %c0_393, %c0_394] : memref<12x1x32xf32, #tpu.memory_space<vmem>>, vector<1x1x32xf32>
    %756 = vector.shape_cast %755 : vector<1x1x32xf32> to vector<1x32xf32>
    %757 = vector.broadcast %756 : vector<1x32xf32> to vector<16x32xf32>
    %758 = arith.addf %754, %757 : vector<16x32xf32>
    %759 = arith.addf %758, %732 : vector<16x32xf32>
    %c10_395 = arith.constant 10 : index
    %c0_396 = arith.constant 0 : index
    %c0_397 = arith.constant 0 : index
    %760 = vector.load %arg8[%c10_395, %c0_396, %c0_397] : memref<12x1x32xf32, #tpu.memory_space<vmem>>, vector<1x1x32xf32>
    %761 = vector.shape_cast %760 : vector<1x1x32xf32> to vector<1x32xf32>
    %c11_398 = arith.constant 11 : index
    %c0_399 = arith.constant 0 : index
    %c0_400 = arith.constant 0 : index
    %762 = vector.load %arg8[%c11_398, %c0_399, %c0_400] : memref<12x1x32xf32, #tpu.memory_space<vmem>>, vector<1x1x32xf32>
    %763 = vector.shape_cast %762 : vector<1x1x32xf32> to vector<1x32xf32>
    %cst_401 = arith.constant dense<0.000000e+00> : vector<16xf32>
    %764 = vector.multi_reduction <add>, %759, %cst_401 [1] : vector<16x32xf32> to vector<16xf32>
    %765 = vector.shape_cast %764 : vector<16xf32> to vector<16x1xf32>
    %cst_402 = arith.constant 3.200000e+01 : f32
    %766 = vector.broadcast %cst_402 : f32 to vector<16x1xf32>
    %767 = arith.divf %765, %766 : vector<16x1xf32>
    %768 = vector.broadcast %767 : vector<16x1xf32> to vector<16x32xf32>
    %769 = arith.subf %759, %768 : vector<16x32xf32>
    %770 = vector.broadcast %767 : vector<16x1xf32> to vector<16x32xf32>
    %771 = arith.subf %759, %770 : vector<16x32xf32>
    %772 = arith.mulf %769, %771 : vector<16x32xf32>
    %cst_403 = arith.constant dense<0.000000e+00> : vector<16xf32>
    %773 = vector.multi_reduction <add>, %772, %cst_403 [1] : vector<16x32xf32> to vector<16xf32>
    %774 = vector.shape_cast %773 : vector<16xf32> to vector<16x1xf32>
    %cst_404 = arith.constant 3.200000e+01 : f32
    %775 = vector.broadcast %cst_404 : f32 to vector<16x1xf32>
    %776 = arith.divf %774, %775 : vector<16x1xf32>
    %cst_405 = arith.constant 9.99999996E-13 : f32
    %777 = vector.broadcast %cst_405 : f32 to vector<16x1xf32>
    %778 = arith.addf %776, %777 : vector<16x1xf32>
    %779 = math.rsqrt %778 : vector<16x1xf32>
    %780 = vector.broadcast %767 : vector<16x1xf32> to vector<16x32xf32>
    %781 = arith.subf %759, %780 : vector<16x32xf32>
    %782 = vector.broadcast %779 : vector<16x1xf32> to vector<16x32xf32>
    %783 = arith.mulf %781, %782 : vector<16x32xf32>
    %784 = vector.broadcast %761 : vector<1x32xf32> to vector<16x32xf32>
    %785 = arith.mulf %783, %784 : vector<16x32xf32>
    %786 = vector.broadcast %763 : vector<1x32xf32> to vector<16x32xf32>
    %787 = arith.addf %785, %786 : vector<16x32xf32>
    %c0_406 = arith.constant 0 : index
    %c0_407 = arith.constant 0 : index
    %788 = vector.load %arg19[%c0_406, %c0_407] : memref<16x32xf32, #tpu.memory_space<vmem>>, vector<16x32xf32>
    tpu.vector_store %arg19[%c0_406, %c0_407], %787 {strides = array<i32>} : memref<16x32xf32, #tpu.memory_space<vmem>>, vector<16x32xf32>,
    %c0_408 = arith.constant 0 : index
    %c0_409 = arith.constant 0 : index
    %789 = tpu.strided_load %arg19[%c0_408, %c0_409] {strides = array<i32: 8, 1>} : memref<16x32xf32, #tpu.memory_space<vmem>>, vector<2x32xf32>
    %790 = arith.truncf %789 : vector<2x32xf32> to vector<2x32xbf16>
    %c0_410 = arith.constant 0 : index
    %c0_411 = arith.constant 0 : index
    %791 = vector.load %arg13[%c0_410, %c0_411] : memref<32x32xf32, #tpu.memory_space<vmem>>, vector<32x32xf32>
    %792 = arith.truncf %791 : vector<32x32xf32> to vector<32x32xbf16>
    %cst_412 = arith.constant dense<0.000000e+00> : vector<2x32xf32>
    %793 = tpu.matmul %790, %792, %cst_412 {dimension_numbers = #tpu.dot_dimension_numbers<[1], [0], [0], [1], [0, 0, 1, 1], [], []>} : vector<2x32xbf16>, vector<32x32xbf16>, vector<2x32xf32> -> vector<2x32xf32>
    %c2_413 = arith.constant 2 : index
    %c0_414 = arith.constant 0 : index
    %c0_415 = arith.constant 0 : index
    %794 = vector.load %arg12[%c2_413, %c0_414, %c0_415] : memref<3x1x32xf32, #tpu.memory_space<vmem>>, vector<1x1x32xf32>
    %795 = vector.shape_cast %794 : vector<1x1x32xf32> to vector<1x32xf32>
    %796 = vector.broadcast %795 : vector<1x32xf32> to vector<2x32xf32>
    %797 = arith.addf %793, %796 : vector<2x32xf32>
    %798 = math.tanh %797 : vector<2x32xf32>
    %799 = arith.truncf %798 : vector<2x32xf32> to vector<2x32xbf16>
    %c0_416 = arith.constant 0 : index
    %c0_417 = arith.constant 0 : index
    %800 = vector.load %arg14[%c0_416, %c0_417] : memref<32x3xf32, #tpu.memory_space<vmem>>, vector<32x3xf32>
    %801 = arith.truncf %800 : vector<32x3xf32> to vector<32x3xbf16>
    %cst_418 = arith.constant dense<0.000000e+00> : vector<2x3xf32>
    %802 = tpu.matmul %799, %801, %cst_418 {dimension_numbers = #tpu.dot_dimension_numbers<[1], [0], [0], [1], [0, 0, 1, 1], [], []>} : vector<2x32xbf16>, vector<32x3xbf16>, vector<2x3xf32> -> vector<2x3xf32>
    %c0_419 = arith.constant 0 : index
    %c0_420 = arith.constant 0 : index
    %803 = vector.load %arg15[%c0_419, %c0_420] : memref<1x3xf32, #tpu.memory_space<vmem>>, vector<1x3xf32>
    %804 = vector.broadcast %803 : vector<1x3xf32> to vector<2x3xf32>
    %805 = arith.addf %802, %804 : vector<2x3xf32>
    %806 = arith.negf %805 : vector<2x3xf32>
    %807 = math.exp %806 : vector<2x3xf32>
    %cst_421 = arith.constant 1.000000e+00 : f32
    %808 = vector.broadcast %cst_421 : f32 to vector<2x3xf32>
    %809 = arith.addf %808, %807 : vector<2x3xf32>
    %810 = arith.divf %808, %809 : vector<2x3xf32>
    %c0_422 = arith.constant 0 : index
    %c0_423 = arith.constant 0 : index
    %811 = vector.load %arg16[%c0_422, %c0_423] : memref<2x3xf32, #tpu.memory_space<vmem>>, vector<2x3xf32>
    tpu.vector_store %arg16[%c0_422, %c0_423], %810 {strides = array<i32>} : memref<2x3xf32, #tpu.memory_space<vmem>>, vector<2x3xf32>,
    %c0_424 = arith.constant 0 : index
    %c0_425 = arith.constant 0 : index
    %812 = vector.load %arg3[%c0_424, %c0_425] : memref<2x3xf32, #tpu.memory_space<vmem>>, vector<2x3xf32>
    %813 = math.log %810 : vector<2x3xf32>
    %cst_426 = arith.constant -1.000000e+02 : f32
    %814 = vector.broadcast %cst_426 : f32 to vector<2x3xf32>
    %815 = arith.maximumf %813, %814 : vector<2x3xf32>
    %cst_427 = arith.constant 1.000000e+00 : f32
    %816 = vector.broadcast %cst_427 : f32 to vector<2x3xf32>
    %817 = arith.subf %816, %810 : vector<2x3xf32>
    %818 = math.log %817 : vector<2x3xf32>
    %cst_428 = arith.constant -1.000000e+02 : f32
    %819 = vector.broadcast %cst_428 : f32 to vector<2x3xf32>
    %820 = arith.maximumf %818, %819 : vector<2x3xf32>
    %821 = arith.mulf %812, %815 : vector<2x3xf32>
    %cst_429 = arith.constant 1.000000e+00 : f32
    %822 = vector.broadcast %cst_429 : f32 to vector<2x3xf32>
    %823 = arith.subf %822, %812 : vector<2x3xf32>
    %824 = arith.mulf %823, %820 : vector<2x3xf32>
    %825 = arith.addf %821, %824 : vector<2x3xf32>
    %cst_430 = arith.constant 0.000000e+00 : f32
    %826 = vector.broadcast %cst_430 : f32 to vector<2x3xf32>
    %827 = arith.subf %826, %825 : vector<2x3xf32>
    %828 = vector.shape_cast %827 : vector<2x3xf32> to vector<1x2x3xf32>
    %cst_431 = arith.constant dense<0.000000e+00> : vector<1xf32>
    %829 = vector.multi_reduction <add>, %828, %cst_431 [1, 2] : vector<1x2x3xf32> to vector<1xf32>
    %830 = vector.shape_cast %829 : vector<1xf32> to vector<1x1x1xf32>
    %831 = vector.extract %830[0, 0, 0] : f32 from vector<1x1x1xf32>
    %cst_432 = arith.constant 6.000000e+00 : f32
    %832 = arith.divf %831, %cst_432 : f32
    %833 = vector.broadcast %832 : f32 to vector<1x1xf32>
    %c0_433 = arith.constant 0 : index
    %c0_434 = arith.constant 0 : index
    %834 = vector.load %arg17[%c0_433, %c0_434] : memref<1x1xf32, #tpu.memory_space<vmem>>, vector<1x1xf32>
    tpu.vector_store %arg17[%c0_433, %c0_434], %833 {strides = array<i32>} : memref<1x1xf32, #tpu.memory_space<vmem>>, vector<1x1xf32>,
    return
  }
  func.func @transform_0(%arg0: i32) -> (i32, i32) {
    %c0_i32 = arith.constant 0 : i32
    %c0_i32_0 = arith.constant 0 : i32
    %c0_i32_1 = arith.constant 0 : i32
    return %c0_i32, %c0_i32_0 : i32, i32
  }
  func.func @transform_1(%arg0: i32) -> (i32, i32) {
    %c0_i32 = arith.constant 0 : i32
    %c0_i32_0 = arith.constant 0 : i32
    %c0_i32_1 = arith.constant 0 : i32
    return %c0_i32, %c0_i32_0 : i32, i32
  }
  func.func @transform_2(%arg0: i32) -> (i32, i32) {
    %c0_i32 = arith.constant 0 : i32
    %c0_i32_0 = arith.constant 0 : i32
    %c0_i32_1 = arith.constant 0 : i32
    return %c0_i32, %c0_i32_0 : i32, i32
  }
  func.func @transform_3(%arg0: i32) -> (i32, i32) {
    %c0_i32 = arith.constant 0 : i32
    %c0_i32_0 = arith.constant 0 : i32
    %c0_i32_1 = arith.constant 0 : i32
    return %c0_i32, %c0_i32_0 : i32, i32
  }
  func.func @transform_4(%arg0: i32) -> (i32, i32, i32) {
    %c0_i32 = arith.constant 0 : i32
    %c0_i32_0 = arith.constant 0 : i32
    %c0_i32_1 = arith.constant 0 : i32
    %c0_i32_2 = arith.constant 0 : i32
    return %c0_i32, %c0_i32_0, %c0_i32_1 : i32, i32, i32
  }
  func.func @transform_5(%arg0: i32) -> (i32, i32, i32) {
    %c0_i32 = arith.constant 0 : i32
    %c0_i32_0 = arith.constant 0 : i32
    %c0_i32_1 = arith.constant 0 : i32
    %c0_i32_2 = arith.constant 0 : i32
    return %c0_i32, %c0_i32_0, %c0_i32_1 : i32, i32, i32
  }
  func.func @transform_6(%arg0: i32) -> (i32, i32, i32) {
    %c0_i32 = arith.constant 0 : i32
    %c0_i32_0 = arith.constant 0 : i32
    %c0_i32_1 = arith.constant 0 : i32
    %c0_i32_2 = arith.constant 0 : i32
    return %c0_i32, %c0_i32_0, %c0_i32_1 : i32, i32, i32
  }
  func.func @transform_7(%arg0: i32) -> (i32, i32, i32) {
    %c0_i32 = arith.constant 0 : i32
    %c0_i32_0 = arith.constant 0 : i32
    %c0_i32_1 = arith.constant 0 : i32
    %c0_i32_2 = arith.constant 0 : i32
    return %c0_i32, %c0_i32_0, %c0_i32_1 : i32, i32, i32
  }
  func.func @transform_8(%arg0: i32) -> (i32, i32, i32) {
    %c0_i32 = arith.constant 0 : i32
    %c0_i32_0 = arith.constant 0 : i32
    %c0_i32_1 = arith.constant 0 : i32
    %c0_i32_2 = arith.constant 0 : i32
    return %c0_i32, %c0_i32_0, %c0_i32_1 : i32, i32, i32
  }
  func.func @transform_9(%arg0: i32) -> (i32, i32, i32) {
    %c0_i32 = arith.constant 0 : i32
    %c0_i32_0 = arith.constant 0 : i32
    %c0_i32_1 = arith.constant 0 : i32
    %c0_i32_2 = arith.constant 0 : i32
    return %c0_i32, %c0_i32_0, %c0_i32_1 : i32, i32, i32
  }
  func.func @transform_10(%arg0: i32) -> (i32, i32, i32) {
    %c0_i32 = arith.constant 0 : i32
    %c0_i32_0 = arith.constant 0 : i32
    %c0_i32_1 = arith.constant 0 : i32
    %c0_i32_2 = arith.constant 0 : i32
    return %c0_i32, %c0_i32_0, %c0_i32_1 : i32, i32, i32
  }
  func.func @transform_11(%arg0: i32) -> (i32, i32, i32) {
    %c0_i32 = arith.constant 0 : i32
    %c0_i32_0 = arith.constant 0 : i32
    %c0_i32_1 = arith.constant 0 : i32
    %c0_i32_2 = arith.constant 0 : i32
    return %c0_i32, %c0_i32_0, %c0_i32_1 : i32, i32, i32
  }
  func.func @transform_12(%arg0: i32) -> (i32, i32) {
    %c0_i32 = arith.constant 0 : i32
    %c0_i32_0 = arith.constant 0 : i32
    %c0_i32_1 = arith.constant 0 : i32
    return %c0_i32, %c0_i32_0 : i32, i32
  }
  func.func @transform_13(%arg0: i32) -> (i32, i32) {
    %c0_i32 = arith.constant 0 : i32
    %c0_i32_0 = arith.constant 0 : i32
    %c0_i32_1 = arith.constant 0 : i32
    return %c0_i32, %c0_i32_0 : i32, i32
  }
  func.func @transform_14(%arg0: i32) -> (i32, i32) {
    %c0_i32 = arith.constant 0 : i32
    %c0_i32_0 = arith.constant 0 : i32
    %c0_i32_1 = arith.constant 0 : i32
    return %c0_i32, %c0_i32_0 : i32, i32
  }
  func.func @transform_15(%arg0: i32) -> (i32, i32) {
    %c0_i32 = arith.constant 0 : i32
    %c0_i32_0 = arith.constant 0 : i32
    %c0_i32_1 = arith.constant 0 : i32
    return %c0_i32, %c0_i32_0 : i32, i32
  }
  func.func @transform_16(%arg0: i32) -> (i32, i32) {
    %c0_i32 = arith.constant 0 : i32
    %c0_i32_0 = arith.constant 0 : i32
    %c0_i32_1 = arith.constant 0 : i32
    return %c0_i32, %c0_i32_0 : i32, i32
  }
}

</mosaic_0001>

<bundles_post_ra>
// kernel: tpu_custom_call.1
= control target key start
LH: loop header
LB: loop body
LE: loop exit
PB: predicated region body
PF: predicated region fallthrough
CT: control target
= control target key end

     0   :  { %s4954_s0 = inlined_call_operand.vmem [shape: s32[16,3], index: 0, kind: input, shape index: {}]   ;;  %s4955_s1 = inlined_call_operand.vmem [shape: f32[2,8], index: 1, kind: input, shape index: {}]   ;;  %s4956_s2 = inlined_call_operand.vmem [shape: f32[2,3], index: 2, kind: input, shape index: {}]   ;;  %s4957_s3 = inlined_call_operand.vmem [shape: f32[118,32], index: 3, kind: input, shape index: {}]   ;;  %s4958_s4 = inlined_call_operand.vmem [shape: f32[24,32,8], index: 4, kind: input, shape index: {}]   ;;  %s4959_s5 = inlined_call_operand.vmem [shape: f32[24,1,8], index: 5, kind: input, shape index: {}]   ;;  %s4960_s6 = inlined_call_operand.vmem [shape: f32[8,8,32], index: 6, kind: input, shape index: {}]   ;;  %s4961_s7 = inlined_call_operand.vmem [shape: f32[12,1,32], index: 7, kind: input, shape index: {}]   ;;  %s4962_s8 = inlined_call_operand.vmem [shape: f32[2,32,64], index: 8, kind: input, shape index: {}]   ;;  %s4963_s9 = inlined_call_operand.vmem [shape: f32[2,1,64], index: 9, kind: input, shape index: {}]   ;;  %s4964_s10 = inlined_call_operand.vmem [shape: f32[2,64,32], index: 10, kind: input, shape index: {}]   ;;  %s4965_s11 = inlined_call_operand.vmem [shape: f32[3,1,32], index: 11, kind: input, shape index: {}]   ;;  %s4966_s12 = inlined_call_operand.vmem [shape: f32[32,32], index: 12, kind: input, shape index: {}]   ;;  %s4967_s13 = inlined_call_operand.vmem [shape: f32[32,3], index: 13, kind: input, shape index: {}]   ;;  %s4968_s14 = inlined_call_operand.vmem [shape: f32[1,3], index: 14, kind: input, shape index: {}]   ;;  %s4969_s15 = inlined_call_operand.hbm [shape: f32[2,3], index: 15, kind: output, shape index: {0}]   ;;  %s4970_s16 = inlined_call_operand.hbm [shape: f32[1,1], index: 16, kind: output, shape index: {1}]  }
   0x1   :  { %4972 = sst [smem:[#allocation10_spill]] %s4954_s0 }
   0x2   :  { %22 = vsyncpa [#allocation5], 0  ;;  %s4973_s23 = sld [smem:[#allocation10_spill]]  ;;  %vm113_vm0 = vcmask 1045504   ;;  %v3571_v1 = vmov 0   ;;  %v3572_v2 = vmov 2  }
   0x3   :  { %3364 = vset.pattern.permute.xlu0 %v3571_v1  ;;  %3366 = vset.pattern.permute.xlu1 %v3572_v2  ;;  %v105_v4 = vld [vmem:[%s4957_s3 + $0x70] sm:$0x3f]  ;;  %v104_v5 = vld [vmem:[%s4957_s3 + $0x68] sm:$0xff]  ;;  %v103_v6 = vld [vmem:[%s4957_s3 + $0x60] sm:$0xff]  ;;  %v3573_v10 = vmov 1  }
   0x4   :  { %3367 = vset.pattern.permute.xlu2 %v3571_v1  ;;  %3093 = vmatpush.msk.msra.mxu0 %vm113_vm0, %v105_v4  ;;  %v102_v7 = vld [vmem:[%s4957_s3 + $0x58] sm:$0xff]  ;;  %v101_v8 = vld [vmem:[%s4957_s3 + $0x50] sm:$0xff]  ;;  %v100_v9 = vld [vmem:[%s4957_s3 + $0x48] sm:$0xff] }
   0x5   :  { %v99_v11 = vld [vmem:[%s4957_s3 + $0x40] sm:$0xff]  ;;  %v98_v12 = vld [vmem:[%s4957_s3 + $0x38] sm:$0xff] }
   0x6   :  { %119 = vmatpush.msra.mxu0 %v104_v5 }
   0x8   :  { %v55_v0 = vld [vmem:[%s4973_s23] sm:$0xff]  ;;  %v56_v3 = vld [vmem:[%s4973_s23 + $0x8] sm:$0xff]  ;;  %120 = vmatpush.msra.mxu0 %v103_v6 }
   0x9   :  { %60 = vperm.xlu0 %3364, %v55_v0   ;;  %78 = vperm.xlu1 %3366, %v55_v0  }
   0xa   :  { %63 = vperm.xlu2 %3367, %v56_v3   ;;  %121 = vmatpush.msra.mxu0 %v102_v7 }
   0xc   :  { %122 = vmatpush.msra.mxu0 %v101_v8 }
   0xe   :  { %123 = vmatpush.msra.mxu0 %v100_v9 }
  0x10   :  { %124 = vmatpush.msra.mxu0 %v99_v11 }
  0x11   :  { %3365 = vset.pattern.permute.xlu0 %v3573_v10 }
  0x12   :  { %68 = vperm.xlu0 %3365, %v55_v0   ;;  %3368 = vset.pattern.permute.xlu2 %v3573_v10 }
  0x13   :  { %71 = vperm.xlu2 %3368, %v56_v3   ;;  %125 = vmatpush.msra.mxu0 %v98_v12 }
  0x14   :  { %23 = vsyncpa [#allocation7], 0  ;;  %v97_v13 = vld [vmem:[%s4957_s3 + $0x30] sm:$0xff]  ;;  %v96_v14 = vld [vmem:[%s4957_s3 + $0x28] sm:$0xff]  ;;  %v57_v23 = vlaneseq  ;;  %vm106_vm7 = vcmask 965632   ;;  %v3574_v28 = vmov 0.0  }
  0x15   :  { %126 = vmatpush.msra.mxu0 %v97_v13  ;;  %v95_v15 = vld [vmem:[%s4957_s3 + $0x20] sm:$0xff]  ;;  %v94_v16 = vld [vmem:[%s4957_s3 + $0x18] sm:$0xff]  ;;  %v93_v17 = vld [vmem:[%s4957_s3 + $0x10] sm:$0xff]  ;;  %vm143_vm12 = vcmask 261120   ;;  %v3575_v35 = vmov 32.0   ;;  %s3066_s18 = sshll.u32 %s4969_s15, 4  ;;  %s3067_s18 = int_to_ptr.hbm [resolvable:$true] %s3066_s18 }
  0x16   :  { %v92_v18 = vld [vmem:[%s4957_s3 + $0x8] sm:$0xff]  ;;  %v91_v19 = vld [vmem:[%s4957_s3] sm:$0xff]  ;;  %v58_v24 = vand.u32 127, %v57_v23  ;;  %3413 = vrcp.f32 %v3575_v35  ;;  %v210_v52 = vld [vmem:[%s4958_s4 + $0x10] sm:$0xff] }
  0x17   :  { %127 = vmatpush.msra.mxu0 %v96_v14  ;;  %v211_v53 = vld [vmem:[%s4958_s4 + $0x18] sm:$0xff]  ;;  %v3112_v54 = vld [vmem:[%s4958_s4 + $0x90] sm:$0xff]  ;;  %v208_v0 = vld [vmem:[%s4958_s4] sm:$0xff] }
  0x18   :  { %v3740_v55 = vpack.c.bf16 %v211_v53, %v210_v52  ;;  %v3113_v56 = vld [vmem:[%s4958_s4 + $0x98] sm:$0xff]  ;;  %v3128_v57 = vld [vmem:[%s4958_s4 + $0x110] sm:$0xff]  ;;  %v209_v1 = vld [vmem:[%s4958_s4 + $0x8] sm:$0xff] }
  0x19   :  { %128 = vmatpush.msra.mxu0 %v95_v15  ;;  %v3129_v58 = vld [vmem:[%s4958_s4 + $0x118] sm:$0xff]  ;;  %v3751_v59 = vpack.c.bf16 %v3113_v56, %v3112_v54  ;;  %v3120_v61 = vld [vmem:[%s4958_s4 + $0xd0] sm:$0xff]  ;;  %v3111_v4 = vld [vmem:[%s4958_s4 + $0x88] sm:$0xff] }
  0x1a   :  { %3370 = vset.pattern.permute.xlu0 %v3572_v2  ;;  %v3753_v60 = vpack.c.bf16 %v3129_v58, %v3128_v57  ;;  %v3121_v62 = vld [vmem:[%s4958_s4 + $0xd8] sm:$0xff]  ;;  %338 = vmatpush.bf16.msra.mxu1 %v3740_v55  ;;  %v3126_v5 = vld [vmem:[%s4958_s4 + $0x100] sm:$0xff]  ;;  %v3127_v6 = vld [vmem:[%s4958_s4 + $0x108] sm:$0xff] }
  0x1b   :  { %3369 = vset.pattern.permute.xlu2 %v3572_v2  ;;  %129 = vmatpush.msra.mxu0 %v94_v16  ;;  %v3762_v63 = vpack.c.bf16 %v3121_v62, %v3120_v61  ;;  %v3110_v2 = vld [vmem:[%s4958_s4 + $0x80] sm:$0xff]  ;;  %v3789_v8 = vpack.c.bf16 %v3127_v6, %v3126_v5  ;;  %v3119_v10 = vld [vmem:[%s4958_s4 + $0xc8] sm:$0xff]  ;;  %v3100_v15 = vld [vmem:[%s4958_s4 + $0x30] sm:$0xff] }
  0x1c   :  { %81 = vperm.xlu2 %3369, %v56_v3   ;;  %v3414_v36 = vpop.eup %3413  ;;  %354 = vmatpush.bf16.msra.mxu2 %v3751_v59  ;;  %v3776_v3 = vpack.c.bf16 %v209_v1, %v208_v0  ;;  %v3787_v7 = vpack.c.bf16 %v3111_v4, %v3110_v2  ;;  %v3118_v9 = vld [vmem:[%s4958_s4 + $0xc0] sm:$0xff]  ;;  %v3101_v16 = vld [vmem:[%s4958_s4 + $0x38] sm:$0xff]  ;;  %v3103_v58 = vld [vmem:[%s4958_s4 + $0x48] sm:$0xff] }
  0x1d   :  { %130 = vmatpush.msra.mxu0 %v93_v17  ;;  %v151_v37 = vmul.f32 32.0, %v3414_v36  ;;  %vm155_vm13 = vweird.f32 %v3414_v36  ;;  %370 = vmatpush.bf16.msra.mxu3 %v3753_v60  ;;  %v3798_v11 = vpack.c.bf16 %v3119_v10, %v3118_v9  ;;  %v3116_v17 = vld [vmem:[%s4958_s4 + $0xb0] sm:$0xff]  ;;  %v3105_v52 = vld [vmem:[%s4958_s4 + $0x58] sm:$0xff] }
  0x1e   :  { %339 = vmatpush.bf16.msra.mxu1 %v3776_v3  ;;  %v3108_v2 = vld [vmem:[%s4958_s4 + $0x70] sm:$0xff]  ;;  %v3109_v4 = vld [vmem:[%s4958_s4 + $0x78] sm:$0xff] }
  0x1f   :  { %131 = vmatpush.msra.mxu0 %v92_v18  ;;  %v152_v38 = vsub.f32 1.0, %v151_v37  ;;  %v3813_v18 = vpack.c.bf16 %v3101_v16, %v3100_v15  ;;  %v234_v6 = vpack.c.bf16 %v3109_v4, %v3108_v2  ;;  %v3132_v16 = vld [vmem:[%s4958_s4 + $0x130] sm:$0xff]  ;;  %v3141_v2 = vld [vmem:[%s4958_s4 + $0x178] sm:$0xff] }
  0x20   :  { %355 = vmatpush.bf16.msra.mxu2 %v3787_v7 }
  0x21   :  { %132 = vmatpush.msra.mxu0 %v91_v19  ;;  %v153_v39 = vmul.f32 %v3414_v36, %v152_v38  ;;  %371 = vmatpush.bf16.msra.mxu3 %v3789_v8  ;;  %v3117_v19 = vld [vmem:[%s4958_s4 + $0xb8] sm:$0xff] }
  0x23   :  { %v154_v40 = vadd.f32 %v3414_v36, %v153_v39  ;;  %502 = vmatpush.bf16.msrb.mxu0 %v3762_v63 }
  0x24   :  { %413 = vmatpush.bf16.msrb.mxu2 %v3813_v18 }
  0x25   :  { %v3717_v41 = vsel %vm155_vm13, %v3414_v36, %v154_v40 }
  0x27   :  { %503 = vmatpush.bf16.msrb.mxu0 %v3798_v11 }
  0x64   :  { %v64_v20 = vpop.permute.xlu2 %63 }
  0x65   :  { %vm66_vm1 = vcmp.eq.s32.totalorder %v58_v24, %v64_v20  ;;  %v3124_v20 = vld [vmem:[%s4958_s4 + $0xf0] sm:$0xff] }
  0x6d   :  { %v72_v22 = vpop.permute.xlu2 %71 }
  0x6e   :  { %vm74_vm5 = vcmp.eq.s32.totalorder %v58_v24, %v72_v22  ;;  %v3824_v22 = vpack.c.bf16 %v3117_v19, %v3116_v17  ;;  %v3133_v17 = vld [vmem:[%s4958_s4 + $0x138] sm:$0xff] }
  0x6f   :  { %vm76_vm9 = vmor %vm66_vm1, %vm74_vm5  ;;  %vm380_vm5 = vcmask 64512  }
  0x70   :  { %429 = vmatpush.bf16.msrb.mxu3 %v3824_v22 }
  0x76   :  { %v82_v27 = vpop.permute.xlu2 %81 }
  0x77   :  { %vm84_vm10 = vcmp.eq.s32.totalorder %v58_v24, %v82_v27 }
  0x78   :  { %vm86_vm11 = vmor %vm76_vm9, %vm84_vm10 }
  0x79   :  { %v3092_v30 = vsel %vm86_vm11, 1.0, %v3574_v28 }
  0x7b   :  { %v61_v21 = vpop.permute.xlu0 %60  ;;  %v79_v25 = vpop.permute.xlu1 %78 }
  0x7c   :  { %vm83_vm2 = vcmp.eq.s32.totalorder %v58_v24, %v79_v25  ;;  %vm65_vm3 = vcmp.eq.s32.totalorder %v58_v24, %v61_v21  ;;  %v3125_v21 = vld [vmem:[%s4958_s4 + $0xf8] sm:$0xff]  ;;  %v3099_v25 = vld [vmem:[%s4958_s4 + $0x28] sm:$0xff] }
  0x7d   :  { %v3826_v23 = vpack.c.bf16 %v3125_v21, %v3124_v20 }
  0x84   :  { %v69_v26 = vpop.permute.xlu0 %68 }
  0x85   :  { %vm73_vm4 = vcmp.eq.s32.totalorder %v58_v24, %v69_v26  ;;  %v3098_v24 = vld [vmem:[%s4958_s4 + $0x20] sm:$0xff] }
  0x86   :  { %vm75_vm6 = vmor %vm65_vm3, %vm73_vm4  ;;  %v3114_v26 = vld [vmem:[%s4958_s4 + $0xa0] sm:$0xff]  ;;  %vm984_vm4 = vcmask 1043456  }
  0x87   :  { %vm85_vm8 = vmor %vm75_vm6, %vm83_vm2 }
  0x88   :  { %v3091_v29 = vsel %vm85_vm8, 1.0, %v3574_v28  ;;  %v3838_v28 = vpack.c.bf16 %v3099_v25, %v3098_v24  ;;  %v3968_v25 = vpack.c.bf16 %v3133_v17, %v3132_v16  ;;  %v3380_v17 = vld [vmem:[%s4959_s5 + $0x2] ss:$0 sm:$0xff] }
  0x89   :  { %3094 = vmatmul.msk.f32.vlgmr.msra.gmra.mxu0 %vm106_vm7, %v3091_v29  ;;  %v3115_v29 = vld [vmem:[%s4958_s4 + $0xa8] sm:$0xff] }
  0x8a   :  { %575 = vmatpush.bf16.msra.mxu0 %v3826_v23  ;;  %414 = vmatpush.bf16.msrb.mxu2 %v3838_v28 }
  0x91   :  { %3095 = vmatmul.msk.f32.gmra.mxu0 %vm106_vm7, %v3092_v30  ;;  %v3122_v30 = vld [vmem:[%s4958_s4 + $0xe0] sm:$0xff] }
 0x106   :  { %v134_v31 = vpop.f32.mrf.mxu0 }
 0x107   :  { %v144_v32 = vsel %vm143_vm12, %v134_v31, 0.0 }
 0x108   :  { %145 = vadd.xlane.f32.xlu1 %v144_v32  ;;  %v247_v32 = vpack.c.bf16 %v3115_v29, %v3114_v26 }
 0x10a   :  { %430 = vmatpush.bf16.msrb.mxu3 %v247_v32 }
 0x10e   :  { %v137_v33 = vpop.f32.mrf.mxu0 }
 0x10f   :  { %v147_v34 = vsel %vm143_vm12, %v137_v33, 0.0 }
 0x110   :  { %148 = vadd.xlane.f32.xlu2 %v147_v34 }
 0x17b   :  { %v146_v42 = vpop.xlane.xlu1 %145 }
 0x17c   :  { %v157_v43 = vmul.f32 %v3717_v41, %v146_v42 }
 0x17e   :  { %v3720_v44 = vsub.f32 %v134_v31, %v157_v43  ;;  %v3123_v31 = vld [vmem:[%s4958_s4 + $0xe8] sm:$0xff]  ;;  %v3371_v43 = vld [vmem:[%s4965_s11] ss:$0 sm:$0xff] }
 0x180   :  { %v161_v45 = vmul.f32 %v3720_v44, %v3720_v44 }
 0x182   :  { %v163_v46 = vsel %vm143_vm12, %v161_v45, 0.0 }
 0x183   :  { %164 = vadd.xlane.f32.xlu0 %v163_v46  ;;  %v149_v47 = vpop.xlane.xlu2 %148  ;;  %v3372_v46 = vld [vmem:[%s4965_s11 + $0x1] ss:$0 sm:$0xff] }
 0x184   :  { %v158_v48 = vmul.f32 %v3717_v41, %v149_v47 }
 0x186   :  { %v3726_v49 = vsub.f32 %v137_v33, %v158_v48  ;;  %v3851_v33 = vpack.c.bf16 %v3123_v31, %v3122_v30 }
 0x188   :  { %v162_v50 = vmul.f32 %v3726_v49, %v3726_v49  ;;  %576 = vmatpush.bf16.msra.mxu0 %v3851_v33 }
 0x18a   :  { %v166_v51 = vsel %vm143_vm12, %v162_v50, 0.0 }
 0x18b   :  { %167 = vadd.xlane.f32.xlu1 %v166_v51  ;;  %v3104_v51 = vld [vmem:[%s4958_s4 + $0x50] sm:$0xff] }
 0x18c   :  { %v227_v57 = vpack.c.bf16 %v3105_v52, %v3104_v51  ;;  %v4013_v51 = vld [vmem:[%s4959_s5 + $0x7] ss:$0 sm:$0xff] }
 0x1f6   :  { %v165_v12 = vpop.xlane.xlu0 %164 }
 0x1f7   :  { %v169_v13 = vmul.f32 %v165_v12, %v3717_v41 }
 0x1f9   :  { %v171_v14 = vadd.f32 1e-12, %v169_v13 }
 0x1fb   :  { %3415 = vrsqrt.f32 %v171_v14  ;;  %vm179_vm15 = vweird.f32 %v171_v14 }
 0x1fe   :  { %v168_v27 = vpop.xlane.xlu1 %167 }
 0x1ff   :  { %v170_v34 = vmul.f32 %v168_v27, %v3717_v41  ;;  %v3130_v27 = vld [vmem:[%s4958_s4 + $0x120] sm:$0xff] }
 0x201   :  { %v3416_v35 = vpop.eup %3415  ;;  %v172_v38 = vadd.f32 1e-12, %v170_v34  ;;  %v3137_v34 = vld [vmem:[%s4958_s4 + $0x158] sm:$0xff] }
 0x202   :  { %v174_v36 = vmul.f32 %v3416_v35, %v171_v14  ;;  %vm180_vm14 = vweird.f32 %v3416_v35 }
 0x203   :  { %3417 = vrsqrt.f32 %v172_v38  ;;  %vm181_vm0 = vmor %vm179_vm15, %vm180_vm14  ;;  %vm189_vm1 = vweird.f32 %v172_v38 }
 0x204   :  { %v175_v37 = vmul.f32 %v3416_v35, %v174_v36 }
 0x206   :  { %v176_v39 = vmul.f32 0.5, %v175_v37 }
 0x208   :  { %v177_v40 = vsub.f32 1.5, %v176_v39  ;;  %v3993_v39 = vld [vmem:[%s4959_s5 + $0x6] ss:$0 sm:$0xff] }
 0x209   :  { %v3418_v48 = vpop.eup %3417 }
 0x20a   :  { %v178_v42 = vmul.f32 %v3416_v35, %v177_v40  ;;  %v184_v54 = vmul.f32 %v3418_v48, %v172_v38  ;;  %vm190_vm2 = vweird.f32 %v3418_v48 }
 0x20b   :  { %vm191_vm3 = vmor %vm189_vm1, %vm190_vm2 }
 0x20c   :  { %v182_v45 = vsel %vm181_vm0, %v3416_v35, %v178_v42  ;;  %v185_v61 = vmul.f32 %v3418_v48, %v184_v54  ;;  %v3134_v42 = vld [vmem:[%s4958_s4 + $0x140] sm:$0xff] }
 0x20d   :  { %v193_v47 = vmul.f32 %v182_v45, %v3720_v44  ;;  %v3102_v44 = vld [vmem:[%s4958_s4 + $0x40] sm:$0xff] }
 0x20e   :  { %v226_v62 = vpack.c.bf16 %v3103_v58, %v3102_v44  ;;  %v186_v0 = vmul.f32 0.5, %v185_v61  ;;  %v3379_v45 = vld [vmem:[%s4959_s5 + $0x5] ss:$0 sm:$0xff]  ;;  %v4019_v44 = vld [vmem:[%s4959_s5 + $0x1] ss:$0 sm:$0xff] }
 0x20f   :  { %v198_v50 = vmul.f32 %v3371_v43, %v193_v47 }
 0x210   :  { %v187_v1 = vsub.f32 1.5, %v186_v0 }
 0x211   :  { %v3869_v53 = vadd.f32 %v3372_v46, %v198_v50 }
 0x212   :  { %v188_v5 = vmul.f32 %v3418_v48, %v187_v1  ;;  %v3140_v1 = vld [vmem:[%s4958_s4 + $0x170] sm:$0xff] }
 0x213   :  { %v3873_v56 = vpack.c.bf16 %v3869_v53, %v3869_v53 }
 0x214   :  { %v192_v9 = vsel %vm191_vm3, %v3418_v48, %v188_v5 }
 0x215   :  { %3156 = vmatmul.msk.bf16.vlgmr.msra.gmra.mxu1 %vm143_vm12, %v3873_v56  ;;  %3157 = vmatmul.msk.bf16.vlgmr.msra.gmra.mxu2 %vm143_vm12, %v3873_v56  ;;  %v194_v12 = vmul.f32 %v192_v9, %v3726_v49 }
 0x216   :  { %3158 = vmatmul.msk.bf16.vlgmr.msra.gmra.mxu3 %vm143_vm12, %v3873_v56  ;;  %3165 = vmatmul.msk.bf16.vlgmr.msrb.gmra.mxu0 %vm143_vm12, %v3873_v56 }
 0x217   :  { %486 = vmatpush.bf16.msra.mxu3 %v227_v57  ;;  %646 = vmatpush.bf16.msrb.mxu0 %v3751_v59  ;;  %v3106_v59 = vld [vmem:[%s4958_s4 + $0x60] sm:$0xff]  ;;  %v199_v13 = vmul.f32 %v3371_v43, %v194_v12  ;;  %v3135_v43 = vld [vmem:[%s4958_s4 + $0x148] sm:$0xff] }
 0x218   :  { %v3139_v12 = vld [vmem:[%s4958_s4 + $0x168] sm:$0xff] }
 0x219   :  { %v3911_v14 = vadd.f32 %v3372_v46, %v199_v13  ;;  %v4007_v46 = vpack.c.bf16 %v3135_v43, %v3134_v42 }
 0x21b   :  { %487 = vmatpush.bf16.msra.mxu3 %v226_v62  ;;  %647 = vmatpush.bf16.msrb.mxu0 %v3787_v7  ;;  %v3107_v7 = vld [vmem:[%s4958_s4 + $0x68] sm:$0xff]  ;;  %v3915_v15 = vpack.c.bf16 %v3911_v14, %v3911_v14 }
 0x21c   :  { %v233_v10 = vpack.c.bf16 %v3107_v7, %v3106_v59  ;;  %v4031_v7 = vpack.c.bf16 %v3141_v2, %v3140_v1 }
 0x225   :  { %3160 = vmatmul.msk.bf16.vlgmr.msrb.gmra.mxu2 %vm143_vm12, %v3873_v56 }
 0x226   :  { %3161 = vmatmul.msk.bf16.vlgmr.msrb.gmra.mxu3 %vm143_vm12, %v3873_v56  ;;  %3169 = vmatmul.msk.bf16.vlgmr.msra.gmra.mxu0 %vm143_vm12, %v3873_v56 }
 0x227   :  { %559 = vmatpush.bf16.msrb.mxu3 %v234_v6  ;;  %711 = vmatpush.bf16.msra.mxu0 %v3824_v22  ;;  %v3966_v22 = vld [vmem:[%s4959_s5] ss:$0 sm:$0xff] }
 0x22b   :  { %560 = vmatpush.bf16.msrb.mxu3 %v233_v10  ;;  %712 = vmatpush.bf16.msra.mxu0 %v247_v32 }
 0x236   :  { %3164 = vmatmul.msk.bf16.vlgmr.msra.gmra.mxu3 %vm143_vm12, %v3873_v56  ;;  %3173 = vmatmul.msk.bf16.vlgmr.msrb.gmra.mxu0 %vm143_vm12, %v3915_v15 }
 0x237   :  { %633 = vmatpush.bf16.msra.mxu3 %v3740_v55  ;;  %775 = vmatpush.bf16.msrb.mxu0 %v3762_v63  ;;  %v3948_v63 = vld [vmem:[%s4959_s5 + $0x4] ss:$0 sm:$0xff] }
 0x23b   :  { %634 = vmatpush.bf16.msra.mxu3 %v3776_v3  ;;  %776 = vmatpush.bf16.msrb.mxu0 %v3798_v11  ;;  %v3953_v3 = vld [vmem:[%s4959_s5 + $0x8] ss:$0 sm:$0xff] }
 0x246   :  { %3168 = vmatmul.msk.bf16.vlgmr.msrb.gmra.mxu3 %vm143_vm12, %v3873_v56  ;;  %3177 = vmatmul.msk.bf16.vlgmr.msra.gmra.mxu0 %vm143_vm12, %v3915_v15 }
 0x247   :  { %698 = vmatpush.bf16.msrb.mxu3 %v3813_v18  ;;  %839 = vmatpush.bf16.msra.mxu0 %v3826_v23 }
 0x24b   :  { %699 = vmatpush.bf16.msrb.mxu3 %v3838_v28  ;;  %840 = vmatpush.bf16.msra.mxu0 %v3851_v33  ;;  %v3131_v28 = vld [vmem:[%s4958_s4 + $0x128] sm:$0xff]  ;;  %v3136_v33 = vld [vmem:[%s4958_s4 + $0x150] sm:$0xff] }
 0x24c   :  { %v3980_v32 = vpack.c.bf16 %v3131_v28, %v3130_v27  ;;  %v3988_v37 = vpack.c.bf16 %v3137_v34, %v3136_v33 }
 0x256   :  { %3172 = vmatmul.msk.bf16.vlgmr.msra.gmra.mxu3 %vm143_vm12, %v3915_v15  ;;  %3181 = vmatmul.msk.bf16.vlgmr.msrb.gmra.mxu0 %vm143_vm12, %v3915_v15 }
 0x257   :  { %762 = vmatpush.bf16.msra.mxu3 %v227_v57 }
 0x25b   :  { %763 = vmatpush.bf16.msra.mxu3 %v226_v62 }
 0x266   :  { %3176 = vmatmul.msk.bf16.vlgmr.msrb.gmra.mxu3 %vm143_vm12, %v3915_v15  ;;  %3185 = vmatmul.msk.bf16.vlgmr.msra.gmra.mxu0 %vm143_vm12, %v3915_v15 }
 0x267   :  { %826 = vmatpush.bf16.msrb.mxu3 %v234_v6 }
 0x26b   :  { %827 = vmatpush.bf16.msrb.mxu3 %v233_v10  ;;  %v3138_v10 = vld [vmem:[%s4958_s4 + $0x160] sm:$0xff] }
 0x276   :  { %3180 = vmatmul.msk.bf16.vlgmr.msra.gmra.mxu3 %vm143_vm12, %v3915_v15 }
 0x286   :  { %3184 = vmatmul.msk.bf16.vlgmr.msrb.gmra.mxu3 %vm143_vm12, %v3915_v15 }
 0x292   :  { %v341_v49 = vpop.f32.mrf.mxu1 }
 0x293   :  { %v505_v55 = vpop.f32.mrf.mxu0  ;;  %v342_v31 = vadd.f32 %v3966_v22, %v341_v49 }
 0x294   :  { %v506_v47 = vadd.f32 %v3993_v39, %v505_v55  ;;  %v289_v55 = vpack.c.bf16 %v3139_v12, %v3138_v10  ;;  %v3382_v10 = vld [vmem:[%s4959_s5 + $0x9] ss:$0 sm:$0xff] }
 0x295   :  { %v378_v38 = vpack.c.bf16 %v342_v31, %v342_v31 }
 0x296   :  { %v527_v54 = vpack.c.bf16 %v506_v47, %v506_v47 }
 0x298   :  { %v357_v11 = vpop.f32.mrf.mxu2  ;;  %v532_v0 = vsel %vm380_vm5, %v527_v54, 0 }
 0x299   :  { %v358_v18 = vadd.f32 %v3948_v63, %v357_v11  ;;  %v373_v19 = vpop.f32.mrf.mxu3 }
 0x29a   :  { %v374_v20 = vadd.f32 %v3953_v3, %v373_v19  ;;  %v343_v21 = vpop.f32.mrf.mxu1 }
 0x29b   :  { %v379_v23 = vpack.c.bf16 %v358_v18, %v358_v18  ;;  %v507_v24 = vpop.f32.mrf.mxu0 }
 0x29c   :  { %v377_v26 = vpack.c.bf16 %v374_v20, %v374_v20 }
 0x29d   :  { %v385_v29 = vsel %vm380_vm5, %v379_v23, 0 }
 0x29e   :  { %v986_v30 = vsel %vm984_vm4, %v377_v26, 0  ;;  %394 = vmatpush.bf16.xpose.msrb.mxu1 %v385_v29 }
 0x29f   :  { %995 = vmatpush.bf16.msra.mxu3 %v986_v30 }
 0x2a0   :  { %v359_v35 = vpop.f32.mrf.mxu2 }
 0x2a1   :  { %v375_v36 = vpop.f32.mrf.mxu3 }
 0x2a3   :  { %v578_v40 = vpop.f32.mrf.mxu0 }
 0x2a4   :  { %v579_v61 = vadd.f32 %v4013_v51, %v578_v40 }
 0x2a5   :  { %3159 = vmatmul.msk.bf16.vlgmr.msrb.gmra.mxu1 %vm380_vm5, %v378_v38 }
 0x2a6   :  { %445 = vmatpush.bf16.msra.mxu1 %v3968_v25  ;;  %v600_v59 = vpack.c.bf16 %v579_v61, %v579_v61 }
 0x2a8   :  { %v416_v48 = vpop.f32.mrf.mxu2  ;;  %v605_v49 = vsel %vm380_vm5, %v600_v59, 0 }
 0x2a9   :  { %v432_v50 = vpop.f32.mrf.mxu3  ;;  %v417_v4 = vadd.f32 %v4019_v44, %v416_v48 }
 0x2aa   :  { %446 = vmatpush.bf16.msra.mxu1 %v3980_v32  ;;  %v433_v52 = vadd.f32 %v3379_v45, %v432_v50 }
 0x2ab   :  { %v580_v57 = vpop.f32.mrf.mxu0  ;;  %v453_v13 = vpack.c.bf16 %v417_v4, %v417_v4 }
 0x2ac   :  { %v454_v58 = vpack.c.bf16 %v433_v52, %v433_v52 }
 0x2ae   :  { %518 = vmatpush.bf16.msrb.mxu1 %v3988_v37  ;;  %v459_v62 = vsel %vm380_vm5, %v454_v58, 0 }
 0x2af   :  { %468 = vmatpush.bf16.xpose.msra.mxu2 %v459_v62 }
 0x2b0   :  { %v418_v5 = vpop.f32.mrf.mxu2 }
 0x2b1   :  { %v434_v6 = vpop.f32.mrf.mxu3 }
 0x2b2   :  { %519 = vmatpush.bf16.msrb.mxu1 %v4007_v46 }
 0x2b3   :  { %v649_v9 = vpop.f32.mrf.mxu0 }
 0x2b4   :  { %v650_v18 = vadd.f32 %v3948_v63, %v649_v9  ;;  %v3381_v63 = vld [vmem:[%s4959_s5 + $0x3] ss:$0 sm:$0xff] }
 0x2b5   :  { %3162 = vmatmul.msk.bf16.vlgmr.msra.gmra.mxu1 %vm143_vm12, %v3873_v56 }
 0x2b6   :  { %3163 = vmatmul.msk.bf16.vlgmr.msra.gmra.mxu2 %vm380_vm5, %v453_v13  ;;  %591 = vmatpush.bf16.msra.mxu1 %v4031_v7  ;;  %v668_v21 = vpack.c.bf16 %v650_v18, %v650_v18 }
 0x2b7   :  { %541 = vmatpush.bf16.xpose.msrb.mxu2 %v532_v0  ;;  %v205_v0 = vld [vmem:[%s4955_s1] sm:$0x3]  ;;  %s3077_s1 = sshll.u32 %s4970_s16, 4  ;;  %s3078_s1 = int_to_ptr.hbm [resolvable:$true] %s3077_s1 }
 0x2b8   :  { %v673_v26 = vsel %vm380_vm5, %v668_v21, 0  ;;  %v3097_v1 = vadd.f32 -1.0, %v205_v0 }
 0x2b9   :  { %v489_v11 = vpop.f32.mrf.mxu3 }
 0x2ba   :  { %592 = vmatpush.bf16.msra.mxu1 %v289_v55  ;;  %v490_v19 = vadd.f32 %v3380_v17, %v489_v11  ;;  %v207_v2 = vmul.f32 1e+09, %v3097_v1 }
 0x2bb   :  { %v651_v16 = vpop.f32.mrf.mxu0 }
 0x2bc   :  { %v526_v24 = vpack.c.bf16 %v490_v19, %v490_v19  ;;  %v4087_v4 = vperm.slane %v207_v2, 0 }
 0x2bf   :  { %614 = vmatpush.bf16.xpose.msra.mxu2 %v605_v49 }
 0x2c1   :  { %v491_v20 = vpop.f32.mrf.mxu3 }
 0x2c3   :  { %v714_v23 = vpop.f32.mrf.mxu0 }
 0x2c4   :  { %v715_v29 = vadd.f32 %v3379_v45, %v714_v23  ;;  %v3383_v23 = vld [vmem:[%s4959_s5 + $0xa] ss:$0 sm:$0xff] }
 0x2c5   :  { %3166 = vmatmul.msk.bf16.vlgmr.msrb.gmra.mxu1 %vm143_vm12, %v3873_v56 }
 0x2c6   :  { %3167 = vmatmul.msk.bf16.vlgmr.msrb.gmra.mxu2 %vm380_vm5, %v526_v24  ;;  %659 = vmatpush.bf16.msrb.mxu1 %v3753_v60  ;;  %v733_v33 = vpack.c.bf16 %v715_v29, %v715_v29 }
 0x2c7   :  { %682 = vmatpush.bf16.xpose.msrb.mxu2 %v673_v26 }
 0x2c8   :  { %v738_v60 = vsel %vm380_vm5, %v733_v33, 0 }
 0x2c9   :  { %v562_v27 = vpop.f32.mrf.mxu3 }
 0x2ca   :  { %660 = vmatpush.bf16.msrb.mxu1 %v3789_v8  ;;  %v563_v30 = vadd.f32 %v3381_v63, %v562_v27 }
 0x2cb   :  { %v716_v28 = vpop.f32.mrf.mxu0 }
 0x2cc   :  { %v599_v35 = vpack.c.bf16 %v563_v30, %v563_v30 }
 0x2d1   :  { %v564_v31 = vpop.f32.mrf.mxu3 }
 0x2d3   :  { %v778_v34 = vpop.f32.mrf.mxu0 }
 0x2d4   :  { %v779_v38 = vadd.f32 %v3993_v39, %v778_v34  ;;  %v3384_v34 = vld [vmem:[%s4959_s5 + $0xb] ss:$0 sm:$0xff] }
 0x2d5   :  { %3170 = vmatmul.msk.bf16.vlgmr.msra.gmra.mxu1 %vm143_vm12, %v3873_v56 }
 0x2d6   :  { %3171 = vmatmul.msk.bf16.vlgmr.msra.gmra.mxu2 %vm380_vm5, %v599_v35  ;;  %724 = vmatpush.bf16.msra.mxu1 %v3968_v25  ;;  %v797_v43 = vpack.c.bf16 %v779_v38, %v779_v38 }
 0x2d7   :  { %747 = vmatpush.bf16.xpose.msra.mxu2 %v738_v60 }
 0x2d8   :  { %v802_v56 = vsel %vm380_vm5, %v797_v43, 0 }
 0x2d9   :  { %v636_v8 = vpop.f32.mrf.mxu3 }
 0x2da   :  { %725 = vmatpush.bf16.msra.mxu1 %v3980_v32  ;;  %v637_v40 = vadd.f32 %v3966_v22, %v636_v8 }
 0x2db   :  { %v780_v36 = vpop.f32.mrf.mxu0 }
 0x2dc   :  { %v667_v47 = vpack.c.bf16 %v637_v40, %v637_v40 }
 0x2e1   :  { %v638_v42 = vpop.f32.mrf.mxu3 }
 0x2e3   :  { %v842_v45 = vpop.f32.mrf.mxu0 }
 0x2e4   :  { %v843_v22 = vadd.f32 %v4013_v51, %v842_v45 }
 0x2e5   :  { %3174 = vmatmul.msk.bf16.vlgmr.msrb.gmra.mxu1 %vm143_vm12, %v3915_v15 }
 0x2e6   :  { %3175 = vmatmul.msk.bf16.vlgmr.msrb.gmra.mxu2 %vm380_vm5, %v667_v47  ;;  %788 = vmatpush.bf16.msrb.mxu1 %v3988_v37  ;;  %v861_v50 = vpack.c.bf16 %v843_v22, %v843_v22 }
 0x2e7   :  { %811 = vmatpush.bf16.xpose.msrb.mxu2 %v802_v56 }
 0x2e8   :  { %v866_v54 = vsel %vm380_vm5, %v861_v50, 0 }
 0x2e9   :  { %v701_v25 = vpop.f32.mrf.mxu3 }
 0x2ea   :  { %789 = vmatpush.bf16.msrb.mxu1 %v4007_v46  ;;  %v702_v39 = vadd.f32 %v4019_v44, %v701_v25 }
 0x2eb   :  { %v844_v32 = vpop.f32.mrf.mxu0 }
 0x2ec   :  { %v732_v52 = vpack.c.bf16 %v702_v39, %v702_v39 }
 0x2f1   :  { %v703_v48 = vpop.f32.mrf.mxu3 }
 0x2f2   :  { %v4127_v48 = vperm.slane %v207_v2, 1 }
 0x2f5   :  { %3178 = vmatmul.msk.bf16.vlgmr.msra.gmra.mxu1 %vm143_vm12, %v3915_v15 }
 0x2f6   :  { %3179 = vmatmul.msk.bf16.vlgmr.msra.gmra.mxu2 %vm380_vm5, %v732_v52  ;;  %852 = vmatpush.bf16.msra.mxu1 %v4031_v7 }
 0x2f7   :  { %875 = vmatpush.bf16.xpose.msra.mxu2 %v866_v54 }
 0x2f9   :  { %v765_v37 = vpop.f32.mrf.mxu3 }
 0x2fa   :  { %853 = vmatpush.bf16.msra.mxu1 %v289_v55  ;;  %v766_v46 = vadd.f32 %v3380_v17, %v765_v37  ;;  %v3153_v55 = vld [vmem:[%s4960_s6 + $0x8] sm:$0xff] }
 0x2fb   :  { %v318_v11 = vpack.c.bf16 %v3153_v55, %v3153_v55 }
 0x2fc   :  { %v796_v51 = vpack.c.bf16 %v766_v46, %v766_v46 }
 0x2fd   :  { %v4103_v17 = vsel %vm984_vm4, %v318_v11, 0 }
 0x301   :  { %v767_v57 = vpop.f32.mrf.mxu3 }
 0x305   :  { %3182 = vmatmul.msk.bf16.vlgmr.msrb.gmra.mxu1 %vm143_vm12, %v3915_v15 }
 0x306   :  { %3183 = vmatmul.msk.bf16.vlgmr.msrb.gmra.mxu2 %vm380_vm5, %v796_v51  ;;  %1036 = vmatpush.bf16.msrb.mxu1 %v4103_v17 }
 0x309   :  { %v829_v44 = vpop.f32.mrf.mxu3 }
 0x30a   :  { %v830_v58 = vadd.f32 %v3381_v63, %v829_v44 }
 0x30c   :  { %v860_v62 = vpack.c.bf16 %v830_v58, %v830_v58 }
 0x311   :  { %v831_v61 = vpop.f32.mrf.mxu3 }
 0x315   :  { %3186 = vmatmul.msk.bf16.vlgmr.msra.gmra.mxu1 %vm143_vm12, %v3915_v15 }
 0x316   :  { %3187 = vmatmul.msk.bf16.vlgmr.msra.gmra.mxu2 %vm380_vm5, %v860_v62 }
 0x322   :  { %v396_v5 = vpop.f32.mrf.mxu1 }
 0x323   :  { %v400_v6 = vmul.f32 0.35355338, %v396_v5 }
 0x325   :  { %v402_v59 = vadd.f32 %v4087_v4, %v400_v6 }
 0x327   :  { %403 = vst.msk [vmem:[#allocation2] sm:$0xff] %vm380_vm5, %v402_v59 }
 0x32a   :  { %v398_v7 = vpop.f32.mrf.mxu1 }
 0x32e   :  { %v4091_v9 = vld [vmem:[#allocation2] sm:$0xff] }
 0x32f   :  { %v892_v15 = vsel %vm380_vm5, %v4091_v9, -inf }
 0x330   :  { %893 = vmax.xlane.f32.xlu1 %v892_v15 }
 0x332   :  { %v448_v12 = vpop.f32.mrf.mxu1 }
 0x333   :  { %v449_v13 = vadd.f32 %v3382_v10, %v448_v12 }
 0x335   :  { %v452_v49 = vpack.c.bf16 %v449_v13, %v449_v13 }
 0x337   :  { %v1007_v16 = vsel %vm984_vm4, %v452_v49, 0 }
 0x338   :  { %1016 = vmatpush.bf16.msrb.mxu0 %v1007_v16 }
 0x339   :  { %v470_v18 = vpop.f32.mrf.mxu2 }
 0x33a   :  { %v474_v19 = vmul.f32 0.35355338, %v470_v18  ;;  %v450_v20 = vpop.f32.mrf.mxu1 }
 0x33c   :  { %v475_v21 = vadd.f32 %v474_v19, %v4087_v4 }
 0x33e   :  { %476 = vst.msk [vmem:[#allocation2 + $0x8] sm:$0xff] %vm380_vm5, %v475_v21 }
 0x341   :  { %v472_v24 = vpop.f32.mrf.mxu2 }
 0x342   :  { %v521_v26 = vpop.f32.mrf.mxu1 }
 0x343   :  { %v522_v27 = vadd.f32 %v3383_v23, %v521_v26 }
 0x345   :  { %v525_v28 = vpack.c.bf16 %v522_v27, %v522_v27  ;;  %v885_v56 = vld [vmem:[#allocation2 + $0x8] sm:$0xff] }
 0x346   :  { %v895_v32 = vsel %vm380_vm5, %v885_v56, -inf }
 0x347   :  { %v1066_v63 = vsel %vm984_vm4, %v525_v28, 0 }
 0x348   :  { %1075 = vmatpush.bf16.msrb.mxu3 %v1066_v63 }
 0x349   :  { %v543_v29 = vpop.f32.mrf.mxu2 }
 0x34a   :  { %v547_v30 = vmul.f32 0.35355338, %v543_v29  ;;  %v523_v31 = vpop.f32.mrf.mxu1 }
 0x34c   :  { %v548_v33 = vadd.f32 %v547_v30, %v4087_v4 }
 0x34e   :  { %549 = vst.msk [vmem:[#allocation2 + $0x10] sm:$0xff] %vm380_vm5, %v548_v33 }
 0x351   :  { %v545_v35 = vpop.f32.mrf.mxu2 }
 0x352   :  { %v594_v60 = vpop.f32.mrf.mxu1 }
 0x353   :  { %v595_v8 = vadd.f32 %v3384_v34, %v594_v60 }
 0x355   :  { %v598_v36 = vpack.c.bf16 %v595_v8, %v595_v8  ;;  %v4117_v38 = vld [vmem:[#allocation2 + $0x10] sm:$0xff] }
 0x356   :  { %v898_v40 = vsel %vm380_vm5, %v4117_v38, -inf }
 0x357   :  { %v1107_v42 = vsel %vm984_vm4, %v598_v36, 0  ;;  %899 = vmax.xlane.f32.xlu2 %v898_v40 }
 0x358   :  { %1116 = vmatpush.bf16.msra.mxu1 %v1107_v42 }
 0x359   :  { %v616_v43 = vpop.f32.mrf.mxu2 }
 0x35a   :  { %v620_v45 = vmul.f32 0.35355338, %v616_v43  ;;  %v596_v47 = vpop.f32.mrf.mxu1 }
 0x35c   :  { %v621_v25 = vadd.f32 %v620_v45, %v4087_v4 }
 0x35e   :  { %622 = vst.msk [vmem:[#allocation2 + $0x18] sm:$0xff] %vm380_vm5, %v621_v25 }
 0x35f   :  { %896 = vmax.xlane.f32.xlu2 %v895_v32 }
 0x361   :  { %v618_v22 = vpop.f32.mrf.mxu2 }
 0x362   :  { %v4125_v39 = vpop.f32.mrf.mxu1 }
 0x365   :  { %v887_v27 = vld [vmem:[#allocation2 + $0x18] sm:$0xff] }
 0x366   :  { %v901_v28 = vsel %vm380_vm5, %v887_v27, -inf }
 0x369   :  { %v684_v50 = vpop.f32.mrf.mxu2 }
 0x36a   :  { %v688_v52 = vmul.f32 0.35355338, %v684_v50  ;;  %v664_v54 = vpop.f32.mrf.mxu1 }
 0x36c   :  { %v690_v37 = vadd.f32 %v4127_v48, %v688_v52 }
 0x36e   :  { %691 = vst.msk [vmem:[#allocation2 + $0x20] sm:$0xff] %vm380_vm5, %v690_v37 }
 0x371   :  { %v686_v46 = vpop.f32.mrf.mxu2 }
 0x372   :  { %v727_v57 = vpop.f32.mrf.mxu1 }
 0x373   :  { %v4131_v51 = vadd.f32 %v3382_v10, %v727_v57 }
 0x375   :  { %v888_v42 = vld [vmem:[#allocation2 + $0x20] sm:$0xff] }
 0x376   :  { %v904_v43 = vsel %vm380_vm5, %v888_v42, -inf }
 0x379   :  { %v749_v44 = vpop.f32.mrf.mxu2 }
 0x37a   :  { %v753_v58 = vmul.f32 0.35355338, %v749_v44  ;;  %v729_v61 = vpop.f32.mrf.mxu1 }
 0x37c   :  { %v754_v62 = vadd.f32 %v753_v58, %v4127_v48 }
 0x37e   :  { %755 = vst.msk [vmem:[#allocation2 + $0x28] sm:$0xff] %vm380_vm5, %v754_v62 }
 0x381   :  { %v751_v0 = vpop.f32.mrf.mxu2 }
 0x382   :  { %v791_v1 = vpop.f32.mrf.mxu1 }
 0x383   :  { %v4135_v2 = vadd.f32 %v3383_v23, %v791_v1 }
 0x385   :  { %v889_v24 = vld [vmem:[#allocation2 + $0x28] sm:$0xff] }
 0x386   :  { %v907_v26 = vsel %vm380_vm5, %v889_v24, -inf }
 0x389   :  { %v813_v5 = vpop.f32.mrf.mxu2 }
 0x38a   :  { %v817_v6 = vmul.f32 0.35355338, %v813_v5  ;;  %v793_v59 = vpop.f32.mrf.mxu1 }
 0x38c   :  { %v818_v7 = vadd.f32 %v817_v6, %v4127_v48 }
 0x38e   :  { %819 = vst.msk [vmem:[#allocation2 + $0x30] sm:$0xff] %vm380_vm5, %v818_v7 }
 0x391   :  { %v815_v15 = vpop.f32.mrf.mxu2 }
 0x392   :  { %v855_v10 = vpop.f32.mrf.mxu1 }
 0x393   :  { %v4139_v12 = vadd.f32 %v3384_v34, %v855_v10 }
 0x395   :  { %v890_v0 = vld [vmem:[#allocation2 + $0x30] sm:$0xff] }
 0x396   :  { %v910_v59 = vsel %vm380_vm5, %v890_v0, -inf }
 0x399   :  { %v877_v13 = vpop.f32.mrf.mxu2 }
 0x39a   :  { %v881_v49 = vmul.f32 0.35355338, %v877_v13  ;;  %v857_v55 = vpop.f32.mrf.mxu1 }
 0x39b   :  { %v795_v55 = vpack.c.bf16 %v4135_v2, %v4135_v2 }
 0x39c   :  { %v882_v11 = vadd.f32 %v881_v49, %v4127_v48 }
 0x39e   :  { %883 = vst.msk [vmem:[#allocation2 + $0x38] sm:$0xff] %vm380_vm5, %v882_v11 }
 0x3a1   :  { %v879_v16 = vpop.f32.mrf.mxu2 }
 0x3a3   :  { %v894_v18 = vpop.xlane.xlu1 %893 }
 0x3a4   :  { %v916_v19 = vsub.f32 %v4091_v9, %v894_v18 }
 0x3a5   :  { %v891_v63 = vld [vmem:[#allocation2 + $0x38] sm:$0xff] }
 0x3a6   :  { %v924_v20 = vmul.f32 1.442695, %v916_v19  ;;  %v913_v29 = vsel %vm380_vm5, %v891_v63, -inf  ;;  %v1223_v19 = vsel %vm984_vm4, %v795_v55, 0 }
 0x3a8   :  { %3419 = vpow2.f32 %v924_v20 }
 0x3ae   :  { %v3420_v21 = vpop.eup %3419 }
 0x3af   :  { %v940_v23 = vsel %vm380_vm5, %v3420_v21, 0.0 }
 0x3b0   :  { %941 = vadd.xlane.f32.xlu0 %v940_v23 }
 0x3b8   :  { %908 = vmax.xlane.f32.xlu0 %v907_v26 }
 0x3c0   :  { %902 = vmax.xlane.f32.xlu0 %v901_v28 }
 0x3c8   :  { %914 = vmax.xlane.f32.xlu0 %v913_v29 }
 0x3ca   :  { %v900_v30 = vpop.xlane.xlu2 %899 }
 0x3cb   :  { %v918_v9 = vsub.f32 %v4117_v38, %v900_v30  ;;  %v663_v38 = vadd.f32 %v3953_v3, %v4125_v39  ;;  %v3154_v39 = vld [vmem:[%s4960_s6 + $0x10] sm:$0xff]  ;;  %v314_v30 = vld [vmem:[%s4960_s6] sm:$0xff] }
 0x3cc   :  { %v321_v61 = vpack.c.bf16 %v3154_v39, %v3154_v39  ;;  %v859_v39 = vpack.c.bf16 %v4139_v12, %v4139_v12  ;;  %v3155_v12 = vld [vmem:[%s4960_s6 + $0x18] sm:$0xff] }
 0x3cd   :  { %v928_v31 = vmul.f32 1.442695, %v918_v9 }
 0x3ce   :  { %v1086_v1 = vsel %vm984_vm4, %v321_v61, 0 }
 0x3cf   :  { %3421 = vpow2.f32 %v928_v31  ;;  %1095 = vmatpush.bf16.msra.mxu0 %v1086_v1 }
 0x3d2   :  { %v897_v33 = vpop.xlane.xlu2 %896 }
 0x3d3   :  { %v917_v34 = vsub.f32 %v885_v56, %v897_v33  ;;  %v666_v56 = vpack.c.bf16 %v663_v38, %v663_v38 }
 0x3d5   :  { %v3422_v35 = vpop.eup %3421  ;;  %v926_v60 = vmul.f32 1.442695, %v917_v34  ;;  %v1149_v54 = vsel %vm984_vm4, %v666_v56, 0 }
 0x3d6   :  { %v946_v8 = vsel %vm380_vm5, %v3422_v35, 0.0 }
 0x3d7   :  { %3423 = vpow2.f32 %v926_v60  ;;  %947 = vadd.xlane.f32.xlu1 %v946_v8 }
 0x3dd   :  { %v3424_v36 = vpop.eup %3423 }
 0x3de   :  { %v943_v40 = vsel %vm380_vm5, %v3424_v36, 0.0 }
 0x3df   :  { %944 = vadd.xlane.f32.xlu1 %v943_v40 }
 0x3e7   :  { %905 = vmax.xlane.f32.xlu1 %v904_v43 }
 0x423   :  { %v942_v45 = vpop.xlane.xlu0 %941 }
 0x424   :  { %3425 = vrcp.f32 %v942_v45 }
 0x42a   :  { %v3426_v47 = vpop.eup %3425 }
 0x42b   :  { %v972_v25 = vmul.f32 %v3426_v47, %v3420_v21  ;;  %v909_v32 = vpop.xlane.xlu0 %908  ;;  %v731_v21 = vpack.c.bf16 %v4131_v51, %v4131_v51  ;;  %v315_v51 = vpack.c.bf16 %v314_v30, %v314_v30 }
 0x42c   :  { %v921_v22 = vsub.f32 %v889_v24, %v909_v32 }
 0x42d   :  { %v980_v50 = vpack.c.bf16 %v972_v25, %v972_v25  ;;  %v1170_v2 = vsel %vm984_vm4, %v731_v21, 0  ;;  %v1046_v9 = vsel %vm984_vm4, %v315_v51, 0 }
 0x42e   :  { %v934_v52 = vmul.f32 1.442695, %v921_v22  ;;  %1055 = vmatpush.bf16.msrb.mxu2 %v1046_v9 }
 0x42f   :  { %3188 = vmatmul.msk.bf16.vlgmr.msra.gmra.mxu3 %vm380_vm5, %v980_v50 }
 0x430   :  { %3427 = vpow2.f32 %v934_v52  ;;  %1158 = vmatpush.bf16.msra.mxu3 %v1149_v54 }
 0x433   :  { %v903_v37 = vpop.xlane.xlu0 %902 }
 0x434   :  { %v919_v46 = vsub.f32 %v887_v27, %v903_v37 }
 0x436   :  { %v4156_v57 = vpop.eup %3427  ;;  %v930_v44 = vmul.f32 1.442695, %v919_v46 }
 0x437   :  { %v955_v3 = vsel %vm380_vm5, %v4156_v57, 0.0 }
 0x438   :  { %3429 = vpow2.f32 %v930_v44  ;;  %956 = vadd.xlane.f32.xlu2 %v955_v3 }
 0x43b   :  { %v915_v58 = vpop.xlane.xlu0 %914 }
 0x43c   :  { %v923_v62 = vsub.f32 %v891_v63, %v915_v58 }
 0x43e   :  { %v4164_v5 = vpop.eup %3429  ;;  %v938_v6 = vmul.f32 1.442695, %v923_v62 }
 0x43f   :  { %v949_v7 = vsel %vm380_vm5, %v4164_v5, 0.0 }
 0x440   :  { %3431 = vpow2.f32 %v938_v6  ;;  %911 = vmax.xlane.f32.xlu2 %v910_v59  ;;  %950 = vadd.xlane.f32.xlu1 %v949_v7  ;;  %v324_v59 = vpack.c.bf16 %v3155_v12, %v3155_v12 }
 0x442   :  { %v1127_v7 = vsel %vm984_vm4, %v324_v59, 0 }
 0x443   :  { %1136 = vmatpush.bf16.msra.mxu2 %v1127_v7 }
 0x446   :  { %v4169_v15 = vpop.eup %3431 }
 0x447   :  { %v961_v10 = vsel %vm380_vm5, %v4169_v15, 0.0 }
 0x448   :  { %962 = vadd.xlane.f32.xlu1 %v961_v10 }
 0x44a   :  { %v948_v13 = vpop.xlane.xlu1 %947 }
 0x44b   :  { %3433 = vrcp.f32 %v948_v13 }
 0x451   :  { %v3434_v49 = vpop.eup %3433 }
 0x452   :  { %v974_v11 = vmul.f32 %v3434_v49, %v3422_v35  ;;  %v945_v16 = vpop.xlane.xlu1 %944 }
 0x453   :  { %3435 = vrcp.f32 %v945_v16 }
 0x454   :  { %v1061_v18 = vpack.c.bf16 %v974_v11, %v974_v11 }
 0x456   :  { %3192 = vmatmul.msk.bf16.vlgmr.msrb.gmra.mxu3 %vm380_vm5, %v1061_v18 }
 0x457   :  { %1232 = vmatpush.bf16.msrb.mxu3 %v1223_v19 }
 0x459   :  { %v3436_v20 = vpop.eup %3435 }
 0x45a   :  { %v973_v23 = vmul.f32 %v3436_v20, %v3424_v36  ;;  %v906_v24 = vpop.xlane.xlu1 %905 }
 0x45b   :  { %v920_v26 = vsub.f32 %v888_v42, %v906_v24 }
 0x45c   :  { %v1002_v27 = vpack.c.bf16 %v973_v23, %v973_v23 }
 0x45d   :  { %v932_v28 = vmul.f32 1.442695, %v920_v26 }
 0x45e   :  { %3189 = vmatmul.msk.bf16.vlgmr.msrb.gmra.mxu0 %vm380_vm5, %v1002_v27 }
 0x45f   :  { %3437 = vpow2.f32 %v932_v28  ;;  %1179 = vmatpush.bf16.msrb.mxu0 %v1170_v2 }
 0x465   :  { %v3438_v63 = vpop.eup %3437 }
 0x466   :  { %v952_v29 = vsel %vm380_vm5, %v3438_v63, 0.0 }
 0x467   :  { %953 = vadd.xlane.f32.xlu2 %v952_v29 }
 0x4ab   :  { %v957_v31 = vpop.xlane.xlu2 %956 }
 0x4b2   :  { %v997_v33 = vpop.f32.mrf.mxu3 }
 0x4b3   :  { %v1001_v34 = vpack.c.bf16 %v997_v33, %v997_v33  ;;  %v912_v35 = vpop.xlane.xlu2 %911  ;;  %v951_v56 = vpop.xlane.xlu1 %950 }
 0x4b4   :  { %v922_v60 = vsub.f32 %v890_v0, %v912_v35 }
 0x4b5   :  { %3191 = vmatmul.msk.bf16.vlgmr.msrb.gmra.mxu2 %vm380_vm5, %v1001_v34 }
 0x4b6   :  { %v936_v8 = vmul.f32 1.442695, %v922_v60  ;;  %1212 = vmatpush.bf16.msrb.mxu2 %v1046_v9 }
 0x4b8   :  { %3439 = vpow2.f32 %v936_v8 }
 0x4ba   :  { %v999_v36 = vpop.f32.mrf.mxu3 }
 0x4bb   :  { %v963_v20 = vpop.xlane.xlu1 %962 }
 0x4be   :  { %v3440_v40 = vpop.eup %3439 }
 0x4bf   :  { %v958_v42 = vsel %vm380_vm5, %v3440_v40, 0.0 }
 0x4c0   :  { %959 = vadd.xlane.f32.xlu0 %v958_v42 }
 0x4d9   :  { %v1077_v43 = vpop.f32.mrf.mxu3 }
 0x4da   :  { %v1081_v45 = vpack.c.bf16 %v1077_v43, %v1077_v43  ;;  %v954_v38 = vpop.xlane.xlu2 %953 }
 0x4db   :  { %3441 = vrcp.f32 %v954_v38  ;;  %v1018_v47 = vpop.f32.mrf.mxu0 }
 0x4dc   :  { %v1022_v25 = vpack.c.bf16 %v1018_v47, %v1018_v47  ;;  %3193 = vmatmul.msk.bf16.vlgmr.msra.gmra.mxu0 %vm380_vm5, %v1081_v45  ;;  %3443 = vrcp.f32 %v957_v31 }
 0x4dd   :  { %1249 = vmatpush.bf16.msra.mxu0 %v1086_v1  ;;  %3445 = vrcp.f32 %v951_v56 }
 0x4de   :  { %3190 = vmatmul.msk.bf16.vlgmr.msrb.gmra.mxu1 %vm380_vm5, %v1022_v25 }
 0x4df   :  { %1196 = vmatpush.bf16.msrb.mxu1 %v4103_v17  ;;  %v1261_v17 = vsel %vm984_vm4, %v859_v39, 0 }
 0x4e1   :  { %v3442_v32 = vpop.eup %3441  ;;  %v1079_v22 = vpop.f32.mrf.mxu3 }
 0x4e2   :  { %v976_v50 = vmul.f32 %v3442_v32, %v3438_v63  ;;  %v3444_v52 = vpop.eup %3443 }
 0x4e3   :  { %v1020_v54 = vpop.f32.mrf.mxu0  ;;  %v3446_v46 = vpop.eup %3445  ;;  %v977_v44 = vmul.f32 %v3444_v52, %v4156_v57 }
 0x4e4   :  { %v1144_v37 = vpack.c.bf16 %v976_v50, %v976_v50  ;;  %v975_v3 = vmul.f32 %v3446_v46, %v4164_v5 }
 0x4e5   :  { %v1165_v58 = vpack.c.bf16 %v977_v44, %v977_v44 }
 0x4e6   :  { %3196 = vmatmul.msk.bf16.vlgmr.msra.gmra.mxu3 %vm380_vm5, %v1144_v37  ;;  %v1102_v61 = vpack.c.bf16 %v975_v3, %v975_v3 }
 0x4ec   :  { %3197 = vmatmul.msk.bf16.vlgmr.msrb.gmra.mxu0 %vm380_vm5, %v1165_v58 }
 0x4ee   :  { %3194 = vmatmul.msk.bf16.vlgmr.msra.gmra.mxu1 %vm380_vm5, %v1102_v61 }
 0x4ef   :  { %1270 = vmatpush.bf16.msra.mxu1 %v1261_v17 }
 0x533   :  { %v960_v62 = vpop.xlane.xlu0 %959 }
 0x534   :  { %3447 = vrcp.f32 %v960_v62 }
 0x535   :  { %3449 = vrcp.f32 %v963_v20 }
 0x538   :  { %v1057_v0 = vpop.f32.mrf.mxu2 }
 0x53a   :  { %v3448_v57 = vpop.eup %3447 }
 0x53b   :  { %v978_v1 = vmul.f32 %v3448_v57, %v3440_v40  ;;  %v3450_v28 = vpop.eup %3449 }
 0x53c   :  { %v979_v63 = vmul.f32 %v3450_v28, %v4169_v15  ;;  %v3385_v15 = vld [vmem:[%s4961_s7] ss:$0 sm:$0xff] }
 0x53d   :  { %v1218_v6 = vpack.c.bf16 %v978_v1, %v978_v1 }
 0x53e   :  { %v1256_v29 = vpack.c.bf16 %v979_v63, %v979_v63 }
 0x53f   :  { %3200 = vmatmul.msk.bf16.vlgmr.msrb.gmra.mxu3 %vm380_vm5, %v1218_v6 }
 0x540   :  { %v1059_v5 = vpop.f32.mrf.mxu2 }
 0x559   :  { %v1097_v10 = vpop.f32.mrf.mxu0 }
 0x55b   :  { %v1038_v13 = vpop.f32.mrf.mxu1 }
 0x55c   :  { %v1058_v49 = vadd.f32 %v1057_v0, %v1038_v13  ;;  %v1367_v13 = vld [vmem:[%s4962_s8 + $0x18] sm:$0xff] }
 0x55e   :  { %v1101_v55 = vadd.f32 %v1097_v10, %v1058_v49 }
 0x561   :  { %v1099_v11 = vpop.f32.mrf.mxu0 }
 0x562   :  { %v1364_v11 = vld [vmem:[%s4962_s8] sm:$0xff] }
 0x563   :  { %v1040_v16 = vpop.f32.mrf.mxu1 }
 0x564   :  { %v1365_v16 = vld [vmem:[%s4962_s8 + $0x8] sm:$0xff] }
 0x569   :  { %v1160_v18 = vpop.f32.mrf.mxu3  ;;  %v1181_v19 = vpop.f32.mrf.mxu0 }
 0x56a   :  { %v1185_v21 = vpack.c.bf16 %v1181_v19, %v1181_v19  ;;  %v1164_v30 = vpack.c.bf16 %v1160_v18, %v1160_v18  ;;  %v1368_v18 = vpack.c.bf16 %v1365_v16, %v1364_v11 }
 0x56b   :  { %v1118_v23 = vpop.f32.mrf.mxu1 }
 0x56c   :  { %v1122_v24 = vpack.c.bf16 %v1118_v23, %v1118_v23  ;;  %3198 = vmatmul.msk.bf16.vlgmr.msrb.gmra.mxu1 %vm380_vm5, %v1185_v21 }
 0x56e   :  { %3195 = vmatmul.msk.bf16.vlgmr.msra.gmra.mxu2 %vm380_vm5, %v1122_v24 }
 0x56f   :  { %1287 = vmatpush.bf16.msra.mxu2 %v1127_v7 }
 0x571   :  { %v1162_v26 = vpop.f32.mrf.mxu3  ;;  %v1183_v27 = vpop.f32.mrf.mxu0 }
 0x573   :  { %v1120_v2 = vpop.f32.mrf.mxu1 }
 0x57c   :  { %3202 = vmatmul.msk.bf16.vlgmr.msra.gmra.mxu1 %vm380_vm5, %v1256_v29 }
 0x57e   :  { %3199 = vmatmul.msk.bf16.vlgmr.msrb.gmra.mxu2 %vm380_vm5, %v1164_v30 }
 0x5c2   :  { %v1234_v51 = vpop.f32.mrf.mxu3 }
 0x5c3   :  { %v1238_v9 = vpack.c.bf16 %v1234_v51, %v1234_v51 }
 0x5c5   :  { %3201 = vmatmul.msk.bf16.vlgmr.msra.gmra.mxu0 %vm380_vm5, %v1238_v9 }
 0x5ca   :  { %v1236_v31 = vpop.f32.mrf.mxu3 }
 0x5cb   :  { %v3386_v31 = vld [vmem:[%s4961_s7 + $0x1] ss:$0 sm:$0xff] }
 0x5e9   :  { %v1198_v33 = vpop.f32.mrf.mxu1 }
 0x5f1   :  { %v1138_v34 = vpop.f32.mrf.mxu2  ;;  %v1200_v35 = vpop.f32.mrf.mxu1 }
 0x5f2   :  { %v1142_v60 = vadd.f32 %v1138_v34, %v1101_v55 }
 0x5f4   :  { %1143 = vst.msk [vmem:[#allocation3] sm:$0xff] %vm143_vm12, %v1142_v60  ;;  %v3387_v60 = vld [vmem:[%s4961_s7 + $0x2] ss:$0 sm:$0xff] }
 0x5f9   :  { %v1140_v8 = vpop.f32.mrf.mxu2  ;;  %v1272_v36 = vpop.f32.mrf.mxu1 }
 0x5fa   :  { %v1276_v40 = vpack.c.bf16 %v1272_v36, %v1272_v36 }
 0x5fb   :  { %v1295_v42 = vld [vmem:[#allocation3] sm:$0xff] }
 0x5fc   :  { %3203 = vmatmul.msk.bf16.vlgmr.msra.gmra.mxu2 %vm380_vm5, %v1276_v40  ;;  %v1301_v43 = vadd.f32 %v3385_v15, %v1295_v42 }
 0x5fe   :  { %v1303_v45 = vadd.f32 %v1301_v43, %v3869_v53 }
 0x600   :  { %v1309_v38 = vsel %vm143_vm12, %v1303_v45, 0.0 }
 0x601   :  { %1310 = vadd.xlane.f32.xlu2 %v1309_v38  ;;  %v1214_v47 = vpop.f32.mrf.mxu2  ;;  %v1274_v56 = vpop.f32.mrf.mxu1 }
 0x602   :  { %v1215_v25 = vadd.f32 %v1214_v47, %v1198_v33 }
 0x609   :  { %v1216_v32 = vpop.f32.mrf.mxu2 }
 0x642   :  { %v1251_v22 = vpop.f32.mrf.mxu0 }
 0x643   :  { %v1255_v3 = vadd.f32 %v1251_v22, %v1215_v25 }
 0x64a   :  { %v1253_v50 = vpop.f32.mrf.mxu0 }
 0x674   :  { %v1311_v52 = vpop.xlane.xlu2 %1310 }
 0x675   :  { %v1315_v54 = vmul.f32 %v1311_v52, %v3717_v41 }
 0x677   :  { %v1317_v37 = vsub.f32 %v1303_v45, %v1315_v54  ;;  %v3388_v45 = vld [vmem:[%s4963_s9] ss:$0 sm:$0xff] }
 0x679   :  { %v1319_v46 = vmul.f32 %v1317_v37, %v1317_v37 }
 0x67b   :  { %v1321_v44 = vsel %vm143_vm12, %v1319_v46, 0.0 }
 0x67c   :  { %1322 = vadd.xlane.f32.xlu1 %v1321_v44 }
 0x67f   :  { %v1289_v39 = vpop.f32.mrf.mxu2 }
 0x680   :  { %v1293_v53 = vadd.f32 %v1289_v39, %v1255_v3 }
 0x682   :  { %1294 = vst.msk [vmem:[#allocation3 + $0x8] sm:$0xff] %vm143_vm12, %v1293_v53 }
 0x687   :  { %v1291_v58 = vpop.f32.mrf.mxu2 }
 0x689   :  { %v1296_v61 = vld [vmem:[#allocation3 + $0x8] sm:$0xff] }
 0x68a   :  { %v1302_v17 = vadd.f32 %v3385_v15, %v1296_v61 }
 0x68c   :  { %v1304_v62 = vadd.f32 %v1302_v17, %v3911_v14  ;;  %v1366_v14 = vld [vmem:[%s4962_s8 + $0x10] sm:$0xff] }
 0x68d   :  { %v1369_v49 = vpack.c.bf16 %v1367_v13, %v1366_v14  ;;  %v1486_v17 = vld [vmem:[%s4964_s10 + $0x30] sm:$0xff]  ;;  %v1485_v14 = vld [vmem:[%s4964_s10 + $0x28] sm:$0xff] }
 0x68e   :  { %v1312_v0 = vsel %vm143_vm12, %v1304_v62, 0.0 }
 0x68f   :  { %1313 = vadd.xlane.f32.xlu0 %v1312_v0  ;;  %1383 = vmatpush.bf16.msra.mxu3 %v1369_v49 }
 0x693   :  { %1384 = vmatpush.bf16.msra.mxu3 %v1368_v18 }
 0x6ef   :  { %v1323_v59 = vpop.xlane.xlu1 %1322 }
 0x6f0   :  { %v1327_v7 = vmul.f32 %v1323_v59, %v3717_v41 }
 0x6f2   :  { %v1329_v10 = vadd.f32 1e-12, %v1327_v7 }
 0x6f4   :  { %3451 = vrsqrt.f32 %v1329_v10  ;;  %vm1337_vm7 = vweird.f32 %v1329_v10 }
 0x6fa   :  { %v3452_v55 = vpop.eup %3451 }
 0x6fb   :  { %v1332_v19 = vmul.f32 %v3452_v55, %v1329_v10  ;;  %vm1338_vm6 = vweird.f32 %v3452_v55  ;;  %v1484_v10 = vld [vmem:[%s4964_s10 + $0x20] sm:$0xff] }
 0x6fc   :  { %vm1339_vm8 = vmor %vm1337_vm7, %vm1338_vm6  ;;  %v1490_v49 = vpack.c.bf16 %v1485_v14, %v1484_v10  ;;  %vm1497_vm7 = vcmask 523264  }
 0x6fd   :  { %v1333_v20 = vmul.f32 %v3452_v55, %v1332_v19 }
 0x6ff   :  { %v1334_v26 = vmul.f32 0.5, %v1333_v20 }
 0x701   :  { %v1335_v27 = vsub.f32 1.5, %v1334_v26 }
 0x702   :  { %v1314_v57 = vpop.xlane.xlu0 %1313 }
 0x703   :  { %v1316_v1 = vmul.f32 %v1314_v57, %v3717_v41  ;;  %v1336_v2 = vmul.f32 %v3452_v55, %v1335_v27 }
 0x705   :  { %v1318_v6 = vsub.f32 %v1304_v62, %v1316_v1  ;;  %v1340_v30 = vsel %vm1339_vm8, %v3452_v55, %v1336_v2  ;;  %v1487_v62 = vld [vmem:[%s4964_s10 + $0x38] sm:$0xff] }
 0x706   :  { %v1351_v33 = vmul.f32 %v1340_v30, %v1317_v37  ;;  %v1491_v57 = vpack.c.bf16 %v1487_v62, %v1486_v17  ;;  %v1480_v30 = vld [vmem:[%s4964_s10] sm:$0xff] }
 0x707   :  { %v1320_v5 = vmul.f32 %v1318_v6, %v1318_v6 }
 0x708   :  { %v1356_v15 = vmul.f32 %v3386_v31, %v1351_v33  ;;  %1505 = vmatpush.bf16.msrb.mxu0 %v1491_v57 }
 0x709   :  { %v1324_v12 = vsel %vm143_vm12, %v1320_v5, 0.0 }
 0x70a   :  { %1325 = vadd.xlane.f32.xlu2 %v1324_v12  ;;  %v4244_v40 = vadd.f32 %v3387_v60, %v1356_v15 }
 0x70c   :  { %1506 = vmatpush.bf16.msrb.mxu0 %v1490_v49 }
 0x77d   :  { %v1326_v21 = vpop.xlane.xlu2 %1325 }
 0x77e   :  { %v1328_v23 = vmul.f32 %v1326_v21, %v3717_v41  ;;  %v1482_v21 = vld [vmem:[%s4964_s10 + $0x10] sm:$0xff] }
 0x780   :  { %v1330_v24 = vadd.f32 1e-12, %v1328_v23  ;;  %v1483_v23 = vld [vmem:[%s4964_s10 + $0x18] sm:$0xff] }
 0x781   :  { %v1489_v26 = vpack.c.bf16 %v1483_v23, %v1482_v21 }
 0x782   :  { %3453 = vrsqrt.f32 %v1330_v24  ;;  %vm1347_vm10 = vweird.f32 %v1330_v24 }
 0x783   :  { %1507 = vmatpush.bf16.msrb.mxu0 %v1489_v26 }
 0x788   :  { %v3454_v28 = vpop.eup %3453 }
 0x789   :  { %v1342_v63 = vmul.f32 %v3454_v28, %v1330_v24  ;;  %vm1348_vm9 = vweird.f32 %v3454_v28 }
 0x78a   :  { %vm1349_vm11 = vmor %vm1347_vm10, %vm1348_vm9 }
 0x78b   :  { %v1343_v29 = vmul.f32 %v3454_v28, %v1342_v63 }
 0x78d   :  { %v1344_v51 = vmul.f32 0.5, %v1343_v29 }
 0x78f   :  { %v1345_v9 = vsub.f32 1.5, %v1344_v51  ;;  %v1481_v51 = vld [vmem:[%s4964_s10 + $0x8] sm:$0xff] }
 0x791   :  { %v1346_v34 = vmul.f32 %v3454_v28, %v1345_v9 }
 0x793   :  { %v1350_v35 = vsel %vm1349_vm11, %v3454_v28, %v1346_v34 }
 0x794   :  { %v1352_v8 = vmul.f32 %v1350_v35, %v1318_v6 }
 0x796   :  { %v1357_v36 = vmul.f32 %v3386_v31, %v1352_v8  ;;  %v1488_v31 = vpack.c.bf16 %v1481_v51, %v1480_v30 }
 0x798   :  { %v4246_v42 = vadd.f32 %v3387_v60, %v1357_v36  ;;  %1508 = vmatpush.bf16.msrb.mxu0 %v1488_v31 }
 0x79a   :  { %v1363_v43 = vpack.c.bf16 %v4246_v42, %v4244_v40 }
 0x79c   :  { %3206 = vmatmul.msk.bf16.vlgmr.msra.gmra.mxu3 %vm143_vm12, %v1363_v43 }
 0x81f   :  { %v1386_v38 = vpop.f32.mrf.mxu3 }
 0x820   :  { %v4254_v47 = vadd.f32 %v3388_v45, %v1386_v38 }
 0x822   :  { %v4257_v56 = vmul.f32 0.70710677, %v4254_v47 }
 0x824   :  { %v1395_v25 = vmul.f32 %v4257_v56, %v4257_v56 }
 0x826   :  { %v1396_v32 = vmin.f32 %v1395_v25, 16.0 }
 0x827   :  { %v1388_v22 = vpop.f32.mrf.mxu3 }
 0x828   :  { %v1397_v50 = vmul.f32 2.1237322e-06, %v1396_v32  ;;  %v1408_v52 = vmul.f32 3.8918573e-05, %v1396_v32  ;;  %v4261_v54 = vadd.f32 %v3388_v45, %v1388_v22 }
 0x82a   :  { %v1398_v37 = vadd.f32 0.00028619796, %v1397_v50  ;;  %v1409_v46 = vadd.f32 0.001143296, %v1408_v52  ;;  %v4264_v44 = vmul.f32 0.70710677, %v4261_v54 }
 0x82c   :  { %v1410_v3 = vmul.f32 %v1409_v46, %v1396_v32  ;;  %v1435_v39 = vmul.f32 %v4264_v44, %v4264_v44  ;;  %v1399_v53 = vmul.f32 %v1398_v37, %v1396_v32 }
 0x82e   :  { %v1411_v58 = vadd.f32 0.014752088, %v1410_v3  ;;  %v4268_v61 = vmin.f32 %v1435_v39, 16.0  ;;  %v1400_v5 = vadd.f32 0.0036580483, %v1399_v53 }
 0x830   :  { %v1412_v0 = vmul.f32 %v1411_v58, %v1396_v32  ;;  %v1437_v1 = vmul.f32 2.1237322e-06, %v4268_v61  ;;  %v1448_v6 = vmul.f32 3.8918573e-05, %v4268_v61  ;;  %v1401_v16 = vmul.f32 %v1400_v5, %v1396_v32 }
 0x832   :  { %v1413_v12 = vadd.f32 0.112945676, %v1412_v0  ;;  %v1438_v59 = vadd.f32 0.00028619796, %v1437_v1  ;;  %v1449_v7 = vadd.f32 0.001143296, %v1448_v6 }
 0x833   :  { %v1402_v28 = vadd.f32 0.05243302, %v1401_v16  ;;  %v1391_v16 = vmul.f32 0.5, %v4254_v47 }
 0x834   :  { %v1414_v13 = vmul.f32 %v1413_v12, %v1396_v32  ;;  %v1439_v55 = vmul.f32 %v1438_v59, %v4268_v61  ;;  %v1450_v11 = vmul.f32 %v1449_v7, %v4268_v61 }
 0x835   :  { %v1403_v33 = vmul.f32 %v1402_v28, %v1396_v32 }
 0x836   :  { %v1415_v18 = vadd.f32 0.4994258, %v1414_v13  ;;  %v1440_v19 = vadd.f32 0.0036580483, %v1439_v55  ;;  %v1451_v20 = vadd.f32 0.014752088, %v1450_v11 }
 0x837   :  { %v1404_v8 = vadd.f32 0.18741608, %v1403_v33 }
 0x838   :  { %v1416_v24 = vmul.f32 %v1415_v18, %v1396_v32  ;;  %v1452_v27 = vmul.f32 %v1451_v20, %v4268_v61  ;;  %v1441_v63 = vmul.f32 %v1440_v19, %v4268_v61  ;;  %v1392_v18 = vmul.f32 0.5, %v4261_v54 }
 0x839   :  { %v1405_v25 = vmul.f32 %v1404_v8, %v1396_v32  ;;  %v3231_v8 = vld [vmem:[%s4958_s4 + $0x210] sm:$0xff] }
 0x83a   :  { %v1417_v2 = vadd.f32 1.0, %v1416_v24  ;;  %v1453_v29 = vadd.f32 0.112945676, %v1452_v27  ;;  %v1442_v34 = vadd.f32 0.05243302, %v1441_v63 }
 0x83b   :  { %v1406_v3 = vadd.f32 1.1283791, %v1405_v25 }
 0x83c   :  { %3455 = vrcp.f32 %v1417_v2  ;;  %v1454_v9 = vmul.f32 %v1453_v29, %v4268_v61  ;;  %v1443_v43 = vmul.f32 %v1442_v34, %v4268_v61  ;;  %v1429_v50 = vand.u32 2147483648, %v1417_v2 }
 0x83d   :  { %v1427_v37 = vand.u32 2147483647, %v1417_v2  ;;  %vm1423_vm14 = vweird.f32 %v1417_v2  ;;  %v1407_v57 = vmul.f32 %v1406_v3, %v4257_v56  ;;  %v3230_v3 = vld [vmem:[%s4958_s4 + $0x208] sm:$0xff] }
 0x83e   :  { %v1455_v35 = vadd.f32 0.4994258, %v1454_v9  ;;  %v1444_v52 = vadd.f32 0.18741608, %v1443_v43  ;;  %v1430_v58 = vor.u32 1.1754944e-38, %v1429_v50  ;;  %v3232_v43 = vld [vmem:[%s4958_s4 + $0x218] sm:$0xff] }
 0x83f   :  { %vm1428_vm0 = vcmp.eq.f32.partialorder %v1427_v37, 8.507059e+37  ;;  %v4348_v25 = vpack.c.bf16 %v3232_v43, %v3231_v8  ;;  %v3213_v50 = vld [vmem:[%s4958_s4 + $0x180] sm:$0xff]  ;;  %v3255_v8 = vld [vmem:[%s4958_s4 + $0x2d0] sm:$0xff]  ;;  %v3256_v43 = vld [vmem:[%s4958_s4 + $0x2d8] sm:$0xff] }
 0x840   :  { %v1456_v60 = vmul.f32 %v1455_v35, %v4268_v61  ;;  %v1445_v17 = vmul.f32 %v1444_v52, %v4268_v61  ;;  %v3214_v52 = vld [vmem:[%s4958_s4 + $0x188] sm:$0xff]  ;;  %v3229_v37 = vld [vmem:[%s4958_s4 + $0x200] sm:$0xff] }
 0x841   :  { %1724 = vmatpush.bf16.msrb.mxu2 %v4348_v25 }
 0x842   :  { %v3456_v15 = vpop.eup %3455  ;;  %v1457_v45 = vadd.f32 1.0, %v1456_v60  ;;  %v1446_v1 = vadd.f32 1.1283791, %v1445_v17  ;;  %v3215_v60 = vld [vmem:[%s4958_s4 + $0x190] sm:$0xff] }
 0x843   :  { %v1419_v36 = vmul.f32 %v3456_v15, %v1417_v2  ;;  %vm1424_vm13 = vweird.f32 %v3456_v15 }
 0x844   :  { %3457 = vrcp.f32 %v1457_v45  ;;  %vm1425_vm15 = vmor %vm1423_vm14, %vm1424_vm13  ;;  %v1469_v6 = vand.u32 2147483648, %v1457_v45  ;;  %v1467_v59 = vand.u32 2147483647, %v1457_v45  ;;  %vm1463_vm2 = vweird.f32 %v1457_v45 }
 0x845   :  { %v1420_v38 = vsub.f32 1.0, %v1419_v36  ;;  %v1447_v13 = vmul.f32 %v1446_v1, %v4264_v44  ;;  %v3389_v44 = vld [vmem:[%s4961_s7 + $0x3] ss:$0 sm:$0xff]  ;;  %v3220_v1 = vld [vmem:[%s4958_s4 + $0x1b8] sm:$0xff] }
 0x846   :  { %v1470_v10 = vor.u32 1.1754944e-38, %v1469_v6  ;;  %vm1468_vm6 = vcmp.eq.f32.partialorder %v1467_v59, 8.507059e+37  ;;  %v3235_v6 = vld [vmem:[%s4958_s4 + $0x230] sm:$0xff] }
 0x847   :  { %v1421_v22 = vmul.f32 %v3456_v15, %v1420_v38  ;;  %v3248_v38 = vld [vmem:[%s4958_s4 + $0x298] sm:$0xff]  ;;  %v3251_v59 = vld [vmem:[%s4958_s4 + $0x2b0] sm:$0xff] }
 0x849   :  { %v1422_v46 = vadd.f32 %v3456_v15, %v1421_v22 }
 0x84a   :  { %v3458_v39 = vpop.eup %3457 }
 0x84b   :  { %v1426_v53 = vsel %vm1425_vm15, %v3456_v15, %v1422_v46  ;;  %v1459_v62 = vmul.f32 %v3458_v39, %v1457_v45  ;;  %vm1464_vm1 = vweird.f32 %v3458_v39  ;;  %v3216_v15 = vld [vmem:[%s4958_s4 + $0x198] sm:$0xff]  ;;  %v3247_v45 = vld [vmem:[%s4958_s4 + $0x290] sm:$0xff]  ;;  %v4364_v46 = vpack.c.bf16 %v3214_v52, %v3213_v50  ;;  %v3221_v52 = vld [vmem:[%s4958_s4 + $0x1c0] sm:$0xff] }
 0x84c   :  { %v1431_v0 = vsel %vm1428_vm0, %v1430_v58, %v1426_v53  ;;  %vm1465_vm3 = vmor %vm1463_vm2, %vm1464_vm1  ;;  %v4337_v36 = vpack.c.bf16 %v3216_v15, %v3215_v60  ;;  %v4350_v22 = vpack.c.bf16 %v3248_v38, %v3247_v45  ;;  %v3246_v53 = vld [vmem:[%s4958_s4 + $0x288] sm:$0xff]  ;;  %v4375_v58 = vpack.c.bf16 %v3230_v3, %v3229_v37  ;;  %v3239_v60 = vld [vmem:[%s4958_s4 + $0x250] sm:$0xff] }
 0x84d   :  { %v1460_v32 = vsub.f32 1.0, %v1459_v62  ;;  %v1432_v5 = vmul.f32 %v1431_v0, %v1407_v57 }
 0x84e   :  { %1708 = vmatpush.bf16.msrb.mxu1 %v4337_v36  ;;  %1740 = vmatpush.bf16.msrb.mxu3 %v4350_v22 }
 0x84f   :  { %v1461_v12 = vmul.f32 %v3458_v39, %v1460_v32  ;;  %v3207_v14 = vclamps-f32 %v1432_v5, 1.0  ;;  %1725 = vmatpush.bf16.msrb.mxu2 %v4375_v58  ;;  %v3219_v32 = vld [vmem:[%s4958_s4 + $0x1b0] sm:$0xff] }
 0x850   :  { %v4392_v5 = vpack.c.bf16 %v3220_v1, %v3219_v32  ;;  %v3253_v32 = vld [vmem:[%s4958_s4 + $0x2c0] sm:$0xff]  ;;  %v3254_v1 = vld [vmem:[%s4958_s4 + $0x2c8] sm:$0xff] }
 0x851   :  { %v1462_v7 = vadd.f32 %v3458_v39, %v1461_v12  ;;  %v1475_v11 = vadd.f32 1.0, %v3207_v14  ;;  %v3236_v12 = vld [vmem:[%s4958_s4 + $0x238] sm:$0xff] }
 0x852   :  { %1709 = vmatpush.bf16.msrb.mxu1 %v4364_v46 }
 0x853   :  { %v1466_v61 = vsel %vm1465_vm3, %v3458_v39, %v1462_v7  ;;  %v1477_v20 = vmul.f32 %v1475_v11, %v1391_v16  ;;  %v3245_v39 = vld [vmem:[%s4958_s4 + $0x280] sm:$0xff]  ;;  %v3252_v7 = vld [vmem:[%s4958_s4 + $0x2b8] sm:$0xff] }
 0x854   :  { %v1471_v49 = vsel %vm1468_vm6, %v1470_v10, %v1466_v61  ;;  %v4377_v17 = vpack.c.bf16 %v3246_v53, %v3245_v39  ;;  %v4403_v10 = vpack.c.bf16 %v3236_v12, %v3235_v6  ;;  %v4405_v14 = vpack.c.bf16 %v3252_v7, %v3251_v59  ;;  %v3218_v61 = vld [vmem:[%s4958_s4 + $0x1a8] sm:$0xff]  ;;  %v3249_v16 = vld [vmem:[%s4958_s4 + $0x2a0] sm:$0xff] }
 0x855   :  { %v1472_v55 = vmul.f32 %v1471_v49, %v1447_v13  ;;  %v3217_v13 = vld [vmem:[%s4958_s4 + $0x1a0] sm:$0xff]  ;;  %v4476_v39 = vpack.c.bf16 %v3256_v43, %v3255_v8  ;;  %v3222_v53 = vld [vmem:[%s4958_s4 + $0x1c8] sm:$0xff] }
 0x856   :  { %1741 = vmatpush.bf16.msrb.mxu3 %v4377_v17  ;;  %v3233_v49 = vld [vmem:[%s4958_s4 + $0x220] sm:$0xff]  ;;  %1781 = vmatpush.bf16.msra.mxu1 %v4392_v5  ;;  %v4417_v11 = vpack.c.bf16 %v3218_v61, %v3217_v13  ;;  %v1594_v12 = vpack.c.bf16 %v3222_v53, %v3221_v52  ;;  %v1650_v13 = vpack.c.bf16 %v3254_v1, %v3253_v32  ;;  %v3227_v61 = vld [vmem:[%s4958_s4 + $0x1f0] sm:$0xff]  ;;  %v3274_v52 = vld [vmem:[%s4960_s6 + $0x28] sm:$0xff] }
 0x857   :  { %v3208_v56 = vclamps-f32 %v1472_v55, 1.0  ;;  %1797 = vmatpush.bf16.msra.mxu2 %v4403_v10 }
 0x859   :  { %v1476_v19 = vadd.f32 1.0, %v3208_v56  ;;  %v3234_v56 = vld [vmem:[%s4958_s4 + $0x228] sm:$0xff] }
 0x85a   :  { %1813 = vmatpush.bf16.msra.mxu3 %v4405_v14  ;;  %1782 = vmatpush.bf16.msra.mxu1 %v4417_v11 }
 0x85b   :  { %v1478_v21 = vmul.f32 %v1476_v19, %v1392_v18  ;;  %v3250_v18 = vld [vmem:[%s4958_s4 + $0x2a8] sm:$0xff] }
 0x85d   :  { %v1479_v23 = vpack.c.bf16 %v1478_v21, %v1477_v20  ;;  %v4431_v20 = vpack.c.bf16 %v3234_v56, %v3233_v49  ;;  %v4433_v21 = vpack.c.bf16 %v3250_v18, %v3249_v16  ;;  %v3228_v49 = vld [vmem:[%s4958_s4 + $0x1f8] sm:$0xff]  ;;  %v3259_v16 = vld [vmem:[%s4958_s4 + $0x2f0] sm:$0xff] }
 0x85e   :  { %v3244_v56 = vld [vmem:[%s4958_s4 + $0x278] sm:$0xff] }
 0x85f   :  { %3210 = vmatmul.msk.bf16.vlgmr.msrb.gmra.mxu0 %vm1497_vm7, %v1479_v23  ;;  %1798 = vmatpush.bf16.msra.mxu2 %v4431_v20  ;;  %v3260_v18 = vld [vmem:[%s4958_s4 + $0x2f8] sm:$0xff] }
 0x860   :  { %1814 = vmatpush.bf16.msra.mxu3 %v4433_v21 }
 0x8dc   :  { %v1510_v24 = vpop.f32.mrf.mxu0 }
 0x8dd   :  { %v1511_v26 = vadd.f32 %v3389_v44, %v1510_v24 }
 0x8df   :  { %v1515_v27 = vadd.f32 %v1511_v26, %v4244_v40 }
 0x8e1   :  { %v1521_v28 = vsel %vm143_vm12, %v1515_v27, 0.0 }
 0x8e2   :  { %1522 = vadd.xlane.f32.xlu0 %v1521_v28 }
 0x8e4   :  { %v1512_v47 = vpop.f32.mrf.mxu0 }
 0x8e5   :  { %v1513_v54 = vadd.f32 %v3389_v44, %v1512_v47 }
 0x8e7   :  { %v1516_v2 = vadd.f32 %v1513_v54, %v4246_v42 }
 0x8e9   :  { %v1524_v63 = vsel %vm143_vm12, %v1516_v2, 0.0 }
 0x8ea   :  { %1525 = vadd.xlane.f32.xlu2 %v1524_v63  ;;  %v3390_v63 = vld [vmem:[%s4961_s7 + $0x4] ss:$0 sm:$0xff] }
 0x955   :  { %v1523_v29 = vpop.xlane.xlu0 %1522 }
 0x956   :  { %v1527_v30 = vmul.f32 %v1523_v29, %v3717_v41 }
 0x958   :  { %v4317_v51 = vsub.f32 %v1515_v27, %v1527_v30 }
 0x95a   :  { %v1531_v9 = vmul.f32 %v4317_v51, %v4317_v51 }
 0x95c   :  { %v1533_v40 = vsel %vm143_vm12, %v1531_v9, 0.0  ;;  %v3391_v9 = vld [vmem:[%s4961_s7 + $0x5] ss:$0 sm:$0xff] }
 0x95d   :  { %v1526_v31 = vpop.xlane.xlu2 %1525  ;;  %1534 = vadd.xlane.f32.xlu1 %v1533_v40 }
 0x95e   :  { %v1528_v33 = vmul.f32 %v1526_v31, %v3717_v41 }
 0x960   :  { %v4323_v34 = vsub.f32 %v1516_v2, %v1528_v33 }
 0x962   :  { %v1532_v42 = vmul.f32 %v4323_v34, %v4323_v34 }
 0x964   :  { %v1536_v35 = vsel %vm143_vm12, %v1532_v42, 0.0  ;;  %v3223_v42 = vld [vmem:[%s4958_s4 + $0x1d0] sm:$0xff] }
 0x965   :  { %1537 = vadd.xlane.f32.xlu0 %v1536_v35  ;;  %v3224_v35 = vld [vmem:[%s4958_s4 + $0x1d8] sm:$0xff] }
 0x966   :  { %v4465_v50 = vpack.c.bf16 %v3224_v35, %v3223_v42 }
 0x9d0   :  { %v1535_v62 = vpop.xlane.xlu1 %1534 }
 0x9d1   :  { %v1539_v0 = vmul.f32 %v1535_v62, %v3717_v41  ;;  %v3237_v62 = vld [vmem:[%s4958_s4 + $0x240] sm:$0xff] }
 0x9d3   :  { %v1541_v57 = vadd.f32 1e-12, %v1539_v0 }
 0x9d5   :  { %3459 = vrsqrt.f32 %v1541_v57  ;;  %vm1549_vm9 = vweird.f32 %v1541_v57 }
 0x9d8   :  { %v1538_v55 = vpop.xlane.xlu0 %1537 }
 0x9d9   :  { %v1540_v19 = vmul.f32 %v1538_v55, %v3717_v41  ;;  %v3243_v55 = vld [vmem:[%s4958_s4 + $0x270] sm:$0xff] }
 0x9db   :  { %v3460_v23 = vpop.eup %3459  ;;  %v1542_v44 = vadd.f32 1e-12, %v1540_v19  ;;  %v1602_v19 = vpack.c.bf16 %v3228_v49, %v3227_v61 }
 0x9dc   :  { %v1544_v24 = vmul.f32 %v3460_v23, %v1541_v57  ;;  %vm1550_vm8 = vweird.f32 %v3460_v23  ;;  %v3238_v57 = vld [vmem:[%s4958_s4 + $0x248] sm:$0xff] }
 0x9dd   :  { %3461 = vrsqrt.f32 %v1542_v44  ;;  %vm1551_vm10 = vmor %vm1549_vm9, %vm1550_vm8  ;;  %vm1559_vm13 = vweird.f32 %v1542_v44  ;;  %v1622_v7 = vpack.c.bf16 %v3238_v57, %v3237_v62 }
 0x9de   :  { %v1545_v26 = vmul.f32 %v3460_v23, %v1544_v24  ;;  %v3225_v24 = vld [vmem:[%s4958_s4 + $0x1e0] sm:$0xff] }
 0x9e0   :  { %v1546_v27 = vmul.f32 0.5, %v1545_v26  ;;  %v3226_v26 = vld [vmem:[%s4958_s4 + $0x1e8] sm:$0xff] }
 0x9e2   :  { %v1547_v28 = vsub.f32 1.5, %v1546_v27  ;;  %v3241_v27 = vld [vmem:[%s4958_s4 + $0x260] sm:$0xff] }
 0x9e3   :  { %v3462_v47 = vpop.eup %3461 }
 0x9e4   :  { %v1548_v54 = vmul.f32 %v3460_v23, %v1547_v28  ;;  %v1554_v2 = vmul.f32 %v3462_v47, %v1542_v44  ;;  %vm1560_vm11 = vweird.f32 %v3462_v47  ;;  %v1658_v44 = vpack.c.bf16 %v3260_v18, %v3259_v16  ;;  %v3242_v28 = vld [vmem:[%s4958_s4 + $0x268] sm:$0xff] }
 0x9e5   :  { %vm1561_vm14 = vmor %vm1559_vm13, %vm1560_vm11  ;;  %v4652_v18 = vld [vmem:[%s4959_s5 + $0xe] ss:$0 sm:$0xff] }
 0x9e6   :  { %v1552_v29 = vsel %vm1551_vm10, %v3460_v23, %v1548_v54  ;;  %v1555_v30 = vmul.f32 %v3462_v47, %v1554_v2  ;;  %v1630_v23 = vpack.c.bf16 %v3244_v56, %v3243_v55  ;;  %v3258_v54 = vld [vmem:[%s4958_s4 + $0x2e8] sm:$0xff]  ;;  %v1601_v2 = vpack.c.bf16 %v3226_v26, %v3225_v24 }
 0x9e7   :  { %v1563_v40 = vmul.f32 %v1552_v29, %v4317_v51  ;;  %v3240_v51 = vld [vmem:[%s4958_s4 + $0x258] sm:$0xff] }
 0x9e8   :  { %v1556_v31 = vmul.f32 0.5, %v1555_v30  ;;  %v4474_v3 = vpack.c.bf16 %v3240_v51, %v3239_v60  ;;  %v4612_v60 = vld [vmem:[%s4959_s5 + $0x11] ss:$0 sm:$0xff] }
 0x9e9   :  { %v1568_v33 = vmul.f32 %v3390_v63, %v1563_v40 }
 0x9ea   :  { %v1557_v15 = vsub.f32 1.5, %v1556_v31 }
 0x9eb   :  { %v4463_v45 = vadd.f32 %v3391_v9, %v1568_v33 }
 0x9ec   :  { %v1558_v38 = vmul.f32 %v3462_v47, %v1557_v15  ;;  %v4617_v15 = vld [vmem:[%s4959_s5 + $0x15] ss:$0 sm:$0xff] }
 0x9ed   :  { %v4472_v37 = vpack.c.bf16 %v4463_v45, %v4463_v45 }
 0x9ee   :  { %v1562_v0 = vsel %vm1561_vm14, %v3462_v47, %v1558_v38  ;;  %v3257_v47 = vld [vmem:[%s4958_s4 + $0x2e0] sm:$0xff] }
 0x9ef   :  { %v1564_v6 = vmul.f32 %v1562_v0, %v4323_v34  ;;  %3277 = vmatmul.msk.bf16.vlgmr.msrb.gmra.mxu1 %vm143_vm12, %v4472_v37  ;;  %3278 = vmatmul.msk.bf16.vlgmr.msrb.gmra.mxu2 %vm143_vm12, %v4472_v37  ;;  %v1657_v29 = vpack.c.bf16 %v3258_v54, %v3257_v47 }
 0x9f0   :  { %3279 = vmatmul.msk.bf16.vlgmr.msrb.gmra.mxu3 %vm143_vm12, %v4472_v37  ;;  %1854 = vmatpush.bf16.msrb.mxu1 %v4465_v50 }
 0x9f1   :  { %v1569_v59 = vmul.f32 %v3390_v63, %v1564_v6  ;;  %1870 = vmatpush.bf16.msrb.mxu2 %v4474_v3  ;;  %1886 = vmatpush.bf16.msrb.mxu3 %v4476_v39  ;;  %v1629_v63 = vpack.c.bf16 %v3242_v28, %v3241_v27 }
 0x9f3   :  { %v4503_v34 = vadd.f32 %v3391_v9, %v1569_v59 }
 0x9f4   :  { %1855 = vmatpush.bf16.msrb.mxu1 %v1594_v12 }
 0x9f5   :  { %1871 = vmatpush.bf16.msrb.mxu2 %v1622_v7  ;;  %1887 = vmatpush.bf16.msrb.mxu3 %v1650_v13 }
 0x9ff   :  { %3281 = vmatmul.msk.bf16.vlgmr.msra.gmra.mxu1 %vm143_vm12, %v4472_v37  ;;  %3282 = vmatmul.msk.bf16.vlgmr.msra.gmra.mxu2 %vm143_vm12, %v4472_v37 }
 0xa00   :  { %3283 = vmatmul.msk.bf16.vlgmr.msra.gmra.mxu3 %vm143_vm12, %v4472_v37  ;;  %1927 = vmatpush.bf16.msra.mxu1 %v1602_v19 }
 0xa01   :  { %1943 = vmatpush.bf16.msra.mxu2 %v1630_v23  ;;  %1959 = vmatpush.bf16.msra.mxu3 %v1658_v44 }
 0xa04   :  { %1928 = vmatpush.bf16.msra.mxu1 %v1601_v2 }
 0xa05   :  { %1944 = vmatpush.bf16.msra.mxu2 %v1629_v63  ;;  %1960 = vmatpush.bf16.msra.mxu3 %v1657_v29 }
 0xa0f   :  { %3285 = vmatmul.msk.bf16.vlgmr.msrb.gmra.mxu1 %vm143_vm12, %v4472_v37  ;;  %3286 = vmatmul.msk.bf16.vlgmr.msrb.gmra.mxu2 %vm143_vm12, %v4472_v37 }
 0xa10   :  { %3287 = vmatmul.msk.bf16.vlgmr.msrb.gmra.mxu3 %vm143_vm12, %v4472_v37  ;;  %2001 = vmatpush.bf16.msrb.mxu1 %v4337_v36  ;;  %v1991_v36 = vpack.c.bf16 %v4503_v34, %v4503_v34 }
 0xa11   :  { %2014 = vmatpush.bf16.msrb.mxu2 %v4348_v25  ;;  %2027 = vmatpush.bf16.msrb.mxu3 %v4350_v22  ;;  %v4591_v22 = vld [vmem:[%s4959_s5 + $0x10] ss:$0 sm:$0xff] }
 0xa14   :  { %2002 = vmatpush.bf16.msrb.mxu1 %v4364_v46  ;;  %v4596_v46 = vld [vmem:[%s4959_s5 + $0x14] ss:$0 sm:$0xff] }
 0xa15   :  { %2015 = vmatpush.bf16.msrb.mxu2 %v4375_v58  ;;  %2028 = vmatpush.bf16.msrb.mxu3 %v4377_v17 }
 0xa1f   :  { %3289 = vmatmul.msk.bf16.vlgmr.msra.gmra.mxu1 %vm143_vm12, %v4472_v37  ;;  %3290 = vmatmul.msk.bf16.vlgmr.msra.gmra.mxu2 %vm143_vm12, %v4472_v37 }
 0xa20   :  { %3291 = vmatmul.msk.bf16.vlgmr.msra.gmra.mxu3 %vm143_vm12, %v4472_v37  ;;  %2065 = vmatpush.bf16.msra.mxu1 %v4392_v5  ;;  %v4627_v37 = vld [vmem:[%s4959_s5 + $0xd] ss:$0 sm:$0xff] }
 0xa21   :  { %2078 = vmatpush.bf16.msra.mxu2 %v4403_v10  ;;  %2091 = vmatpush.bf16.msra.mxu3 %v4405_v14 }
 0xa24   :  { %2066 = vmatpush.bf16.msra.mxu1 %v4417_v11  ;;  %v4603_v11 = vld [vmem:[%s4959_s5 + $0xc] ss:$0 sm:$0xff] }
 0xa25   :  { %2079 = vmatpush.bf16.msra.mxu2 %v4431_v20  ;;  %2092 = vmatpush.bf16.msra.mxu3 %v4433_v21 }
 0xa2f   :  { %3293 = vmatmul.msk.bf16.vlgmr.msrb.gmra.mxu1 %vm143_vm12, %v1991_v36  ;;  %3294 = vmatmul.msk.bf16.vlgmr.msrb.gmra.mxu2 %vm143_vm12, %v1991_v36 }
 0xa30   :  { %3295 = vmatmul.msk.bf16.vlgmr.msrb.gmra.mxu3 %vm143_vm12, %v1991_v36  ;;  %2129 = vmatpush.bf16.msrb.mxu1 %v4465_v50 }
 0xa31   :  { %2142 = vmatpush.bf16.msrb.mxu2 %v4474_v3  ;;  %2155 = vmatpush.bf16.msrb.mxu3 %v4476_v39  ;;  %v1688_v39 = vpack.c.bf16 %v3274_v52, %v3274_v52 }
 0xa33   :  { %v4631_v0 = vsel %vm984_vm4, %v1688_v39, 0 }
 0xa34   :  { %2130 = vmatpush.bf16.msrb.mxu1 %v1594_v12 }
 0xa35   :  { %2143 = vmatpush.bf16.msrb.mxu2 %v1622_v7  ;;  %2156 = vmatpush.bf16.msrb.mxu3 %v1650_v13  ;;  %v4640_v7 = vld [vmem:[%s4959_s5 + $0x12] ss:$0 sm:$0xff]  ;;  %v4645_v13 = vld [vmem:[%s4959_s5 + $0x16] ss:$0 sm:$0xff] }
 0xa3f   :  { %3297 = vmatmul.msk.bf16.vlgmr.msra.gmra.mxu1 %vm143_vm12, %v1991_v36  ;;  %3298 = vmatmul.msk.bf16.vlgmr.msra.gmra.mxu2 %vm143_vm12, %v1991_v36 }
 0xa40   :  { %3299 = vmatmul.msk.bf16.vlgmr.msra.gmra.mxu3 %vm143_vm12, %v1991_v36  ;;  %2193 = vmatpush.bf16.msra.mxu1 %v1602_v19 }
 0xa41   :  { %2206 = vmatpush.bf16.msra.mxu2 %v1630_v23  ;;  %2219 = vmatpush.bf16.msra.mxu3 %v1658_v44 }
 0xa44   :  { %2194 = vmatpush.bf16.msra.mxu1 %v1601_v2  ;;  %v4661_v2 = vld [vmem:[%s4959_s5 + $0x13] ss:$0 sm:$0xff] }
 0xa45   :  { %2207 = vmatpush.bf16.msra.mxu2 %v1629_v63  ;;  %2220 = vmatpush.bf16.msra.mxu3 %v1657_v29  ;;  %v4666_v63 = vld [vmem:[%s4959_s5 + $0x17] ss:$0 sm:$0xff] }
 0xa4f   :  { %3301 = vmatmul.msk.bf16.vlgmr.msrb.gmra.mxu1 %vm143_vm12, %v1991_v36  ;;  %3302 = vmatmul.msk.bf16.vlgmr.msrb.gmra.mxu2 %vm143_vm12, %v1991_v36 }
 0xa50   :  { %3303 = vmatmul.msk.bf16.vlgmr.msrb.gmra.mxu3 %vm143_vm12, %v1991_v36 }
 0xa51   :  { %2402 = vmatpush.bf16.msrb.mxu3 %v4631_v0 }
 0xa5f   :  { %3305 = vmatmul.msk.bf16.vlgmr.msra.gmra.mxu1 %vm143_vm12, %v1991_v36  ;;  %3306 = vmatmul.msk.bf16.vlgmr.msra.gmra.mxu2 %vm143_vm12, %v1991_v36 }
 0xa60   :  { %3307 = vmatmul.msk.bf16.vlgmr.msra.gmra.mxu3 %vm143_vm12, %v1991_v36 }
 0xa6c   :  { %v1711_v25 = vpop.f32.mrf.mxu1 }
 0xa6d   :  { %v1712_v40 = vadd.f32 %v4603_v11, %v1711_v25 }
 0xa6f   :  { %v1748_v35 = vpack.c.bf16 %v1712_v40, %v1712_v40 }
 0xa72   :  { %v1727_v58 = vpop.f32.mrf.mxu2 }
 0xa73   :  { %v1728_v17 = vadd.f32 %v4591_v22, %v1727_v58  ;;  %v1743_v5 = vpop.f32.mrf.mxu3 }
 0xa74   :  { %v1744_v10 = vadd.f32 %v4596_v46, %v1743_v5  ;;  %v1713_v14 = vpop.f32.mrf.mxu1  ;;  %v4673_v5 = vld [vmem:[%s4959_s5 + $0xf] ss:$0 sm:$0xff] }
 0xa75   :  { %v1749_v20 = vpack.c.bf16 %v1728_v17, %v1728_v17 }
 0xa76   :  { %v1747_v21 = vpack.c.bf16 %v1744_v10, %v1744_v10 }
 0xa77   :  { %v1754_v30 = vsel %vm380_vm5, %v1749_v20, 0 }
 0xa78   :  { %v2352_v9 = vsel %vm984_vm4, %v1747_v21, 0  ;;  %1763 = vmatpush.bf16.xpose.msra.mxu0 %v1754_v30 }
 0xa79   :  { %2361 = vmatpush.bf16.msrb.mxu1 %v2352_v9 }
 0xa7a   :  { %v1729_v31 = vpop.f32.mrf.mxu2 }
 0xa7b   :  { %v1745_v33 = vpop.f32.mrf.mxu3 }
 0xa7c   :  { %v1784_v42 = vpop.f32.mrf.mxu1 }
 0xa7d   :  { %v1785_v32 = vadd.f32 %v4627_v37, %v1784_v42 }
 0xa7f   :  { %3280 = vmatmul.msk.bf16.vlgmr.msra.gmra.mxu0 %vm380_vm5, %v1748_v35  ;;  %v1821_v59 = vpack.c.bf16 %v1785_v32, %v1785_v32 }
 0xa82   :  { %v1800_v51 = vpop.f32.mrf.mxu2 }
 0xa83   :  { %v1801_v8 = vadd.f32 %v4612_v60, %v1800_v51  ;;  %v1816_v43 = vpop.f32.mrf.mxu3 }
 0xa84   :  { %v1817_v38 = vadd.f32 %v4617_v15, %v1816_v43  ;;  %v1786_v50 = vpop.f32.mrf.mxu1 }
 0xa85   :  { %v1822_v3 = vpack.c.bf16 %v1801_v8, %v1801_v8 }
 0xa86   :  { %v1820_v53 = vpack.c.bf16 %v1817_v38, %v1817_v38 }
 0xa87   :  { %v1827_v62 = vsel %vm380_vm5, %v1822_v3, 0 }
 0xa88   :  { %v2373_v57 = vsel %vm984_vm4, %v1820_v53, 0  ;;  %1836 = vmatpush.bf16.xpose.msrb.mxu0 %v1827_v62 }
 0xa89   :  { %2382 = vmatpush.bf16.msrb.mxu2 %v2373_v57 }
 0xa8a   :  { %v1802_v1 = vpop.f32.mrf.mxu2 }
 0xa8b   :  { %v1818_v6 = vpop.f32.mrf.mxu3 }
 0xa8c   :  { %v1857_v12 = vpop.f32.mrf.mxu1 }
 0xa8d   :  { %v1858_v26 = vadd.f32 %v4652_v18, %v1857_v12 }
 0xa8f   :  { %3284 = vmatmul.msk.bf16.vlgmr.msrb.gmra.mxu0 %vm380_vm5, %v1821_v59  ;;  %v1894_v54 = vpack.c.bf16 %v1858_v26, %v1858_v26 }
 0xa92   :  { %v1873_v61 = vpop.f32.mrf.mxu2 }
 0xa93   :  { %v1874_v49 = vadd.f32 %v4640_v7, %v1873_v61  ;;  %v1889_v55 = vpop.f32.mrf.mxu3 }
 0xa94   :  { %v1890_v56 = vadd.f32 %v4645_v13, %v1889_v55  ;;  %v1859_v16 = vpop.f32.mrf.mxu1 }
 0xa95   :  { %v1895_v19 = vpack.c.bf16 %v1874_v49, %v1874_v49 }
 0xa96   :  { %v1893_v23 = vpack.c.bf16 %v1890_v56, %v1890_v56 }
 0xa97   :  { %v1900_v44 = vsel %vm380_vm5, %v1895_v19, 0 }
 0xa98   :  { %v2432_v24 = vsel %vm984_vm4, %v1893_v23, 0  ;;  %1909 = vmatpush.bf16.xpose.msra.mxu0 %v1900_v44 }
 0xa99   :  { %2441 = vmatpush.bf16.msra.mxu1 %v2432_v24 }
 0xa9a   :  { %v1875_v27 = vpop.f32.mrf.mxu2 }
 0xa9b   :  { %v1891_v28 = vpop.f32.mrf.mxu3 }
 0xa9c   :  { %v1930_v47 = vpop.f32.mrf.mxu1 }
 0xa9d   :  { %v1931_v30 = vadd.f32 %v4673_v5, %v1930_v47 }
 0xa9f   :  { %3288 = vmatmul.msk.bf16.vlgmr.msra.gmra.mxu0 %vm380_vm5, %v1894_v54  ;;  %v1967_v33 = vpack.c.bf16 %v1931_v30, %v1931_v30 }
 0xaa2   :  { %v1946_v29 = vpop.f32.mrf.mxu2 }
 0xaa3   :  { %v1947_v36 = vadd.f32 %v4661_v2, %v1946_v29  ;;  %v1962_v25 = vpop.f32.mrf.mxu3 }
 0xaa4   :  { %v1963_v58 = vadd.f32 %v4666_v63, %v1962_v25  ;;  %v1932_v17 = vpop.f32.mrf.mxu1 }
 0xaa5   :  { %v1968_v10 = vpack.c.bf16 %v1947_v36, %v1947_v36 }
 0xaa6   :  { %v1966_v14 = vpack.c.bf16 %v1963_v58, %v1963_v58 }
 0xaa7   :  { %v1973_v20 = vsel %vm380_vm5, %v1968_v10, 0 }
 0xaa8   :  { %v2473_v21 = vsel %vm984_vm4, %v1966_v14, 0  ;;  %1982 = vmatpush.bf16.xpose.msrb.mxu0 %v1973_v20 }
 0xaa9   :  { %2482 = vmatpush.bf16.msra.mxu3 %v2473_v21 }
 0xaaa   :  { %v1948_v9 = vpop.f32.mrf.mxu2 }
 0xaab   :  { %v1964_v40 = vpop.f32.mrf.mxu3 }
 0xaac   :  { %v2004_v31 = vpop.f32.mrf.mxu1 }
 0xaad   :  { %v2005_v52 = vadd.f32 %v4603_v11, %v2004_v31 }
 0xaaf   :  { %3292 = vmatmul.msk.bf16.vlgmr.msrb.gmra.mxu0 %vm380_vm5, %v1967_v33  ;;  %v2035_v62 = vpack.c.bf16 %v2005_v52, %v2005_v52 }
 0xab2   :  { %v2017_v42 = vpop.f32.mrf.mxu2 }
 0xab3   :  { %v2018_v35 = vadd.f32 %v4591_v22, %v2017_v42  ;;  %v2030_v51 = vpop.f32.mrf.mxu3 }
 0xab4   :  { %v4681_v8 = vadd.f32 %v4596_v46, %v2030_v51  ;;  %v2006_v43 = vpop.f32.mrf.mxu1 }
 0xab5   :  { %v2036_v38 = vpack.c.bf16 %v2018_v35, %v2018_v35 }
 0xab7   :  { %v2041_v50 = vsel %vm380_vm5, %v2036_v38, 0 }
 0xab8   :  { %2050 = vmatpush.bf16.xpose.msra.mxu0 %v2041_v50 }
 0xaba   :  { %v2019_v3 = vpop.f32.mrf.mxu2 }
 0xabb   :  { %v2032_v39 = vpop.f32.mrf.mxu3 }
 0xabc   :  { %v2068_v53 = vpop.f32.mrf.mxu1 }
 0xabd   :  { %v2069_v11 = vadd.f32 %v4627_v37, %v2068_v53 }
 0xabf   :  { %3296 = vmatmul.msk.bf16.vlgmr.msra.gmra.mxu0 %vm380_vm5, %v2035_v62  ;;  %v2099_v55 = vpack.c.bf16 %v2069_v11, %v2069_v11 }
 0xac2   :  { %v2081_v57 = vpop.f32.mrf.mxu2 }
 0xac3   :  { %v2082_v22 = vadd.f32 %v4612_v60, %v2081_v57  ;;  %v2094_v32 = vpop.f32.mrf.mxu3 }
 0xac4   :  { %v4688_v46 = vadd.f32 %v4617_v15, %v2094_v32  ;;  %v2070_v1 = vpop.f32.mrf.mxu1 }
 0xac5   :  { %v2100_v6 = vpack.c.bf16 %v2082_v22, %v2082_v22 }
 0xac7   :  { %v2105_v12 = vsel %vm380_vm5, %v2100_v6, 0 }
 0xac8   :  { %2114 = vmatpush.bf16.xpose.msrb.mxu0 %v2105_v12 }
 0xaca   :  { %v2083_v59 = vpop.f32.mrf.mxu2 }
 0xacb   :  { %v2096_v61 = vpop.f32.mrf.mxu3 }
 0xacc   :  { %v2132_v49 = vpop.f32.mrf.mxu1 }
 0xacd   :  { %v2133_v37 = vadd.f32 %v4652_v18, %v2132_v49 }
 0xacf   :  { %3300 = vmatmul.msk.bf16.vlgmr.msrb.gmra.mxu0 %vm380_vm5, %v2099_v55  ;;  %v2163_v28 = vpack.c.bf16 %v2133_v37, %v2133_v37 }
 0xad2   :  { %v2145_v56 = vpop.f32.mrf.mxu2 }
 0xad3   :  { %v2146_v60 = vadd.f32 %v4640_v7, %v2145_v56  ;;  %v2158_v16 = vpop.f32.mrf.mxu3 }
 0xad4   :  { %v4695_v15 = vadd.f32 %v4645_v13, %v2158_v16  ;;  %v2134_v19 = vpop.f32.mrf.mxu1 }
 0xad5   :  { %v2164_v23 = vpack.c.bf16 %v2146_v60, %v2146_v60 }
 0xad7   :  { %v2169_v44 = vsel %vm380_vm5, %v2164_v23, 0 }
 0xad8   :  { %2178 = vmatpush.bf16.xpose.msra.mxu0 %v2169_v44 }
 0xada   :  { %v2147_v24 = vpop.f32.mrf.mxu2 }
 0xadb   :  { %v2160_v26 = vpop.f32.mrf.mxu3 }
 0xadc   :  { %v2196_v27 = vpop.f32.mrf.mxu1 }
 0xadd   :  { %v2197_v18 = vadd.f32 %v4673_v5, %v2196_v27 }
 0xadf   :  { %3304 = vmatmul.msk.bf16.vlgmr.msra.gmra.mxu0 %vm380_vm5, %v2163_v28  ;;  %v2227_v10 = vpack.c.bf16 %v2197_v18, %v2197_v18 }
 0xae2   :  { %v2209_v47 = vpop.f32.mrf.mxu2 }
 0xae3   :  { %v2210_v7 = vadd.f32 %v4661_v2, %v2209_v47  ;;  %v2222_v54 = vpop.f32.mrf.mxu3 }
 0xae4   :  { %v4702_v13 = vadd.f32 %v4666_v63, %v2222_v54  ;;  %v2198_v29 = vpop.f32.mrf.mxu1 }
 0xae5   :  { %v2228_v36 = vpack.c.bf16 %v2210_v7, %v2210_v7 }
 0xae7   :  { %v2233_v25 = vsel %vm380_vm5, %v2228_v36, 0 }
 0xae8   :  { %2242 = vmatpush.bf16.xpose.msrb.mxu0 %v2233_v25 }
 0xaea   :  { %v2211_v58 = vpop.f32.mrf.mxu2 }
 0xaeb   :  { %v2224_v17 = vpop.f32.mrf.mxu3 }
 0xaef   :  { %3308 = vmatmul.msk.bf16.vlgmr.msrb.gmra.mxu0 %vm380_vm5, %v2227_v10 }
 0xafc   :  { %v1765_v14 = vpop.f32.mrf.mxu0 }
 0xafd   :  { %v1769_v20 = vmul.f32 0.35355338, %v1765_v14 }
 0xaff   :  { %v1770_v2 = vadd.f32 %v1769_v20, %v4087_v4 }
 0xb01   :  { %1771 = vst.msk [vmem:[#allocation2] sm:$0xff] %vm380_vm5, %v1770_v2 }
 0xb04   :  { %v1767_v63 = vpop.f32.mrf.mxu0 }
 0xb08   :  { %v2251_v21 = vld [vmem:[#allocation2] sm:$0xff] }
 0xb09   :  { %v2259_v30 = vsel %vm380_vm5, %v2251_v21, -inf }
 0xb0a   :  { %2260 = vmax.xlane.f32.xlu1 %v2259_v30 }
 0xb0c   :  { %v1838_v9 = vpop.f32.mrf.mxu0 }
 0xb0d   :  { %v1842_v40 = vmul.f32 0.35355338, %v1838_v9 }
 0xb0f   :  { %v1843_v5 = vadd.f32 %v1842_v40, %v4087_v4  ;;  %v2034_v40 = vpack.c.bf16 %v4681_v8, %v4681_v8 }
 0xb11   :  { %1844 = vst.msk [vmem:[#allocation2 + $0x8] sm:$0xff] %vm380_vm5, %v1843_v5 }
 0xb14   :  { %v1840_v31 = vpop.f32.mrf.mxu0 }
 0xb18   :  { %v2252_v3 = vld [vmem:[#allocation2 + $0x8] sm:$0xff] }
 0xb19   :  { %v2262_v53 = vsel %vm380_vm5, %v2252_v3, -inf }
 0xb1c   :  { %v1911_v33 = vpop.f32.mrf.mxu0 }
 0xb1d   :  { %v1915_v42 = vmul.f32 0.35355338, %v1911_v33 }
 0xb1f   :  { %v1916_v35 = vadd.f32 %v1915_v42, %v4087_v4 }
 0xb21   :  { %1917 = vst.msk [vmem:[#allocation2 + $0x10] sm:$0xff] %vm380_vm5, %v1916_v35 }
 0xb24   :  { %v1913_v51 = vpop.f32.mrf.mxu0 }
 0xb25   :  { %v2515_v51 = vsel %vm984_vm4, %v2034_v40, 0 }
 0xb28   :  { %v2253_v43 = vld [vmem:[#allocation2 + $0x10] sm:$0xff] }
 0xb29   :  { %v2265_v38 = vsel %vm380_vm5, %v2253_v43, -inf }
 0xb2a   :  { %2266 = vmax.xlane.f32.xlu2 %v2265_v38  ;;  %v3275_v38 = vld [vmem:[%s4960_s6 + $0x30] sm:$0xff] }
 0xb2c   :  { %v1984_v50 = vpop.f32.mrf.mxu0 }
 0xb2d   :  { %v1988_v52 = vmul.f32 0.35355338, %v1984_v50 }
 0xb2f   :  { %v1989_v39 = vadd.f32 %v1988_v52, %v4087_v4  ;;  %v1691_v52 = vpack.c.bf16 %v3275_v38, %v3275_v38 }
 0xb31   :  { %1990 = vst.msk [vmem:[#allocation2 + $0x18] sm:$0xff] %vm380_vm5, %v1989_v39  ;;  %v2452_v39 = vsel %vm984_vm4, %v1691_v52, 0  ;;  %v2226_v52 = vpack.c.bf16 %v4702_v13, %v4702_v13 }
 0xb32   :  { %2263 = vmax.xlane.f32.xlu2 %v2262_v53  ;;  %2461 = vmatpush.bf16.msra.mxu2 %v2452_v39 }
 0xb34   :  { %v1986_v62 = vpop.f32.mrf.mxu0 }
 0xb38   :  { %v2254_v47 = vld [vmem:[#allocation2 + $0x18] sm:$0xff] }
 0xb39   :  { %v2268_v7 = vsel %vm380_vm5, %v2254_v47, -inf }
 0xb3c   :  { %v2052_v57 = vpop.f32.mrf.mxu0 }
 0xb3d   :  { %v2056_v22 = vmul.f32 0.35355338, %v2052_v57 }
 0xb3f   :  { %v2057_v32 = vadd.f32 %v2056_v22, %v4127_v48 }
 0xb41   :  { %2058 = vst.msk [vmem:[#allocation2 + $0x20] sm:$0xff] %vm380_vm5, %v2057_v32 }
 0xb44   :  { %v2054_v1 = vpop.f32.mrf.mxu0 }
 0xb48   :  { %v2255_v63 = vld [vmem:[#allocation2 + $0x20] sm:$0xff] }
 0xb4c   :  { %v2116_v6 = vpop.f32.mrf.mxu0 }
 0xb4d   :  { %v2120_v12 = vmul.f32 0.35355338, %v2116_v6 }
 0xb4f   :  { %v2121_v11 = vadd.f32 %v2120_v12, %v4127_v48 }
 0xb51   :  { %2122 = vst.msk [vmem:[#allocation2 + $0x28] sm:$0xff] %vm380_vm5, %v2121_v11 }
 0xb54   :  { %v2118_v4 = vpop.f32.mrf.mxu0 }
 0xb58   :  { %v2256_v27 = vld [vmem:[#allocation2 + $0x28] sm:$0xff] }
 0xb59   :  { %v2274_v28 = vsel %vm380_vm5, %v2256_v27, -inf }
 0xb5c   :  { %v2180_v59 = vpop.f32.mrf.mxu0 }
 0xb5d   :  { %v2184_v61 = vmul.f32 0.35355338, %v2180_v59 }
 0xb5f   :  { %v2185_v49 = vadd.f32 %v2184_v61, %v4127_v48 }
 0xb61   :  { %2186 = vst.msk [vmem:[#allocation2 + $0x30] sm:$0xff] %vm380_vm5, %v2185_v49  ;;  %v2162_v49 = vpack.c.bf16 %v4695_v15, %v4695_v15 }
 0xb64   :  { %v2182_v55 = vpop.f32.mrf.mxu0 }
 0xb68   :  { %v2257_v22 = vld [vmem:[#allocation2 + $0x30] sm:$0xff] }
 0xb69   :  { %v2277_v6 = vsel %vm380_vm5, %v2257_v22, -inf }
 0xb6c   :  { %v2244_v56 = vpop.f32.mrf.mxu0 }
 0xb6d   :  { %v2248_v60 = vmul.f32 0.35355338, %v2244_v56 }
 0xb6f   :  { %v2249_v16 = vadd.f32 %v2248_v60, %v4127_v48 }
 0xb71   :  { %2250 = vst.msk [vmem:[#allocation2 + $0x38] sm:$0xff] %vm380_vm5, %v2249_v16  ;;  %v2589_v16 = vsel %vm984_vm4, %v2162_v49, 0 }
 0xb74   :  { %v2246_v19 = vpop.f32.mrf.mxu0 }
 0xb78   :  { %v2258_v29 = vld [vmem:[#allocation2 + $0x38] sm:$0xff] }
 0xb79   :  { %v2280_v25 = vsel %vm380_vm5, %v2258_v29, -inf }
 0xb7d   :  { %v2261_v23 = vpop.xlane.xlu1 %2260 }
 0xb7e   :  { %v2283_v44 = vsub.f32 %v2251_v21, %v2261_v23  ;;  %v2271_v21 = vsel %vm380_vm5, %v2255_v63, -inf  ;;  %v2098_v23 = vpack.c.bf16 %v4688_v46, %v4688_v46 }
 0xb80   :  { %v2291_v37 = vmul.f32 1.442695, %v2283_v44  ;;  %v2536_v15 = vsel %vm984_vm4, %v2098_v23, 0 }
 0xb82   :  { %3463 = vpow2.f32 %v2291_v37 }
 0xb88   :  { %v3464_v24 = vpop.eup %3463 }
 0xb89   :  { %v2307_v26 = vsel %vm380_vm5, %v3464_v24, 0.0 }
 0xb8a   :  { %2308 = vadd.xlane.f32.xlu0 %v2307_v26 }
 0xb92   :  { %2275 = vmax.xlane.f32.xlu0 %v2274_v28 }
 0xb9a   :  { %2269 = vmax.xlane.f32.xlu0 %v2268_v7  ;;  %v3273_v7 = vld [vmem:[%s4960_s6 + $0x20] sm:$0xff] }
 0xb9b   :  { %v1685_v46 = vpack.c.bf16 %v3273_v7, %v3273_v7 }
 0xb9d   :  { %v2267_v48 = vpop.xlane.xlu2 %2266 }
 0xb9e   :  { %v2285_v54 = vsub.f32 %v2253_v43, %v2267_v48  ;;  %v2412_v48 = vsel %vm984_vm4, %v1685_v46, 0 }
 0xb9f   :  { %2421 = vmatpush.bf16.msra.mxu0 %v2412_v48 }
 0xba0   :  { %v2295_v36 = vmul.f32 1.442695, %v2285_v54 }
 0xba2   :  { %3465 = vpow2.f32 %v2295_v36  ;;  %2281 = vmax.xlane.f32.xlu0 %v2280_v25 }
 0xba5   :  { %v2264_v18 = vpop.xlane.xlu2 %2263 }
 0xba6   :  { %v2284_v58 = vsub.f32 %v2252_v3, %v2264_v18 }
 0xba8   :  { %v3466_v17 = vpop.eup %3465  ;;  %v2293_v10 = vmul.f32 1.442695, %v2284_v58 }
 0xba9   :  { %v2313_v14 = vsel %vm380_vm5, %v3466_v17, 0.0 }
 0xbaa   :  { %3467 = vpow2.f32 %v2293_v10  ;;  %2314 = vadd.xlane.f32.xlu1 %v2313_v14 }
 0xbb0   :  { %v3468_v20 = vpop.eup %3467 }
 0xbb1   :  { %v2310_v2 = vsel %vm380_vm5, %v3468_v20, 0.0 }
 0xbb2   :  { %2311 = vadd.xlane.f32.xlu1 %v2310_v2 }
 0xbba   :  { %2272 = vmax.xlane.f32.xlu1 %v2271_v21 }
 0xbfd   :  { %v2309_v30 = vpop.xlane.xlu0 %2308 }
 0xbfe   :  { %3469 = vrcp.f32 %v2309_v30 }
 0xc04   :  { %v3470_v9 = vpop.eup %3469 }
 0xc05   :  { %v2339_v5 = vmul.f32 %v3470_v9, %v3464_v24  ;;  %v2276_v31 = vpop.xlane.xlu0 %2275 }
 0xc06   :  { %v2288_v33 = vsub.f32 %v2256_v27, %v2276_v31 }
 0xc07   :  { %v2347_v42 = vpack.c.bf16 %v2339_v5, %v2339_v5 }
 0xc08   :  { %v2301_v35 = vmul.f32 1.442695, %v2288_v33 }
 0xc09   :  { %3309 = vmatmul.msk.bf16.vlgmr.msrb.gmra.mxu1 %vm380_vm5, %v2347_v42 }
 0xc0a   :  { %3471 = vpow2.f32 %v2301_v35  ;;  %2524 = vmatpush.bf16.msrb.mxu1 %v2515_v51 }
 0xc0d   :  { %v2270_v43 = vpop.xlane.xlu0 %2269 }
 0xc0e   :  { %v2286_v50 = vsub.f32 %v2254_v47, %v2270_v43 }
 0xc10   :  { %v4740_v3 = vpop.eup %3471  ;;  %v2297_v8 = vmul.f32 1.442695, %v2286_v50 }
 0xc11   :  { %v2322_v53 = vsel %vm380_vm5, %v4740_v3, 0.0 }
 0xc12   :  { %3473 = vpow2.f32 %v2297_v8  ;;  %2323 = vadd.xlane.f32.xlu2 %v2322_v53  ;;  %v2627_v8 = vsel %vm984_vm4, %v2226_v52, 0 }
 0xc15   :  { %v2282_v62 = vpop.xlane.xlu0 %2281 }
 0xc16   :  { %v2290_v57 = vsub.f32 %v2258_v29, %v2282_v62 }
 0xc18   :  { %v4745_v32 = vpop.eup %3473  ;;  %v2305_v1 = vmul.f32 1.442695, %v2290_v57 }
 0xc19   :  { %v2316_v12 = vsel %vm380_vm5, %v4745_v32, 0.0 }
 0xc1a   :  { %3475 = vpow2.f32 %v2305_v1  ;;  %2278 = vmax.xlane.f32.xlu2 %v2277_v6  ;;  %2317 = vadd.xlane.f32.xlu1 %v2316_v12 }
 0xc1d   :  { %v2315_v11 = vpop.xlane.xlu1 %2314 }
 0xc1e   :  { %3477 = vrcp.f32 %v2315_v11 }
 0xc20   :  { %v4750_v4 = vpop.eup %3475 }
 0xc21   :  { %v2328_v59 = vsel %vm380_vm5, %v4750_v4, 0.0 }
 0xc22   :  { %2329 = vadd.xlane.f32.xlu1 %v2328_v59 }
 0xc24   :  { %v3478_v61 = vpop.eup %3477 }
 0xc25   :  { %v2341_v55 = vmul.f32 %v3478_v61, %v3466_v17  ;;  %v2312_v56 = vpop.xlane.xlu1 %2311 }
 0xc26   :  { %3479 = vrcp.f32 %v2312_v56 }
 0xc27   :  { %v2427_v60 = vpack.c.bf16 %v2341_v55, %v2341_v55 }
 0xc29   :  { %3313 = vmatmul.msk.bf16.vlgmr.msra.gmra.mxu1 %vm380_vm5, %v2427_v60 }
 0xc2a   :  { %2598 = vmatpush.bf16.msra.mxu1 %v2589_v16 }
 0xc2c   :  { %v3480_v19 = vpop.eup %3479 }
 0xc2d   :  { %v2340_v44 = vmul.f32 %v3480_v19, %v3468_v20  ;;  %v2273_v37 = vpop.xlane.xlu1 %2272 }
 0xc2e   :  { %v2287_v24 = vsub.f32 %v2255_v63, %v2273_v37 }
 0xc2f   :  { %v2368_v26 = vpack.c.bf16 %v2340_v44, %v2340_v44 }
 0xc30   :  { %v2299_v27 = vmul.f32 1.442695, %v2287_v24 }
 0xc31   :  { %3310 = vmatmul.msk.bf16.vlgmr.msrb.gmra.mxu2 %vm380_vm5, %v2368_v26 }
 0xc32   :  { %3481 = vpow2.f32 %v2299_v27  ;;  %2545 = vmatpush.bf16.msrb.mxu2 %v2536_v15 }
 0xc38   :  { %v3482_v28 = vpop.eup %3481 }
 0xc39   :  { %v2319_v47 = vsel %vm380_vm5, %v3482_v28, 0.0 }
 0xc3a   :  { %2320 = vadd.xlane.f32.xlu2 %v2319_v47 }
 0xc85   :  { %v2324_v54 = vpop.xlane.xlu2 %2323 }
 0xc86   :  { %v2363_v29 = vpop.f32.mrf.mxu1 }
 0xc87   :  { %v2367_v36 = vpack.c.bf16 %v2363_v29, %v2363_v29 }
 0xc89   :  { %3312 = vmatmul.msk.bf16.vlgmr.msra.gmra.mxu0 %vm380_vm5, %v2367_v36  ;;  %v3404_v36 = vld [vmem:[%s4961_s7 + $0x6] ss:$0 sm:$0xff] }
 0xc8d   :  { %v2279_v25 = vpop.xlane.xlu2 %2278  ;;  %v2318_v31 = vpop.xlane.xlu1 %2317 }
 0xc8e   :  { %v2289_v18 = vsub.f32 %v2257_v22, %v2279_v25  ;;  %v2365_v58 = vpop.f32.mrf.mxu1 }
 0xc90   :  { %v2303_v17 = vmul.f32 1.442695, %v2289_v18 }
 0xc92   :  { %3483 = vpow2.f32 %v2303_v17 }
 0xc93   :  { %3485 = vrcp.f32 %v2324_v54 }
 0xc95   :  { %v2330_v55 = vpop.xlane.xlu1 %2329 }
 0xc98   :  { %v3484_v10 = vpop.eup %3483 }
 0xc99   :  { %v2325_v14 = vsel %vm380_vm5, %v3484_v10, 0.0  ;;  %v3486_v30 = vpop.eup %3485 }
 0xc9a   :  { %2326 = vadd.xlane.f32.xlu0 %v2325_v14  ;;  %v2344_v9 = vmul.f32 %v3486_v30, %v4740_v3 }
 0xc9c   :  { %v2531_v35 = vpack.c.bf16 %v2344_v9, %v2344_v9 }
 0xca6   :  { %v2443_v20 = vpop.f32.mrf.mxu1 }
 0xca7   :  { %v2447_v2 = vpack.c.bf16 %v2443_v20, %v2443_v20 }
 0xca9   :  { %3314 = vmatmul.msk.bf16.vlgmr.msra.gmra.mxu2 %vm380_vm5, %v2447_v2 }
 0xcaa   :  { %2615 = vmatpush.bf16.msra.mxu2 %v2452_v39 }
 0xcad   :  { %v2321_v63 = vpop.xlane.xlu2 %2320 }
 0xcae   :  { %3487 = vrcp.f32 %v2321_v63  ;;  %v2445_v21 = vpop.f32.mrf.mxu1 }
 0xcaf   :  { %3489 = vrcp.f32 %v2318_v31 }
 0xcb4   :  { %v3488_v40 = vpop.eup %3487  ;;  %v2384_v5 = vpop.f32.mrf.mxu2 }
 0xcb5   :  { %v2343_v33 = vmul.f32 %v3488_v40, %v3482_v28  ;;  %v2388_v42 = vpack.c.bf16 %v2384_v5, %v2384_v5  ;;  %v3490_v38 = vpop.eup %3489 }
 0xcb6   :  { %v2342_v50 = vmul.f32 %v3490_v38, %v4745_v32  ;;  %v3276_v32 = vld [vmem:[%s4960_s6 + $0x38] sm:$0xff] }
 0xcb7   :  { %v2510_v51 = vpack.c.bf16 %v2343_v33, %v2343_v33  ;;  %3311 = vmatmul.msk.bf16.vlgmr.msrb.gmra.mxu3 %vm380_vm5, %v2388_v42  ;;  %v1694_v13 = vpack.c.bf16 %v3276_v32, %v3276_v32 }
 0xcb8   :  { %2562 = vmatpush.bf16.msrb.mxu3 %v4631_v0  ;;  %v2468_v3 = vpack.c.bf16 %v2342_v50, %v2342_v50 }
 0xcb9   :  { %3317 = vmatmul.msk.bf16.vlgmr.msrb.gmra.mxu1 %vm380_vm5, %v2510_v51  ;;  %3318 = vmatmul.msk.bf16.vlgmr.msrb.gmra.mxu2 %vm380_vm5, %v2531_v35  ;;  %v2493_v1 = vsel %vm984_vm4, %v1694_v13, 0 }
 0xcba   :  { %2502 = vmatpush.bf16.msrb.mxu0 %v2493_v1 }
 0xcbc   :  { %v2386_v43 = vpop.f32.mrf.mxu2 }
 0xcbe   :  { %2578 = vmatpush.bf16.msra.mxu0 %v2412_v48 }
 0xcc7   :  { %3315 = vmatmul.msk.bf16.vlgmr.msra.gmra.mxu3 %vm380_vm5, %v2468_v3 }
 0xcc8   :  { %2636 = vmatpush.bf16.msra.mxu3 %v2627_v8 }
 0xd06   :  { %v2423_v39 = vpop.f32.mrf.mxu0 }
 0xd0d   :  { %v2327_v53 = vpop.xlane.xlu0 %2326 }
 0xd0e   :  { %3491 = vrcp.f32 %v2327_v53  ;;  %v2425_v0 = vpop.f32.mrf.mxu0 }
 0xd0f   :  { %3493 = vrcp.f32 %v2330_v55 }
 0xd14   :  { %v3492_v62 = vpop.eup %3491 }
 0xd15   :  { %v2345_v57 = vmul.f32 %v3492_v62, %v3484_v10  ;;  %v3494_v44 = vpop.eup %3493 }
 0xd16   :  { %v2346_v37 = vmul.f32 %v3494_v44, %v4750_v4 }
 0xd17   :  { %v2584_v22 = vpack.c.bf16 %v2345_v57, %v2345_v57 }
 0xd18   :  { %v2622_v27 = vpack.c.bf16 %v2346_v37, %v2346_v37 }
 0xd19   :  { %3321 = vmatmul.msk.bf16.vlgmr.msra.gmra.mxu1 %vm380_vm5, %v2584_v22 }
 0xd2c   :  { %v2463_v6 = vpop.f32.mrf.mxu2 }
 0xd34   :  { %v2465_v12 = vpop.f32.mrf.mxu2 }
 0xd36   :  { %v2526_v11 = vpop.f32.mrf.mxu1 }
 0xd37   :  { %v2530_v28 = vpack.c.bf16 %v2526_v11, %v2526_v11  ;;  %v3328_v11 = vld [vmem:[%s4962_s8 + $0x20] sm:$0xff] }
 0xd3a   :  { %v2404_v59 = vpop.f32.mrf.mxu3 }
 0xd3b   :  { %v2424_v61 = vadd.f32 %v2423_v39, %v2404_v59  ;;  %v3329_v59 = vld [vmem:[%s4962_s8 + $0x28] sm:$0xff] }
 0xd3c   :  { %v2547_v49 = vpop.f32.mrf.mxu2 }
 0xd3d   :  { %v2551_v56 = vpack.c.bf16 %v2547_v49, %v2547_v49  ;;  %v2467_v60 = vadd.f32 %v2463_v6, %v2424_v61  ;;  %v2736_v61 = vpack.c.bf16 %v3329_v59, %v3328_v11 }
 0xd3e   :  { %v2528_v16 = vpop.f32.mrf.mxu1 }
 0xd3f   :  { %3319 = vmatmul.msk.bf16.vlgmr.msrb.gmra.mxu3 %vm380_vm5, %v2551_v56 }
 0xd42   :  { %v2406_v19 = vpop.f32.mrf.mxu3 }
 0xd44   :  { %v2549_v23 = vpop.f32.mrf.mxu2 }
 0xd4a   :  { %v2484_v24 = vpop.f32.mrf.mxu3 }
 0xd4b   :  { %v2488_v26 = vpack.c.bf16 %v2484_v24, %v2484_v24 }
 0xd4d   :  { %3316 = vmatmul.msk.bf16.vlgmr.msrb.gmra.mxu0 %vm380_vm5, %v2488_v26 }
 0xd4e   :  { %2653 = vmatpush.bf16.msrb.mxu0 %v2493_v1  ;;  %v3331_v1 = vld [vmem:[%s4962_s8 + $0x38] sm:$0xff] }
 0xd4f   :  { %3323 = vmatmul.msk.bf16.vlgmr.msra.gmra.mxu3 %vm380_vm5, %v2622_v27 }
 0xd52   :  { %v2486_v15 = vpop.f32.mrf.mxu3 }
 0xd5d   :  { %3320 = vmatmul.msk.bf16.vlgmr.msra.gmra.mxu0 %vm380_vm5, %v2530_v28 }
 0xd96   :  { %v2600_v47 = vpop.f32.mrf.mxu1 }
 0xd97   :  { %v2604_v7 = vpack.c.bf16 %v2600_v47, %v2600_v47  ;;  %v3405_v47 = vld [vmem:[%s4961_s7 + $0x7] ss:$0 sm:$0xff] }
 0xd99   :  { %3322 = vmatmul.msk.bf16.vlgmr.msra.gmra.mxu2 %vm380_vm5, %v2604_v7 }
 0xd9e   :  { %v2602_v46 = vpop.f32.mrf.mxu1 }
 0xdc2   :  { %v2564_v48 = vpop.f32.mrf.mxu3 }
 0xdca   :  { %v2504_v54 = vpop.f32.mrf.mxu0  ;;  %v2566_v4 = vpop.f32.mrf.mxu3 }
 0xdcb   :  { %v2508_v29 = vadd.f32 %v2504_v54, %v2467_v60  ;;  %v3406_v54 = vld [vmem:[%s4961_s7 + $0x8] ss:$0 sm:$0xff] }
 0xdcd   :  { %2509 = vst.msk [vmem:[#allocation3] sm:$0xff] %vm143_vm12, %v2508_v29 }
 0xdd2   :  { %v2506_v25 = vpop.f32.mrf.mxu0  ;;  %v2638_v18 = vpop.f32.mrf.mxu3 }
 0xdd3   :  { %v2642_v58 = vpack.c.bf16 %v2638_v18, %v2638_v18 }
 0xdd4   :  { %v2661_v17 = vld [vmem:[#allocation3] sm:$0xff] }
 0xdd5   :  { %3324 = vmatmul.msk.bf16.vlgmr.msrb.gmra.mxu0 %vm380_vm5, %v2642_v58  ;;  %v2668_v10 = vadd.f32 %v3404_v36, %v2661_v17  ;;  %v3407_v17 = vld [vmem:[%s4963_s9 + $0x1] ss:$0 sm:$0xff] }
 0xdd7   :  { %v2670_v14 = vadd.f32 %v2668_v10, %v4463_v45 }
 0xdd9   :  { %v2676_v20 = vsel %vm143_vm12, %v2670_v14, 0.0 }
 0xdda   :  { %2677 = vadd.xlane.f32.xlu2 %v2676_v20  ;;  %v2580_v2 = vpop.f32.mrf.mxu0  ;;  %v2640_v63 = vpop.f32.mrf.mxu3 }
 0xddb   :  { %v2581_v21 = vadd.f32 %v2580_v2, %v2564_v48 }
 0xde2   :  { %v2582_v30 = vpop.f32.mrf.mxu0 }
 0xe1c   :  { %v2617_v9 = vpop.f32.mrf.mxu2 }
 0xe1d   :  { %v2621_v42 = vadd.f32 %v2617_v9, %v2581_v21 }
 0xe24   :  { %v2619_v40 = vpop.f32.mrf.mxu2 }
 0xe4d   :  { %v2678_v5 = vpop.xlane.xlu2 %2677 }
 0xe4e   :  { %v2682_v31 = vmul.f32 %v2678_v5, %v3717_v41 }
 0xe50   :  { %v2684_v33 = vsub.f32 %v2670_v14, %v2682_v31 }
 0xe52   :  { %v2655_v35 = vpop.f32.mrf.mxu0  ;;  %v2686_v51 = vmul.f32 %v2684_v33, %v2684_v33 }
 0xe53   :  { %v2659_v43 = vadd.f32 %v2655_v35, %v2621_v42 }
 0xe54   :  { %v2688_v38 = vsel %vm143_vm12, %v2686_v51, 0.0 }
 0xe55   :  { %2660 = vst.msk [vmem:[#allocation3 + $0x8] sm:$0xff] %vm143_vm12, %v2659_v43  ;;  %2689 = vadd.xlane.f32.xlu1 %v2688_v38 }
 0xe5a   :  { %v2657_v45 = vpop.f32.mrf.mxu0 }
 0xe5b   :  { %v3342_v45 = vld [vmem:[%s4964_s10 + $0x70] sm:$0xff] }
 0xe5c   :  { %v2662_v50 = vld [vmem:[#allocation3 + $0x8] sm:$0xff] }
 0xe5d   :  { %v2669_v52 = vadd.f32 %v3404_v36, %v2662_v50  ;;  %v3343_v50 = vld [vmem:[%s4964_s10 + $0x78] sm:$0xff] }
 0xe5f   :  { %v2671_v3 = vadd.f32 %v2669_v52, %v4503_v34  ;;  %v3330_v34 = vld [vmem:[%s4962_s8 + $0x30] sm:$0xff] }
 0xe60   :  { %v2737_v6 = vpack.c.bf16 %v3331_v1, %v3330_v34 }
 0xe61   :  { %v2679_v8 = vsel %vm143_vm12, %v2671_v3, 0.0 }
 0xe62   :  { %2680 = vadd.xlane.f32.xlu0 %v2679_v8  ;;  %2752 = vmatpush.bf16.msrb.mxu1 %v2737_v6 }
 0xe66   :  { %2753 = vmatpush.bf16.msrb.mxu1 %v2736_v61 }
 0xec8   :  { %v2690_v22 = vpop.xlane.xlu1 %2689 }
 0xec9   :  { %v2694_v32 = vmul.f32 %v2690_v22, %v3717_v41  ;;  %v3340_v22 = vld [vmem:[%s4964_s10 + $0x60] sm:$0xff] }
 0xecb   :  { %v2696_v13 = vadd.f32 1e-12, %v2694_v32  ;;  %v3341_v32 = vld [vmem:[%s4964_s10 + $0x68] sm:$0xff] }
 0xecc   :  { %v2860_v34 = vpack.c.bf16 %v3341_v32, %v3340_v22 }
 0xecd   :  { %3495 = vrsqrt.f32 %v2696_v13  ;;  %vm2704_vm5 = vweird.f32 %v2696_v13 }
 0xed3   :  { %v3496_v12 = vpop.eup %3495 }
 0xed4   :  { %v2699_v49 = vmul.f32 %v3496_v12, %v2696_v13  ;;  %vm2705_vm4 = vweird.f32 %v3496_v12 }
 0xed5   :  { %v2681_v39 = vpop.xlane.xlu0 %2680  ;;  %vm2706_vm15 = vmor %vm2704_vm5, %vm2705_vm4 }
 0xed6   :  { %v2683_v53 = vmul.f32 %v2681_v39, %v3717_v41  ;;  %v2700_v55 = vmul.f32 %v3496_v12, %v2699_v49  ;;  %v3338_v49 = vld [vmem:[%s4964_s10 + $0x50] sm:$0xff] }
 0xed8   :  { %v2685_v0 = vsub.f32 %v2671_v3, %v2683_v53  ;;  %v2701_v19 = vmul.f32 0.5, %v2700_v55  ;;  %v2861_v3 = vpack.c.bf16 %v3343_v50, %v3342_v45  ;;  %v3339_v55 = vld [vmem:[%s4964_s10 + $0x58] sm:$0xff] }
 0xeda   :  { %v2687_v62 = vmul.f32 %v2685_v0, %v2685_v0  ;;  %v2702_v23 = vsub.f32 1.5, %v2701_v19  ;;  %2874 = vmatpush.bf16.msrb.mxu2 %v2861_v3 }
 0xedc   :  { %v2691_v57 = vsel %vm143_vm12, %v2687_v62, 0.0  ;;  %v2703_v37 = vmul.f32 %v3496_v12, %v2702_v23 }
 0xedd   :  { %2692 = vadd.xlane.f32.xlu2 %v2691_v57 }
 0xede   :  { %v2707_v27 = vsel %vm2706_vm15, %v3496_v12, %v2703_v37  ;;  %2875 = vmatpush.bf16.msrb.mxu2 %v2860_v34 }
 0xedf   :  { %v2718_v7 = vmul.f32 %v2707_v27, %v2684_v33 }
 0xee1   :  { %v2723_v4 = vmul.f32 %v3405_v47, %v2718_v7 }
 0xee3   :  { %v4825_v25 = vadd.f32 %v3406_v54, %v2723_v4 }
 0xf50   :  { %v2693_v56 = vpop.xlane.xlu2 %2692 }
 0xf51   :  { %v2695_v60 = vmul.f32 %v2693_v56, %v3717_v41 }
 0xf53   :  { %v2697_v16 = vadd.f32 1e-12, %v2695_v60  ;;  %v2859_v60 = vpack.c.bf16 %v3339_v55, %v3338_v49 }
 0xf55   :  { %3497 = vrsqrt.f32 %v2697_v16  ;;  %vm2714_vm1 = vweird.f32 %v2697_v16  ;;  %2876 = vmatpush.bf16.msrb.mxu2 %v2859_v60 }
 0xf5b   :  { %v3498_v44 = vpop.eup %3497 }
 0xf5c   :  { %v2709_v24 = vmul.f32 %v3498_v44, %v2697_v16  ;;  %vm2715_vm0 = vweird.f32 %v3498_v44 }
 0xf5d   :  { %vm2716_vm2 = vmor %vm2714_vm1, %vm2715_vm0 }
 0xf5e   :  { %v2710_v26 = vmul.f32 %v3498_v44, %v2709_v24  ;;  %v3336_v24 = vld [vmem:[%s4964_s10 + $0x40] sm:$0xff] }
 0xf60   :  { %v2711_v15 = vmul.f32 0.5, %v2710_v26  ;;  %v3337_v26 = vld [vmem:[%s4964_s10 + $0x48] sm:$0xff] }
 0xf62   :  { %v2712_v28 = vsub.f32 1.5, %v2711_v15  ;;  %v2858_v15 = vpack.c.bf16 %v3337_v26, %v3336_v24 }
 0xf64   :  { %v2713_v46 = vmul.f32 %v3498_v44, %v2712_v28  ;;  %2877 = vmatpush.bf16.msrb.mxu2 %v2858_v15 }
 0xf66   :  { %v2717_v48 = vsel %vm2716_vm2, %v3498_v44, %v2713_v46 }
 0xf67   :  { %v2719_v29 = vmul.f32 %v2717_v48, %v2685_v0 }
 0xf69   :  { %v2724_v36 = vmul.f32 %v3405_v47, %v2719_v29 }
 0xf6b   :  { %v4827_v18 = vadd.f32 %v3406_v54, %v2724_v36 }
 0xf6d   :  { %v2730_v58 = vpack.c.bf16 %v4827_v18, %v4825_v25 }
 0xf6f   :  { %3333 = vmatmul.msk.bf16.vlgmr.msrb.gmra.mxu1 %vm143_vm12, %v2730_v58 }
 0xfec   :  { %v2755_v10 = vpop.f32.mrf.mxu1 }
 0xfed   :  { %v4835_v14 = vadd.f32 %v3407_v17, %v2755_v10 }
 0xfef   :  { %v4838_v20 = vmul.f32 0.70710677, %v4835_v14 }
 0xff1   :  { %v2764_v2 = vmul.f32 %v4838_v20, %v4838_v20 }
 0xff3   :  { %v2765_v63 = vmin.f32 %v2764_v2, 16.0 }
 0xff4   :  { %v2757_v21 = vpop.f32.mrf.mxu1 }
 0xff5   :  { %v2766_v30 = vmul.f32 2.1237322e-06, %v2765_v63  ;;  %v2777_v9 = vmul.f32 3.8918573e-05, %v2765_v63  ;;  %v4842_v40 = vadd.f32 %v3407_v17, %v2757_v21 }
 0xff7   :  { %v2767_v5 = vadd.f32 0.00028619796, %v2766_v30  ;;  %v2778_v31 = vadd.f32 0.001143296, %v2777_v9  ;;  %v4845_v33 = vmul.f32 0.70710677, %v4842_v40 }
 0xff9   :  { %v2779_v42 = vmul.f32 %v2778_v31, %v2765_v63  ;;  %v2804_v35 = vmul.f32 %v4845_v33, %v4845_v33  ;;  %v2768_v51 = vmul.f32 %v2767_v5, %v2765_v63 }
 0xffb   :  { %v2780_v43 = vadd.f32 0.014752088, %v2779_v42  ;;  %v4849_v38 = vmin.f32 %v2804_v35, 16.0  ;;  %v2769_v53 = vadd.f32 0.0036580483, %v2768_v51 }
 0xffd   :  { %v2781_v52 = vmul.f32 %v2780_v43, %v2765_v63  ;;  %v2806_v8 = vmul.f32 2.1237322e-06, %v4849_v38  ;;  %v2817_v39 = vmul.f32 3.8918573e-05, %v4849_v38  ;;  %v2770_v12 = vmul.f32 %v2769_v53, %v2765_v63 }
 0xfff   :  { %v2782_v0 = vadd.f32 0.112945676, %v2781_v52  ;;  %v2807_v62 = vadd.f32 0.00028619796, %v2806_v8  ;;  %v2818_v57 = vadd.f32 0.001143296, %v2817_v39 }
0x1000   :  { %v2771_v19 = vadd.f32 0.05243302, %v2770_v12 }
0x1001   :  { %v2783_v13 = vmul.f32 %v2782_v0, %v2765_v63  ;;  %v2808_v1 = vmul.f32 %v2807_v62, %v4849_v38  ;;  %v2819_v6 = vmul.f32 %v2818_v57, %v4849_v38 }
0x1002   :  { %v2772_v28 = vmul.f32 %v2771_v19, %v2765_v63 }
0x1003   :  { %v2784_v11 = vadd.f32 0.4994258, %v2783_v13  ;;  %v2809_v59 = vadd.f32 0.0036580483, %v2808_v1  ;;  %v2820_v61 = vadd.f32 0.014752088, %v2819_v6 }
0x1004   :  { %v2773_v54 = vadd.f32 0.18741608, %v2772_v28  ;;  %v2760_v1 = vmul.f32 0.5, %v4835_v14  ;;  %v2761_v6 = vmul.f32 0.5, %v4842_v40 }
0x1005   :  { %v2785_v56 = vmul.f32 %v2784_v11, %v2765_v63  ;;  %v2821_v16 = vmul.f32 %v2820_v61, %v4849_v38  ;;  %v2810_v44 = vmul.f32 %v2809_v59, %v4849_v38 }
0x1006   :  { %v2774_v17 = vmul.f32 %v2773_v54, %v2765_v63  ;;  %v2951_v54 = vld [vmem:[%s4966_s12 + $0x18] sm:$0xff] }
0x1007   :  { %v2786_v23 = vadd.f32 1.0, %v2785_v56  ;;  %v2822_v37 = vadd.f32 0.112945676, %v2821_v16  ;;  %v2811_v47 = vadd.f32 0.05243302, %v2810_v44 }
0x1008   :  { %v2775_v5 = vadd.f32 1.1283791, %v2774_v17 }
0x1009   :  { %3499 = vrcp.f32 %v2786_v23  ;;  %v2823_v27 = vmul.f32 %v2822_v37, %v4849_v38  ;;  %v2812_v29 = vmul.f32 %v2811_v47, %v4849_v38  ;;  %v2798_v2 = vand.u32 2147483648, %v2786_v23 }
0x100a   :  { %v2796_v30 = vand.u32 2147483647, %v2786_v23  ;;  %vm2792_vm6 = vweird.f32 %v2786_v23  ;;  %v2776_v50 = vmul.f32 %v2775_v5, %v4838_v20 }
0x100b   :  { %v2824_v7 = vadd.f32 0.4994258, %v2823_v27  ;;  %v2813_v21 = vadd.f32 0.18741608, %v2812_v29  ;;  %v2799_v35 = vor.u32 1.1754944e-38, %v2798_v2 }
0x100c   :  { %vm2797_vm9 = vcmp.eq.f32.partialorder %v2796_v30, 8.507059e+37 }
0x100d   :  { %v2825_v46 = vmul.f32 %v2824_v7, %v4849_v38  ;;  %v2814_v51 = vmul.f32 %v2813_v21, %v4849_v38 }
0x100f   :  { %v3500_v48 = vpop.eup %3499  ;;  %v2826_v36 = vadd.f32 1.0, %v2825_v46  ;;  %v2815_v52 = vadd.f32 1.1283791, %v2814_v51 }
0x1010   :  { %v2788_v4 = vmul.f32 %v3500_v48, %v2786_v23  ;;  %vm2793_vm3 = vweird.f32 %v3500_v48 }
0x1011   :  { %3501 = vrcp.f32 %v2826_v36  ;;  %vm2794_vm8 = vmor %vm2792_vm6, %vm2793_vm3  ;;  %v2838_v3 = vand.u32 2147483648, %v2826_v36  ;;  %v2836_v53 = vand.u32 2147483647, %v2826_v36  ;;  %vm2832_vm11 = vweird.f32 %v2826_v36 }
0x1012   :  { %v2789_v58 = vsub.f32 1.0, %v2788_v4  ;;  %v2816_v22 = vmul.f32 %v2815_v52, %v4845_v33  ;;  %v3408_v33 = vld [vmem:[%s4961_s7 + $0x9] ss:$0 sm:$0xff]  ;;  %v2948_v4 = vld [vmem:[%s4966_s12] sm:$0xff]  ;;  %vm3022_vm6 = vcmask 17408  }
0x1013   :  { %v2839_v62 = vor.u32 1.1754944e-38, %v2838_v3  ;;  %vm2837_vm14 = vcmp.eq.f32.partialorder %v2836_v53, 8.507059e+37 }
0x1014   :  { %v2790_v10 = vmul.f32 %v3500_v48, %v2789_v58 }
0x1016   :  { %v2791_v9 = vadd.f32 %v3500_v48, %v2790_v10 }
0x1017   :  { %v3502_v31 = vpop.eup %3501 }
0x1018   :  { %v2795_v42 = vsel %vm2794_vm8, %v3500_v48, %v2791_v9  ;;  %v2828_v43 = vmul.f32 %v3502_v31, %v2826_v36  ;;  %vm2833_vm10 = vweird.f32 %v3502_v31  ;;  %v2950_v48 = vld [vmem:[%s4966_s12 + $0x10] sm:$0xff]  ;;  %v2949_v36 = vld [vmem:[%s4966_s12 + $0x8] sm:$0xff] }
0x1019   :  { %v2800_v45 = vsel %vm2797_vm9, %v2799_v35, %v2795_v42  ;;  %vm2834_vm13 = vmor %vm2832_vm11, %vm2833_vm10  ;;  %v2953_v29 = vpack.c.bf16 %v2951_v54, %v2950_v48  ;;  %v2952_v17 = vpack.c.bf16 %v2949_v36, %v2948_v4  ;;  %v3024_v48 = vld [vmem:[%s4956_s2] sm:$0x3]  ;;  %s3578_s2 = smov [#allocation6]   ;;  %vm3057_vm10 = vcmask 0  }
0x101a   :  { %v2829_v63 = vsub.f32 1.0, %v2828_v43  ;;  %v2801_v8 = vmul.f32 %v2800_v45, %v2776_v50  ;;  %v3409_v43 = vld [vmem:[%s4961_s7 + $0xa] ss:$0 sm:$0xff]  ;;  %v3410_v50 = vld [vmem:[%s4961_s7 + $0xb] ss:$0 sm:$0xff]  ;;  %s3075_s15 = sshll.u32 %s3578_s2, 4  ;;  %s3076_s15 = int_to_ptr.vmem [resolvable:$true] %s3075_s15 }
0x101b   :  { %2968 = vmatpush.bf16.msrb.mxu3 %v2953_v29 }
0x101c   :  { %v2830_v39 = vmul.f32 %v3502_v31, %v2829_v63  ;;  %v3334_v57 = vclamps-f32 %v2801_v8, 1.0 }
0x101e   :  { %v2831_v0 = vadd.f32 %v3502_v31, %v2830_v39  ;;  %v2844_v34 = vadd.f32 1.0, %v3334_v57 }
0x101f   :  { %2969 = vmatpush.bf16.msrb.mxu3 %v2952_v17 }
0x1020   :  { %v2835_v38 = vsel %vm2834_vm13, %v3502_v31, %v2831_v0  ;;  %v2846_v11 = vmul.f32 %v2844_v34, %v2760_v1  ;;  %v2980_v34 = vld [vmem:[%s4967_s13 + $0x18] sm:$0xff]  ;;  %v2977_v1 = vld [vmem:[%s4967_s13] sm:$0xff] }
0x1021   :  { %v2840_v32 = vsel %vm2837_vm14, %v2839_v62, %v2835_v38 }
0x1022   :  { %v2841_v13 = vmul.f32 %v2840_v32, %v2816_v22 }
0x1024   :  { %v3335_v20 = vclamps-f32 %v2841_v13, 1.0  ;;  %v2979_v13 = vld [vmem:[%s4967_s13 + $0x10] sm:$0xff] }
0x1026   :  { %v2845_v12 = vadd.f32 1.0, %v3335_v20  ;;  %v2982_v20 = vpack.c.bf16 %v2980_v34, %v2979_v13 }
0x1028   :  { %v2847_v59 = vmul.f32 %v2845_v12, %v2761_v6  ;;  %2996 = vmatpush.bf16.msra.mxu0 %v2982_v20  ;;  %v2978_v6 = vld [vmem:[%s4967_s13 + $0x8] sm:$0xff] }
0x1029   :  { %v2981_v12 = vpack.c.bf16 %v2978_v6, %v2977_v1 }
0x102a   :  { %v2848_v61 = vpack.c.bf16 %v2847_v59, %v2846_v11  ;;  %v3411_v11 = vld [vmem:[%s4965_s11 + $0x2] ss:$0 sm:$0xff] }
0x102c   :  { %3345 = vmatmul.msk.bf16.vlgmr.msrb.gmra.mxu2 %vm1497_vm7, %v2848_v61  ;;  %2997 = vmatpush.bf16.msra.mxu0 %v2981_v12 }
0x10af   :  { %v2879_v49 = vpop.f32.mrf.mxu2 }
0x10b0   :  { %v2880_v55 = vadd.f32 %v3408_v33, %v2879_v49 }
0x10b2   :  { %v2884_v56 = vadd.f32 %v2880_v55, %v4825_v25 }
0x10b4   :  { %v2890_v60 = vsel %vm143_vm12, %v2884_v56, 0.0 }
0x10b5   :  { %2891 = vadd.xlane.f32.xlu0 %v2890_v60 }
0x10b7   :  { %v2881_v14 = vpop.f32.mrf.mxu2 }
0x10b8   :  { %v2882_v16 = vadd.f32 %v3408_v33, %v2881_v14 }
0x10ba   :  { %v2885_v40 = vadd.f32 %v2882_v16, %v4827_v18 }
0x10bc   :  { %v2893_v19 = vsel %vm143_vm12, %v2885_v40, 0.0 }
0x10bd   :  { %2894 = vadd.xlane.f32.xlu1 %v2893_v19 }
0x1128   :  { %v2892_v23 = vpop.xlane.xlu0 %2891 }
0x1129   :  { %v2896_v44 = vmul.f32 %v2892_v23, %v3717_v41 }
0x112b   :  { %v2898_v37 = vsub.f32 %v2884_v56, %v2896_v44  ;;  %v3412_v56 = vld [vmem:[%s4968_s14] ss:$0 sm:$0xff]  ;;  %s3576_s14 = smov [#allocation4]  }
0x112c   :  { %s3064_s8 = sshll.u32 %s3576_s14, 4  ;;  %s3065_s8 = int_to_ptr.vmem [resolvable:$true] %s3064_s8 }
0x112d   :  { %v2900_v24 = vmul.f32 %v2898_v37, %v2898_v37 }
0x112f   :  { %v2902_v26 = vsel %vm143_vm12, %v2900_v24, 0.0 }
0x1130   :  { %v2895_v27 = vpop.xlane.xlu1 %2894  ;;  %2903 = vadd.xlane.f32.xlu2 %v2902_v26 }
0x1131   :  { %v2897_v25 = vmul.f32 %v2895_v27, %v3717_v41 }
0x1133   :  { %v2899_v15 = vsub.f32 %v2885_v40, %v2897_v25 }
0x1135   :  { %v2901_v28 = vmul.f32 %v2899_v15, %v2899_v15 }
0x1137   :  { %v2905_v47 = vsel %vm143_vm12, %v2901_v28, 0.0 }
0x1138   :  { %2906 = vadd.xlane.f32.xlu0 %v2905_v47 }
0x11a3   :  { %v2904_v18 = vpop.xlane.xlu2 %2903 }
0x11a4   :  { %v2908_v7 = vmul.f32 %v2904_v18, %v3717_v41 }
0x11a6   :  { %v2910_v46 = vadd.f32 1e-12, %v2908_v7 }
0x11a8   :  { %3503 = vrsqrt.f32 %v2910_v46  ;;  %vm2918_vm4 = vweird.f32 %v2910_v46 }
0x11ab   :  { %v2907_v58 = vpop.xlane.xlu0 %2906 }
0x11ac   :  { %v2909_v10 = vmul.f32 %v2907_v58, %v3717_v41  ;;  %v3033_v58 = vsub.f32 1.0, %v3024_v48 }
0x11ae   :  { %v3504_v2 = vpop.eup %3503  ;;  %v2911_v21 = vadd.f32 1e-12, %v2909_v10 }
0x11af   :  { %v2913_v30 = vmul.f32 %v3504_v2, %v2910_v46  ;;  %vm2919_vm7 = vweird.f32 %v3504_v2 }
0x11b0   :  { %3505 = vrsqrt.f32 %v2911_v21  ;;  %vm2920_vm5 = vmor %vm2918_vm4, %vm2919_vm7  ;;  %vm2928_vm0 = vweird.f32 %v2911_v21 }
0x11b1   :  { %v2914_v9 = vmul.f32 %v3504_v2, %v2913_v30 }
0x11b3   :  { %v2915_v5 = vmul.f32 0.5, %v2914_v9 }
0x11b5   :  { %v2916_v31 = vsub.f32 1.5, %v2915_v5  ;;  %v3577_v5 = vmov 6.0  }
0x11b6   :  { %v3506_v42 = vpop.eup %3505 }
0x11b7   :  { %v2917_v35 = vmul.f32 %v3504_v2, %v2916_v31  ;;  %v2923_v51 = vmul.f32 %v3506_v42, %v2911_v21  ;;  %vm2929_vm15 = vweird.f32 %v3506_v42 }
0x11b8   :  { %vm2930_vm1 = vmor %vm2928_vm0, %vm2929_vm15 }
0x11b9   :  { %v2921_v45 = vsel %vm2920_vm5, %v3504_v2, %v2917_v35  ;;  %v2924_v41 = vmul.f32 %v3506_v42, %v2923_v51 }
0x11ba   :  { %v2932_v63 = vmul.f32 %v2921_v45, %v2898_v37 }
0x11bb   :  { %v2925_v52 = vmul.f32 0.5, %v2924_v41 }
0x11bc   :  { %v2937_v3 = vmul.f32 %v3409_v43, %v2932_v63 }
0x11bd   :  { %v2926_v8 = vsub.f32 1.5, %v2925_v52 }
0x11be   :  { %v2942_v39 = vadd.f32 %v3410_v50, %v2937_v3 }
0x11bf   :  { %v2927_v53 = vmul.f32 %v3506_v42, %v2926_v8 }
0x11c0   :  { %2944 = vst.msk [vmem:[#allocation3] sm:$0xff] %vm143_vm12, %v2942_v39 }
0x11c1   :  { %v2931_v0 = vsel %vm2930_vm1, %v3506_v42, %v2927_v53 }
0x11c2   :  { %v2933_v62 = vmul.f32 %v2931_v0, %v2899_v15 }
0x11c4   :  { %v2938_v57 = vmul.f32 %v3409_v43, %v2933_v62 }
0x11c6   :  { %v2943_v22 = vadd.f32 %v3410_v50, %v2938_v57 }
0x11c8   :  { %2945 = vst.msk [vmem:[#allocation3 + $0x8] sm:$0xff] %vm143_vm12, %v2943_v22 }
0x11cf   :  { %v2946_v38 = vld [vmem:[#allocation3] ss:$8 sm:$0x3] }
0x11d0   :  { %v2947_v32 = vpack.c.bf16 %v2946_v38, %v2946_v38 }
0x11d2   :  { %3349 = vmatmul.msk.bf16.vlgmr.msrb.gmra.mxu3 %vm143_vm12, %v2947_v32 }
0x1255   :  { %v2971_v59 = vpop.f32.mrf.mxu3 }
0x1256   :  { %v2972_v61 = vadd.f32 %v3411_v11, %v2971_v59 }
0x1258   :  { %3507 = vtanh.f32 %v2972_v61 }
0x125d   :  { %v2973_v33 = vpop.f32.mrf.mxu3 }
0x125e   :  { %v3508_v49 = vpop.eup %3507 }
0x125f   :  { %v2976_v55 = vpack.c.bf16 %v3508_v49, %v3508_v49 }
0x1261   :  { %3350 = vmatmul.msk.bf16.vlgmr.msra.gmra.mxu0 %vm143_vm12, %v2976_v55 }
0x12de   :  { %v2999_v60 = vpop.f32.mrf.mxu0 }
0x12df   :  { %v3000_v14 = vadd.f32 %v3412_v56, %v2999_v60 }
0x12e1   :  { %v3351_v16 = vmul.f32 -1.442695, %v3000_v14 }
0x12e3   :  { %3509 = vpow2.f32 %v3351_v16 }
0x12e6   :  { %v3001_v40 = vpop.f32.mrf.mxu0 }
0x12e9   :  { %v3510_v19 = vpop.eup %3509 }
0x12ea   :  { %v3006_v23 = vadd.f32 1.0, %v3510_v19 }
0x12ec   :  { %3511 = vrcp.f32 %v3006_v23  ;;  %v3018_v26 = vand.u32 2147483648, %v3006_v23  ;;  %v3016_v25 = vand.u32 2147483647, %v3006_v23  ;;  %vm3012_vm12 = vweird.f32 %v3006_v23 }
0x12ee   :  { %v3019_v28 = vor.u32 1.1754944e-38, %v3018_v26  ;;  %vm3017_vm8 = vcmp.eq.f32.partialorder %v3016_v25, 8.507059e+37 }
0x12f2   :  { %v3512_v44 = vpop.eup %3511 }
0x12f3   :  { %v3008_v37 = vmul.f32 %v3512_v44, %v3006_v23  ;;  %vm3013_vm2 = vweird.f32 %v3512_v44 }
0x12f4   :  { %vm3014_vm3 = vmor %vm3012_vm12, %vm3013_vm2 }
0x12f5   :  { %v3009_v24 = vsub.f32 1.0, %v3008_v37 }
0x12f7   :  { %v3010_v27 = vmul.f32 %v3512_v44, %v3009_v24 }
0x12f9   :  { %v3011_v15 = vadd.f32 %v3512_v44, %v3010_v27 }
0x12fb   :  { %v3015_v47 = vsel %vm3014_vm3, %v3512_v44, %v3011_v15 }
0x12fc   :  { %v3020_v18 = vsel %vm3017_vm8, %v3019_v28, %v3015_v47 }
0x12fd   :  { %3513 = vlog2.f32 %v3020_v18  ;;  %v3028_v7 = vsub.f32 1.0, %v3020_v18  ;;  %3023 = vst.msk [vmem:[#allocation4] sm:$0x3] %vm3022_vm6, %v3020_v18 }
0x12fe   :  { %3069 = dma.vmem_to_hbm [thread:$0]  %s3065_s8, 32, %s3067_s18, [#allocation5]  }
0x12ff   :  { %3515 = vlog2.f32 %v3028_v7 }
0x1300   :  { %3517 = vrcp.f32 %v3577_v5 }
0x1303   :  { %v3514_v46 = vpop.eup %3513 }
0x1304   :  { %v3026_v54 = vmul.f32 0.6931472, %v3514_v46 }
0x1305   :  { %v3516_v4 = vpop.eup %3515 }
0x1306   :  { %v3027_v29 = vmax.f32 %v3026_v54, -100.0  ;;  %v3030_v36 = vmul.f32 0.6931472, %v3516_v4  ;;  %v3518_v31 = vpop.eup %3517 }
0x1307   :  { %v3048_v42 = vmul.f32 6.0, %v3518_v31  ;;  %vm3052_vm9 = vweird.f32 %v3518_v31 }
0x1308   :  { %v3031_v17 = vmax.f32 %v3030_v36, -100.0  ;;  %v3032_v10 = vmul.f32 %v3027_v29, %v3024_v48 }
0x1309   :  { %v3049_v35 = vsub.f32 1.0, %v3048_v42 }
0x130a   :  { %v3034_v2 = vmul.f32 %v3033_v58, %v3031_v17 }
0x130b   :  { %v3050_v41 = vmul.f32 %v3518_v31, %v3049_v35 }
0x130c   :  { %v3035_v21 = vadd.f32 %v3034_v2, %v3032_v10 }
0x130d   :  { %v3051_v52 = vadd.f32 %v3518_v31, %v3050_v41 }
0x130e   :  { %v3036_v30 = vsub.f32 0.0, %v3035_v21 }
0x130f   :  { %v3053_v39 = vsel %vm3052_vm9, %v3518_v31, %v3051_v52 }
0x1310   :  { %v3037_v9 = vsel %vm3022_vm6, %v3036_v30, 0.0 }
0x1311   :  { %3038 = vadd.xlane.f32.xlu1 %v3037_v9 }
0x1384   :  { %v3039_v51 = vpop.xlane.xlu1 %3038 }
0x1385   :  { %v3040_v43 = vrot.slane %v3039_v51, 4 }
0x1387   :  { %v3041_v45 = vadd.f32 %v3040_v43, %v3039_v51 }
0x1389   :  { %v3042_v50 = vrot.slane %v3041_v45, 2 }
0x138b   :  { %v3043_v63 = vadd.f32 %v3042_v50, %v3041_v45 }
0x138d   :  { %v3044_v3 = vrot.slane %v3043_v63, 1 }
0x138f   :  { %v3045_v8 = vadd.f32 %v3044_v3, %v3043_v63 }
0x1391   :  { %3352 = vpush %v3045_v8 }
0x1392   :  { %3354 = vpush %v3053_v39 }
0x13c2   :  { %s3353_s19 = spop %3352 }
0x13c3   :  { %s3355_s20 = spop %3354 }
0x13c4   :  { %s3055_s21 = smul.f32 %s3355_s20, %s3353_s19 }
0x13c6   :  { %v3056_v53 = vstv %s3055_s21 }
0x13c7   :  { %3058 = vst.msk [vmem:[#allocation6] sm:$0x1] %vm3057_vm10, %v3056_v53 }
0x13c8   :  { %3080 = dma.vmem_to_hbm [thread:$0]  %s3076_s15, 16, %s3078_s1, [#allocation7]  }
0x13c9   :  { %3567 = dma.done.wait [#allocation5], 32  }
0x13ca   :  { %3568 = vsyncadd [#allocation5], 4294967264 }
0x13cb   :  { %3569 = dma.done.wait [#allocation7], 16  }
0x13cc   :  { %3570 = vsyncadd [#allocation7], 4294967280 }
0x13cd   :  { %3089 = vsyncpa [#allocation5], 1 }
0x13ce   :  { %3090 = vsyncpa [#allocation7], 1 }

</bundles_post_ra>
